<compile_context>
chip_gen: v6e
topology: v6e:2x2x1
jax: 0.10.0
libtpu: 0.0.40
codegen_flags: <defaults>
</compile_context>

<pallas_src>
import math

import jax
import jax.numpy as jnp
from jax import lax
from jax.experimental import pallas as pl
from jax.experimental.pallas import tpu as pltpu

# ----- model hyper-parameters (net_arch) -----------------------------------
NUM_INPUT = 256    # vocab size
EN1_UNITS = 128
EN2_UNITS = 128
NUM_TOPIC = 32
DH        = 64
DH_PAD    = 128    # lane-dense padding for dt_vec / word_emb
VARIANCE  = 0.995
DROP_P    = 0.2
BN_EPS    = 1e-5

# ----- batching / tiling ----------------------------------------------------
GROUP_ROWS       = 8                      # rows sharing BatchNorm statistics (orig batch=8)
GROUPS_PER_BLOCK = 16                     # 16 groups -> M = 128 rows per grid step (fills MXU)
ROWS_PER_BLOCK   = GROUP_ROWS * GROUPS_PER_BLOCK
NUM_BLOCKS       = 2
TOTAL_ROWS       = NUM_BLOCKS * ROWS_PER_BLOCK
TOTAL_GROUPS     = TOTAL_ROWS // GROUP_ROWS


def _group_batch_norm(h):
    """Training-mode BatchNorm1d with statistics per independent 8-row group."""
    hg = h.reshape(GROUPS_PER_BLOCK, GROUP_ROWS, h.shape[-1])
    mu = jnp.mean(hg, axis=1, keepdims=True)
    d = hg - mu
    var = jnp.mean(d * d, axis=1, keepdims=True)
    return (d * lax.rsqrt(var + BN_EPS)).reshape(h.shape)


def prodlda_kernel(x_ref, eps_ref, m1_ref, m2_ref,
                   w1_ref, b1_ref, w2_ref, b2_ref,
                   wml_ref, bml_ref, wt_ref, ww_ref, bw_ref,
                   recon_ref, dt_ref, loss_ref):
    f32, bf16 = jnp.float32, jnp.bfloat16
    inv_keep = 1.0 / (1.0 - DROP_P)

    x = x_ref[...]                                                   # (M, V) f32

    # --- encoder (bf16 MXU operands, f32 accumulation) ---
    en1 = jax.nn.softplus(
        jnp.dot(x.astype(bf16), w1_ref[...], preferred_element_type=f32) + b1_ref[...])
    en2 = jax.nn.softplus(
        jnp.dot(en1.astype(bf16), w2_ref[...], preferred_element_type=f32) + b2_ref[...])
    en2 = en2 * m1_ref[...] * inv_keep                               # inverted dropout

    # --- fused mean|logvar head + per-group BatchNorm ---
    ml = jnp.dot(en2.astype(bf16), wml_ref[...], preferred_element_type=f32) + bml_ref[...]
    ml = _group_batch_norm(ml)                                       # (M, 2K)
    posterior_mean = ml[:, :NUM_TOPIC]
    posterior_logvar = ml[:, NUM_TOPIC:]
    posterior_std = jnp.exp(0.5 * posterior_logvar)                  # EUP exp; avoids sqrt
    posterior_var = posterior_std * posterior_std

    # --- reparameterize + softmax over topics ---
    z = posterior_mean + posterior_std * eps_ref[...]
    z = z - jnp.max(z, axis=1, keepdims=True)
    ez = jnp.exp(z)
    p = ez * pl.reciprocal(jnp.sum(ez, axis=1, keepdims=True), approx=True)
    p = p * m2_ref[...] * inv_keep                                   # inverted dropout

    # --- decoder ---
    dt_vec = jnp.tanh(
        jnp.dot(p.astype(bf16), wt_ref[...], preferred_element_type=f32))   # (M, DH_PAD)
    dec = jnp.dot(dt_vec.astype(bf16), ww_ref[...], preferred_element_type=f32) + bw_ref[...]
    dec = _group_batch_norm(dec)
    dec = dec - jnp.max(dec, axis=1, keepdims=True)
    ed = jnp.exp(dec)
    recon = ed * pl.reciprocal(jnp.sum(ed, axis=1, keepdims=True), approx=True)

    recon_ref[...] = recon                                           # (M, V) dense store
    dt_ref[...] = dt_vec                                             # lane-dense (M, DH_PAD)

    # --- ProdLDA loss, per row (lane-broadcast for an unmasked store) ---
    NL = -jnp.sum(x * jnp.log(recon + 1e-10), axis=1, keepdims=True)          # (M, 1)
    var_div = posterior_var * (1.0 / VARIANCE)
    diff_term = posterior_mean * posterior_mean * (1.0 / VARIANCE)
    logvar_div = math.log(VARIANCE) - posterior_logvar
    KLD = 0.5 * (jnp.sum(var_div + diff_term + logvar_div, axis=1, keepdims=True)
                 - float(NUM_TOPIC))                                          # (M, 1)
    loss_row = NL + KLD
    loss_ref[...] = jnp.broadcast_to(loss_row, (ROWS_PER_BLOCK, 128))


def prodlda_forward(x, eps, mask1, mask2, params):
    """Gridded ProdLDA forward. Each consecutive GROUP_ROWS rows form one independent
    mini-batch (its own BatchNorm statistics and its own averaged loss)."""
    B = x.shape[0]
    n_blocks = B // ROWS_PER_BLOCK

    def row_spec(feat):
        return pl.BlockSpec((ROWS_PER_BLOCK, feat), lambda i: (i, 0))

    def resident_spec(arr):                       # full-array, constant block index
        return pl.BlockSpec(arr.shape, lambda i: (0, 0))

    in_specs = ([row_spec(NUM_INPUT), row_spec(NUM_TOPIC),
                 row_spec(EN2_UNITS), row_spec(NUM_TOPIC)]
                + [resident_spec(a) for a in params])

    out_shapes = (
        jax.ShapeDtypeStruct((B, NUM_INPUT), jnp.float32),   # recon
        jax.ShapeDtypeStruct((B, DH_PAD), jnp.float32),      # dt_vec (padded lanes)
        jax.ShapeDtypeStruct((B, 128), jnp.float32),         # per-row loss (lane-broadcast)
    )
    out_specs = (row_spec(NUM_INPUT), row_spec(DH_PAD), row_spec(128))

    recon, dt_pad, loss_rows = pl.pallas_call(
        prodlda_kernel,
        out_shape=out_shapes,
        grid=(n_blocks,),
        in_specs=in_specs,
        out_specs=out_specs,
        compiler_params=pltpu.CompilerParams(dimension_semantics=("parallel",)),
    )(x, eps, mask1, mask2, *params)

    per_row_loss = loss_rows[:, 0]
    per_group_loss = per_row_loss.reshape(-1, GROUP_ROWS).mean(axis=1)   # (G,)
    dt_vec = dt_pad[:, :DH]
    return recon, per_group_loss, dt_vec


# ----- deterministic parameter init (mirrors the PyTorch __init__) ----------
def _xavier_normal(key, out_f, in_f):
    std = math.sqrt(2.0 / (in_f + out_f))               # gain = 1
    w = std * jax.random.normal(key, (out_f, in_f), dtype=jnp.float32)
    return w.T                                          # pre-transpose -> [in, out]


def init_params(key):
    ks = jax.random.split(key, 6)
    w1 = _xavier_normal(ks[0], EN1_UNITS, NUM_INPUT)                     # (V, 128)
    b1 = jnp.zeros((1, EN1_UNITS), jnp.float32)
    w2 = _xavier_normal(ks[1], EN2_UNITS, EN1_UNITS)                     # (128, 128)
    b2 = jnp.zeros((1, EN2_UNITS), jnp.float32)
    wm = _xavier_normal(ks[2], NUM_TOPIC, EN2_UNITS)                     # (128, 32)
    wl = _xavier_normal(ks[3], NUM_TOPIC, EN2_UNITS)                     # (128, 32)
    wml = jnp.concatenate([wm, wl], axis=1)                              # fused (128, 64)
    bml = jnp.zeros((1, 2 * NUM_TOPIC), jnp.float32)
    wt = _xavier_normal(ks[4], DH, NUM_TOPIC)                            # (32, 64), no bias
    wt = jnp.pad(wt, ((0, 0), (0, DH_PAD - DH)))                         # zero-pad -> (32, 128)
    ww = _xavier_normal(ks[5], NUM_INPUT, DH)                            # (64, V)
    ww = jnp.pad(ww, ((0, DH_PAD - DH), (0, 0)))                         # zero-pad -> (128, V)
    bw = jnp.zeros((1, NUM_INPUT), jnp.float32)
    # bf16 weights for the MXU; biases stay f32.
    bf = jnp.bfloat16
    return (w1.astype(bf), b1, w2.astype(bf), b2,
            wml.astype(bf), bml, wt.astype(bf), ww.astype(bf), bw)


if __name__ == "__main__":
    root = jax.random.PRNGKey(0)
    k_x, k_eps, k_m1, k_m2, k_params = jax.random.split(root, 5)

    B = TOTAL_ROWS
    # synthetic bag-of-words counts
    x = jnp.round(3.0 * jax.random.uniform(k_x, (B, NUM_INPUT))).astype(jnp.float32)
    # reparameterization noise (the PyTorch forward draws this per call)
    eps = jax.random.normal(k_eps, (B, NUM_TOPIC), dtype=jnp.float32)
    # training-mode dropout masks (p = 0.2)
    mask1 = jax.random.bernoulli(k_m1, 1.0 - DROP_P, (B, EN2_UNITS)).astype(jnp.float32)
    mask2 = jax.random.bernoulli(k_m2, 1.0 - DROP_P, (B, NUM_TOPIC)).astype(jnp.float32)

    params = init_params(k_params)

    fwd = jax.jit(prodlda_forward)
    recon, per_group_loss, dt_vec = fwd(x, eps, mask1, mask2, params)
    jax.block_until_ready((recon, per_group_loss, dt_vec))

    assert recon.shape == (B, NUM_INPUT)
    assert dt_vec.shape == (B, DH)
    assert per_group_loss.shape == (TOTAL_GROUPS,)
    assert bool(jnp.all(jnp.isfinite(recon)))
    assert bool(jnp.all(jnp.isfinite(per_group_loss)))
    assert bool(jnp.all(jnp.isfinite(dt_vec)))
    # recon rows are softmax -> sum to 1 (approx reciprocal -> slightly looser tolerance)
    assert bool(jnp.allclose(jnp.sum(recon, axis=1), 1.0, atol=2e-3))
    print("KERNEL_OK")
</pallas_src>

<mosaic_0001>
module attributes {stable_mosaic.version = 11 : i64} {
  func.func @prodlda_kernel(%arg0: i32, %arg1: memref<128x256xf32, #tpu.memory_space<vmem>>, %arg2: memref<128x32xf32, #tpu.memory_space<vmem>>, %arg3: memref<128x128xf32, #tpu.memory_space<vmem>>, %arg4: memref<128x32xf32, #tpu.memory_space<vmem>>, %arg5: memref<256x128xbf16, #tpu.memory_space<vmem>>, %arg6: memref<1x128xf32, #tpu.memory_space<vmem>>, %arg7: memref<128x128xbf16, #tpu.memory_space<vmem>>, %arg8: memref<1x128xf32, #tpu.memory_space<vmem>>, %arg9: memref<128x64xbf16, #tpu.memory_space<vmem>>, %arg10: memref<1x64xf32, #tpu.memory_space<vmem>>, %arg11: memref<32x128xbf16, #tpu.memory_space<vmem>>, %arg12: memref<128x256xbf16, #tpu.memory_space<vmem>>, %arg13: memref<1x256xf32, #tpu.memory_space<vmem>>, %arg14: memref<128x256xf32, #tpu.memory_space<vmem>>, %arg15: memref<128x128xf32, #tpu.memory_space<vmem>>, %arg16: memref<128x128xf32, #tpu.memory_space<vmem>>) attributes {dimension_semantics = [#tpu.dimension_semantics<parallel>], iteration_bounds = array<i64: 2>, scalar_prefetch = 0 : i64, scratch_operands = 0 : i64, tpu.core_type = #tpu.core_type<tc>, window_params = [{transform_indices = @transform_0, window_bounds = array<i64: 128, 256>}, {transform_indices = @transform_1, window_bounds = array<i64: 128, 32>}, {transform_indices = @transform_2, window_bounds = array<i64: 128, 128>}, {transform_indices = @transform_3, window_bounds = array<i64: 128, 32>}, {pipeline_mode = #tpu.pipeline_mode<synchronous>, transform_indices = @transform_4, window_bounds = array<i64: 256, 128>}, {pipeline_mode = #tpu.pipeline_mode<synchronous>, transform_indices = @transform_5, window_bounds = array<i64: 1, 128>}, {pipeline_mode = #tpu.pipeline_mode<synchronous>, transform_indices = @transform_6, window_bounds = array<i64: 128, 128>}, {pipeline_mode = #tpu.pipeline_mode<synchronous>, transform_indices = @transform_7, window_bounds = array<i64: 1, 128>}, {pipeline_mode = #tpu.pipeline_mode<synchronous>, transform_indices = @transform_8, window_bounds = array<i64: 128, 64>}, {pipeline_mode = #tpu.pipeline_mode<synchronous>, transform_indices = @transform_9, window_bounds = array<i64: 1, 64>}, {pipeline_mode = #tpu.pipeline_mode<synchronous>, transform_indices = @transform_10, window_bounds = array<i64: 32, 128>}, {pipeline_mode = #tpu.pipeline_mode<synchronous>, transform_indices = @transform_11, window_bounds = array<i64: 128, 256>}, {pipeline_mode = #tpu.pipeline_mode<synchronous>, transform_indices = @transform_12, window_bounds = array<i64: 1, 256>}, {transform_indices = @transform_13, window_bounds = array<i64: 128, 256>}, {transform_indices = @transform_14, window_bounds = array<i64: 128, 128>}, {transform_indices = @transform_15, window_bounds = array<i64: 128, 128>}]} {
    %c0 = arith.constant 0 : index
    %c0_0 = arith.constant 0 : index
    %0 = vector.load %arg1[%c0, %c0_0] : memref<128x256xf32, #tpu.memory_space<vmem>>, vector<128x256xf32>
    %1 = arith.truncf %0 : vector<128x256xf32> to vector<128x256xbf16>
    %c0_1 = arith.constant 0 : index
    %c0_2 = arith.constant 0 : index
    %2 = vector.load %arg5[%c0_1, %c0_2] : memref<256x128xbf16, #tpu.memory_space<vmem>>, vector<256x128xbf16>
    %cst = arith.constant dense<0.000000e+00> : vector<128x128xf32>
    %3 = tpu.matmul %1, %2, %cst {dimension_numbers = #tpu.dot_dimension_numbers<[1], [0], [0], [1], [0, 0, 1, 1], [], []>} : vector<128x256xbf16>, vector<256x128xbf16>, vector<128x128xf32> -> vector<128x128xf32>
    %c0_3 = arith.constant 0 : index
    %c0_4 = arith.constant 0 : index
    %4 = vector.load %arg6[%c0_3, %c0_4] : memref<1x128xf32, #tpu.memory_space<vmem>>, vector<1x128xf32>
    %5 = vector.broadcast %4 : vector<1x128xf32> to vector<128x128xf32>
    %6 = arith.addf %3, %5 : vector<128x128xf32>
    %cst_5 = arith.constant 0.000000e+00 : f32
    %7 = vector.broadcast %cst_5 : f32 to vector<128x128xf32>
    %8 = arith.maximumf %6, %7 : vector<128x128xf32>
    %9 = vector.broadcast %cst_5 : f32 to vector<128x128xf32>
    %10 = arith.subf %6, %9 : vector<128x128xf32>
    %11 = arith.cmpf one, %10, %10 : vector<128x128xf32>
    %12 = vector.broadcast %cst_5 : f32 to vector<128x128xf32>
    %13 = arith.addf %6, %12 : vector<128x128xf32>
    %14 = math.absf %10 : vector<128x128xf32>
    %cst_6 = arith.constant 0.000000e+00 : f32
    %15 = vector.broadcast %cst_6 : f32 to vector<128x128xf32>
    %16 = arith.subf %15, %14 : vector<128x128xf32>
    %17 = math.exp %16 : vector<128x128xf32>
    %18 = math.log1p %17 : vector<128x128xf32>
    %19 = arith.addf %8, %18 : vector<128x128xf32>
    %20 = arith.select %11, %13, %19 : vector<128x128xi1>, vector<128x128xf32>
    %21 = arith.truncf %20 : vector<128x128xf32> to vector<128x128xbf16>
    %c0_7 = arith.constant 0 : index
    %c0_8 = arith.constant 0 : index
    %22 = vector.load %arg7[%c0_7, %c0_8] : memref<128x128xbf16, #tpu.memory_space<vmem>>, vector<128x128xbf16>
    %cst_9 = arith.constant dense<0.000000e+00> : vector<128x128xf32>
    %23 = tpu.matmul %21, %22, %cst_9 {dimension_numbers = #tpu.dot_dimension_numbers<[1], [0], [0], [1], [0, 0, 1, 1], [], []>} : vector<128x128xbf16>, vector<128x128xbf16>, vector<128x128xf32> -> vector<128x128xf32>
    %c0_10 = arith.constant 0 : index
    %c0_11 = arith.constant 0 : index
    %24 = vector.load %arg8[%c0_10, %c0_11] : memref<1x128xf32, #tpu.memory_space<vmem>>, vector<1x128xf32>
    %25 = vector.broadcast %24 : vector<1x128xf32> to vector<128x128xf32>
    %26 = arith.addf %23, %25 : vector<128x128xf32>
    %cst_12 = arith.constant 0.000000e+00 : f32
    %27 = vector.broadcast %cst_12 : f32 to vector<128x128xf32>
    %28 = arith.maximumf %26, %27 : vector<128x128xf32>
    %29 = vector.broadcast %cst_12 : f32 to vector<128x128xf32>
    %30 = arith.subf %26, %29 : vector<128x128xf32>
    %31 = arith.cmpf one, %30, %30 : vector<128x128xf32>
    %32 = vector.broadcast %cst_12 : f32 to vector<128x128xf32>
    %33 = arith.addf %26, %32 : vector<128x128xf32>
    %34 = math.absf %30 : vector<128x128xf32>
    %cst_13 = arith.constant 0.000000e+00 : f32
    %35 = vector.broadcast %cst_13 : f32 to vector<128x128xf32>
    %36 = arith.subf %35, %34 : vector<128x128xf32>
    %37 = math.exp %36 : vector<128x128xf32>
    %38 = math.log1p %37 : vector<128x128xf32>
    %39 = arith.addf %28, %38 : vector<128x128xf32>
    %40 = arith.select %31, %33, %39 : vector<128x128xi1>, vector<128x128xf32>
    %c0_14 = arith.constant 0 : index
    %c0_15 = arith.constant 0 : index
    %41 = vector.load %arg3[%c0_14, %c0_15] : memref<128x128xf32, #tpu.memory_space<vmem>>, vector<128x128xf32>
    %42 = arith.mulf %40, %41 : vector<128x128xf32>
    %cst_16 = arith.constant 1.250000e+00 : f32
    %43 = vector.broadcast %cst_16 : f32 to vector<128x128xf32>
    %44 = arith.mulf %42, %43 : vector<128x128xf32>
    %45 = arith.truncf %44 : vector<128x128xf32> to vector<128x128xbf16>
    %c0_17 = arith.constant 0 : index
    %c0_18 = arith.constant 0 : index
    %46 = vector.load %arg9[%c0_17, %c0_18] : memref<128x64xbf16, #tpu.memory_space<vmem>>, vector<128x64xbf16>
    %cst_19 = arith.constant dense<0.000000e+00> : vector<128x64xf32>
    %47 = tpu.matmul %45, %46, %cst_19 {dimension_numbers = #tpu.dot_dimension_numbers<[1], [0], [0], [1], [0, 0, 1, 1], [], []>} : vector<128x128xbf16>, vector<128x64xbf16>, vector<128x64xf32> -> vector<128x64xf32>
    %c0_20 = arith.constant 0 : index
    %c0_21 = arith.constant 0 : index
    %48 = vector.load %arg10[%c0_20, %c0_21] : memref<1x64xf32, #tpu.memory_space<vmem>>, vector<1x64xf32>
    %49 = vector.broadcast %48 : vector<1x64xf32> to vector<128x64xf32>
    %50 = arith.addf %47, %49 : vector<128x64xf32>
    %51 = vector.shape_cast %50 : vector<128x64xf32> to vector<16x8x64xf32>
    %cst_22 = arith.constant dense<0.000000e+00> : vector<16x64xf32>
    %52 = vector.multi_reduction <add>, %51, %cst_22 [1] : vector<16x8x64xf32> to vector<16x64xf32>
    %53 = vector.shape_cast %52 : vector<16x64xf32> to vector<16x1x64xf32>
    %cst_23 = arith.constant 8.000000e+00 : f32
    %54 = vector.broadcast %cst_23 : f32 to vector<16x1x64xf32>
    %55 = arith.divf %53, %54 : vector<16x1x64xf32>
    %56 = vector.broadcast %55 : vector<16x1x64xf32> to vector<16x8x64xf32>
    %57 = arith.subf %51, %56 : vector<16x8x64xf32>
    %58 = arith.mulf %57, %57 : vector<16x8x64xf32>
    %cst_24 = arith.constant dense<0.000000e+00> : vector<16x64xf32>
    %59 = vector.multi_reduction <add>, %58, %cst_24 [1] : vector<16x8x64xf32> to vector<16x64xf32>
    %60 = vector.shape_cast %59 : vector<16x64xf32> to vector<16x1x64xf32>
    %cst_25 = arith.constant 8.000000e+00 : f32
    %61 = vector.broadcast %cst_25 : f32 to vector<16x1x64xf32>
    %62 = arith.divf %60, %61 : vector<16x1x64xf32>
    %cst_26 = arith.constant 9.99999974E-6 : f32
    %63 = vector.broadcast %cst_26 : f32 to vector<16x1x64xf32>
    %64 = arith.addf %62, %63 : vector<16x1x64xf32>
    %65 = math.rsqrt %64 : vector<16x1x64xf32>
    %66 = vector.broadcast %65 : vector<16x1x64xf32> to vector<16x8x64xf32>
    %67 = arith.mulf %57, %66 : vector<16x8x64xf32>
    %68 = vector.shape_cast %67 : vector<16x8x64xf32> to vector<128x64xf32>
    %69 = vector.extract_strided_slice %68 {offsets = [0, 0], sizes = [128, 32], strides = [1, 1]} : vector<128x64xf32> to vector<128x32xf32>
    %70 = vector.extract_strided_slice %68 {offsets = [0, 32], sizes = [128, 32], strides = [1, 1]} : vector<128x64xf32> to vector<128x32xf32>
    %cst_27 = arith.constant 5.000000e-01 : f32
    %71 = vector.broadcast %cst_27 : f32 to vector<128x32xf32>
    %72 = arith.mulf %71, %70 : vector<128x32xf32>
    %73 = math.exp %72 : vector<128x32xf32>
    %74 = arith.mulf %73, %73 : vector<128x32xf32>
    %c0_28 = arith.constant 0 : index
    %c0_29 = arith.constant 0 : index
    %75 = vector.load %arg2[%c0_28, %c0_29] : memref<128x32xf32, #tpu.memory_space<vmem>>, vector<128x32xf32>
    %76 = arith.mulf %73, %75 : vector<128x32xf32>
    %77 = arith.addf %69, %76 : vector<128x32xf32>
    %cst_30 = arith.constant dense<0xFF800000> : vector<128xf32>
    %78 = vector.multi_reduction <maximumf>, %77, %cst_30 [1] : vector<128x32xf32> to vector<128xf32>
    %79 = vector.shape_cast %78 : vector<128xf32> to vector<128x1xf32>
    %80 = vector.broadcast %79 : vector<128x1xf32> to vector<128x32xf32>
    %81 = arith.subf %77, %80 : vector<128x32xf32>
    %82 = math.exp %81 : vector<128x32xf32>
    %cst_31 = arith.constant dense<0.000000e+00> : vector<128xf32>
    %83 = vector.multi_reduction <add>, %82, %cst_31 [1] : vector<128x32xf32> to vector<128xf32>
    %84 = vector.shape_cast %83 : vector<128xf32> to vector<128x1xf32>
    %85 = tpu.reciprocal %84 {approx = true} : vector<128x1xf32> -> vector<128x1xf32>
    %86 = vector.broadcast %85 : vector<128x1xf32> to vector<128x32xf32>
    %87 = arith.mulf %82, %86 : vector<128x32xf32>
    %c0_32 = arith.constant 0 : index
    %c0_33 = arith.constant 0 : index
    %88 = vector.load %arg4[%c0_32, %c0_33] : memref<128x32xf32, #tpu.memory_space<vmem>>, vector<128x32xf32>
    %89 = arith.mulf %87, %88 : vector<128x32xf32>
    %cst_34 = arith.constant 1.250000e+00 : f32
    %90 = vector.broadcast %cst_34 : f32 to vector<128x32xf32>
    %91 = arith.mulf %89, %90 : vector<128x32xf32>
    %92 = arith.truncf %91 : vector<128x32xf32> to vector<128x32xbf16>
    %c0_35 = arith.constant 0 : index
    %c0_36 = arith.constant 0 : index
    %93 = vector.load %arg11[%c0_35, %c0_36] : memref<32x128xbf16, #tpu.memory_space<vmem>>, vector<32x128xbf16>
    %cst_37 = arith.constant dense<0.000000e+00> : vector<128x128xf32>
    %94 = tpu.matmul %92, %93, %cst_37 {dimension_numbers = #tpu.dot_dimension_numbers<[1], [0], [0], [1], [0, 0, 1, 1], [], []>} : vector<128x32xbf16>, vector<32x128xbf16>, vector<128x128xf32> -> vector<128x128xf32>
    %95 = math.tanh %94 : vector<128x128xf32>
    %96 = arith.truncf %95 : vector<128x128xf32> to vector<128x128xbf16>
    %c0_38 = arith.constant 0 : index
    %c0_39 = arith.constant 0 : index
    %97 = vector.load %arg12[%c0_38, %c0_39] : memref<128x256xbf16, #tpu.memory_space<vmem>>, vector<128x256xbf16>
    %cst_40 = arith.constant dense<0.000000e+00> : vector<128x256xf32>
    %98 = tpu.matmul %96, %97, %cst_40 {dimension_numbers = #tpu.dot_dimension_numbers<[1], [0], [0], [1], [0, 0, 1, 1], [], []>} : vector<128x128xbf16>, vector<128x256xbf16>, vector<128x256xf32> -> vector<128x256xf32>
    %c0_41 = arith.constant 0 : index
    %c0_42 = arith.constant 0 : index
    %99 = vector.load %arg13[%c0_41, %c0_42] : memref<1x256xf32, #tpu.memory_space<vmem>>, vector<1x256xf32>
    %100 = vector.broadcast %99 : vector<1x256xf32> to vector<128x256xf32>
    %101 = arith.addf %98, %100 : vector<128x256xf32>
    %102 = vector.shape_cast %101 : vector<128x256xf32> to vector<16x8x256xf32>
    %cst_43 = arith.constant dense<0.000000e+00> : vector<16x256xf32>
    %103 = vector.multi_reduction <add>, %102, %cst_43 [1] : vector<16x8x256xf32> to vector<16x256xf32>
    %104 = vector.shape_cast %103 : vector<16x256xf32> to vector<16x1x256xf32>
    %cst_44 = arith.constant 8.000000e+00 : f32
    %105 = vector.broadcast %cst_44 : f32 to vector<16x1x256xf32>
    %106 = arith.divf %104, %105 : vector<16x1x256xf32>
    %107 = vector.broadcast %106 : vector<16x1x256xf32> to vector<16x8x256xf32>
    %108 = arith.subf %102, %107 : vector<16x8x256xf32>
    %109 = arith.mulf %108, %108 : vector<16x8x256xf32>
    %cst_45 = arith.constant dense<0.000000e+00> : vector<16x256xf32>
    %110 = vector.multi_reduction <add>, %109, %cst_45 [1] : vector<16x8x256xf32> to vector<16x256xf32>
    %111 = vector.shape_cast %110 : vector<16x256xf32> to vector<16x1x256xf32>
    %cst_46 = arith.constant 8.000000e+00 : f32
    %112 = vector.broadcast %cst_46 : f32 to vector<16x1x256xf32>
    %113 = arith.divf %111, %112 : vector<16x1x256xf32>
    %cst_47 = arith.constant 9.99999974E-6 : f32
    %114 = vector.broadcast %cst_47 : f32 to vector<16x1x256xf32>
    %115 = arith.addf %113, %114 : vector<16x1x256xf32>
    %116 = math.rsqrt %115 : vector<16x1x256xf32>
    %117 = vector.broadcast %116 : vector<16x1x256xf32> to vector<16x8x256xf32>
    %118 = arith.mulf %108, %117 : vector<16x8x256xf32>
    %119 = vector.shape_cast %118 : vector<16x8x256xf32> to vector<128x256xf32>
    %cst_48 = arith.constant dense<0xFF800000> : vector<128xf32>
    %120 = vector.multi_reduction <maximumf>, %119, %cst_48 [1] : vector<128x256xf32> to vector<128xf32>
    %121 = vector.shape_cast %120 : vector<128xf32> to vector<128x1xf32>
    %122 = vector.broadcast %121 : vector<128x1xf32> to vector<128x256xf32>
    %123 = arith.subf %119, %122 : vector<128x256xf32>
    %124 = math.exp %123 : vector<128x256xf32>
    %cst_49 = arith.constant dense<0.000000e+00> : vector<128xf32>
    %125 = vector.multi_reduction <add>, %124, %cst_49 [1] : vector<128x256xf32> to vector<128xf32>
    %126 = vector.shape_cast %125 : vector<128xf32> to vector<128x1xf32>
    %127 = tpu.reciprocal %126 {approx = true} : vector<128x1xf32> -> vector<128x1xf32>
    %128 = vector.broadcast %127 : vector<128x1xf32> to vector<128x256xf32>
    %129 = arith.mulf %124, %128 : vector<128x256xf32>
    %c0_50 = arith.constant 0 : index
    %c0_51 = arith.constant 0 : index
    %130 = vector.load %arg14[%c0_50, %c0_51] : memref<128x256xf32, #tpu.memory_space<vmem>>, vector<128x256xf32>
    tpu.vector_store %arg14[%c0_50, %c0_51], %129 {strides = array<i32>} : memref<128x256xf32, #tpu.memory_space<vmem>>, vector<128x256xf32>,
    %c0_52 = arith.constant 0 : index
    %c0_53 = arith.constant 0 : index
    %131 = vector.load %arg15[%c0_52, %c0_53] : memref<128x128xf32, #tpu.memory_space<vmem>>, vector<128x128xf32>
    tpu.vector_store %arg15[%c0_52, %c0_53], %95 {strides = array<i32>} : memref<128x128xf32, #tpu.memory_space<vmem>>, vector<128x128xf32>,
    %cst_54 = arith.constant 1.000000e-10 : f32
    %132 = vector.broadcast %cst_54 : f32 to vector<128x256xf32>
    %133 = arith.addf %129, %132 : vector<128x256xf32>
    %134 = math.log %133 : vector<128x256xf32>
    %135 = arith.mulf %0, %134 : vector<128x256xf32>
    %cst_55 = arith.constant dense<0.000000e+00> : vector<128xf32>
    %136 = vector.multi_reduction <add>, %135, %cst_55 [1] : vector<128x256xf32> to vector<128xf32>
    %137 = vector.shape_cast %136 : vector<128xf32> to vector<128x1xf32>
    %cst_56 = arith.constant 0.000000e+00 : f32
    %138 = vector.broadcast %cst_56 : f32 to vector<128x1xf32>
    %139 = arith.subf %138, %137 : vector<128x1xf32>
    %cst_57 = arith.constant 1.00502515 : f32
    %140 = vector.broadcast %cst_57 : f32 to vector<128x32xf32>
    %141 = arith.mulf %74, %140 : vector<128x32xf32>
    %142 = arith.mulf %69, %69 : vector<128x32xf32>
    %cst_58 = arith.constant 1.00502515 : f32
    %143 = vector.broadcast %cst_58 : f32 to vector<128x32xf32>
    %144 = arith.mulf %142, %143 : vector<128x32xf32>
    %cst_59 = arith.constant -0.00501254201 : f32
    %145 = vector.broadcast %cst_59 : f32 to vector<128x32xf32>
    %146 = arith.subf %145, %70 : vector<128x32xf32>
    %147 = arith.addf %141, %144 : vector<128x32xf32>
    %148 = arith.addf %147, %146 : vector<128x32xf32>
    %cst_60 = arith.constant dense<0.000000e+00> : vector<128xf32>
    %149 = vector.multi_reduction <add>, %148, %cst_60 [1] : vector<128x32xf32> to vector<128xf32>
    %150 = vector.shape_cast %149 : vector<128xf32> to vector<128x1xf32>
    %cst_61 = arith.constant 3.200000e+01 : f32
    %151 = vector.broadcast %cst_61 : f32 to vector<128x1xf32>
    %152 = arith.subf %150, %151 : vector<128x1xf32>
    %cst_62 = arith.constant 5.000000e-01 : f32
    %153 = vector.broadcast %cst_62 : f32 to vector<128x1xf32>
    %154 = arith.mulf %153, %152 : vector<128x1xf32>
    %155 = arith.addf %139, %154 : vector<128x1xf32>
    %156 = vector.shape_cast %155 : vector<128x1xf32> to vector<128x1xf32>
    %157 = vector.broadcast %156 : vector<128x1xf32> to vector<128x128xf32>
    %c0_63 = arith.constant 0 : index
    %c0_64 = arith.constant 0 : index
    %158 = vector.load %arg16[%c0_63, %c0_64] : memref<128x128xf32, #tpu.memory_space<vmem>>, vector<128x128xf32>
    tpu.vector_store %arg16[%c0_63, %c0_64], %157 {strides = array<i32>} : memref<128x128xf32, #tpu.memory_space<vmem>>, vector<128x128xf32>,
    return
  }
  func.func @transform_0(%arg0: i32) -> (i32, i32) {
    %c0_i32 = arith.constant 0 : i32
    %c0_i32_0 = arith.constant 0 : i32
    return %arg0, %c0_i32 : i32, i32
  }
  func.func @transform_1(%arg0: i32) -> (i32, i32) {
    %c0_i32 = arith.constant 0 : i32
    %c0_i32_0 = arith.constant 0 : i32
    return %arg0, %c0_i32 : i32, i32
  }
  func.func @transform_2(%arg0: i32) -> (i32, i32) {
    %c0_i32 = arith.constant 0 : i32
    %c0_i32_0 = arith.constant 0 : i32
    return %arg0, %c0_i32 : i32, i32
  }
  func.func @transform_3(%arg0: i32) -> (i32, i32) {
    %c0_i32 = arith.constant 0 : i32
    %c0_i32_0 = arith.constant 0 : i32
    return %arg0, %c0_i32 : i32, i32
  }
  func.func @transform_4(%arg0: i32) -> (i32, i32) {
    %c0_i32 = arith.constant 0 : i32
    %c0_i32_0 = arith.constant 0 : i32
    %c0_i32_1 = arith.constant 0 : i32
    return %c0_i32, %c0_i32_0 : i32, i32
  }
  func.func @transform_5(%arg0: i32) -> (i32, i32) {
    %c0_i32 = arith.constant 0 : i32
    %c0_i32_0 = arith.constant 0 : i32
    %c0_i32_1 = arith.constant 0 : i32
    return %c0_i32, %c0_i32_0 : i32, i32
  }
  func.func @transform_6(%arg0: i32) -> (i32, i32) {
    %c0_i32 = arith.constant 0 : i32
    %c0_i32_0 = arith.constant 0 : i32
    %c0_i32_1 = arith.constant 0 : i32
    return %c0_i32, %c0_i32_0 : i32, i32
  }
  func.func @transform_7(%arg0: i32) -> (i32, i32) {
    %c0_i32 = arith.constant 0 : i32
    %c0_i32_0 = arith.constant 0 : i32
    %c0_i32_1 = arith.constant 0 : i32
    return %c0_i32, %c0_i32_0 : i32, i32
  }
  func.func @transform_8(%arg0: i32) -> (i32, i32) {
    %c0_i32 = arith.constant 0 : i32
    %c0_i32_0 = arith.constant 0 : i32
    %c0_i32_1 = arith.constant 0 : i32
    return %c0_i32, %c0_i32_0 : i32, i32
  }
  func.func @transform_9(%arg0: i32) -> (i32, i32) {
    %c0_i32 = arith.constant 0 : i32
    %c0_i32_0 = arith.constant 0 : i32
    %c0_i32_1 = arith.constant 0 : i32
    return %c0_i32, %c0_i32_0 : i32, i32
  }
  func.func @transform_10(%arg0: i32) -> (i32, i32) {
    %c0_i32 = arith.constant 0 : i32
    %c0_i32_0 = arith.constant 0 : i32
    %c0_i32_1 = arith.constant 0 : i32
    return %c0_i32, %c0_i32_0 : i32, i32
  }
  func.func @transform_11(%arg0: i32) -> (i32, i32) {
    %c0_i32 = arith.constant 0 : i32
    %c0_i32_0 = arith.constant 0 : i32
    %c0_i32_1 = arith.constant 0 : i32
    return %c0_i32, %c0_i32_0 : i32, i32
  }
  func.func @transform_12(%arg0: i32) -> (i32, i32) {
    %c0_i32 = arith.constant 0 : i32
    %c0_i32_0 = arith.constant 0 : i32
    %c0_i32_1 = arith.constant 0 : i32
    return %c0_i32, %c0_i32_0 : i32, i32
  }
  func.func @transform_13(%arg0: i32) -> (i32, i32) {
    %c0_i32 = arith.constant 0 : i32
    %c0_i32_0 = arith.constant 0 : i32
    return %arg0, %c0_i32 : i32, i32
  }
  func.func @transform_14(%arg0: i32) -> (i32, i32) {
    %c0_i32 = arith.constant 0 : i32
    %c0_i32_0 = arith.constant 0 : i32
    return %arg0, %c0_i32 : i32, i32
  }
  func.func @transform_15(%arg0: i32) -> (i32, i32) {
    %c0_i32 = arith.constant 0 : i32
    %c0_i32_0 = arith.constant 0 : i32
    return %arg0, %c0_i32 : i32, i32
  }
}

</mosaic_0001>

<bundles_post_ra>
// kernel: squeeze.1
= control target key start
LH: loop header
LB: loop body
LE: loop exit
PB: predicated region body
PF: predicated region fallthrough
CT: control target
= control target key end

     0   :  { %s131_s8 = smov 104   ;;  %s132_s9 = smov 112   ;;  %vm8_vm0 = vcmask 64512   ;;  %s222_s0 = inlined_call_operand.vmem [shape: f32[256], index: 0, kind: input, shape index: {}]   ;;  %s223_s1 = inlined_call_operand.vmem [shape: f32[32,8], index: 1, kind: output, shape index: {}]  }
   0x1   :  { %v5_v0 = vld [vmem:[%s222_s0] sm:$0x3]  ;;  %s130_s0 = smov 120   ;;  %s133_s10 = smov 96  }
   0x2   :  { %6 = vst [vmem:[#allocation0] sm:$0x3] %v5_v0  ;;  %s134_s11 = smov 88   ;;  %s135_s12 = smov 80  }
   0x3   :  { %s136_s13 = smov 72   ;;  %s137_s14 = smov 64  }
   0x4   :  { %s138_s17 = smov 56   ;;  %s139_s18 = smov 48  }
   0x5   :  { %s140_s19 = smov 40   ;;  %s141_s20 = smov 32  }
   0x6   :  { %s142_s21 = smov 24   ;;  %s143_s22 = smov 16  }
   0x7   :  { %s144_s23 = smov 8  }
   0x9   :  { %v10_v1 = vld [vmem:[#allocation0] sm:$0x3]  }
   0xa   :  { %v22_v2 = vld [vmem:[#allocation0] sm:$0x3]   ;;  %11 = vrot.lane.b32.xlu0 %v10_v1, %s130_s0 }
   0xb   :  { %23 = vrot.lane.b32.xlu1 %v22_v2, %s131_s8  ;;  %v16_v3 = vld [vmem:[#allocation0] sm:$0x3]  }
   0xc   :  { %v28_v4 = vld [vmem:[#allocation0] sm:$0x3]  }
   0xd   :  { %v34_v5 = vld [vmem:[#allocation0] sm:$0x3]  }
   0xe   :  { %17 = vrot.lane.b32.xlu0 %v16_v3, %s132_s9  ;;  %v40_v6 = vld [vmem:[#allocation0] sm:$0x3]  }
   0xf   :  { %29 = vrot.lane.b32.xlu1 %v28_v4, %s133_s10  ;;  %v46_v7 = vld [vmem:[#allocation0] sm:$0x3]  }
  0x10   :  { %v52_v8 = vld [vmem:[#allocation0] sm:$0x3]  }
  0x11   :  { %v58_v9 = vld [vmem:[#allocation0] sm:$0x3]  }
  0x12   :  { %35 = vrot.lane.b32.xlu0 %v34_v5, %s134_s11  ;;  %v64_v10 = vld [vmem:[#allocation0] sm:$0x3]  }
  0x13   :  { %41 = vrot.lane.b32.xlu1 %v40_v6, %s135_s12  ;;  %v7_v11 = vld [vmem:[#allocation0] sm:$0x3]  }
  0x14   :  { %9 = vst.msk [vmem:[%s223_s1] ss:$16 sm:$0x3] %vm8_vm0, %v7_v11   ;;  %v70_v12 = vld [vmem:[#allocation0] sm:$0x3]  }
  0x15   :  { %v76_v13 = vld [vmem:[#allocation0] sm:$0x3]  }
  0x16   :  { %47 = vrot.lane.b32.xlu0 %v46_v7, %s136_s13  ;;  %v82_v14 = vld [vmem:[#allocation0] sm:$0x3]  }
  0x17   :  { %53 = vrot.lane.b32.xlu1 %v52_v8, %s137_s14  ;;  %v88_v15 = vld [vmem:[#allocation0] sm:$0x3]  }
  0x18   :  { %v94_v16 = vld [vmem:[#allocation0] sm:$0x3]  }
  0x1a   :  { %59 = vrot.lane.b32.xlu0 %v58_v9, %s138_s17 }
  0x1b   :  { %65 = vrot.lane.b32.xlu1 %v64_v10, %s139_s18 }
  0x1e   :  { %71 = vrot.lane.b32.xlu0 %v70_v12, %s140_s19 }
  0x1f   :  { %77 = vrot.lane.b32.xlu1 %v76_v13, %s141_s20 }
  0x22   :  { %83 = vrot.lane.b32.xlu0 %v82_v14, %s142_s21 }
  0x23   :  { %89 = vrot.lane.b32.xlu1 %v88_v15, %s143_s22 }
  0x26   :  { %95 = vrot.lane.b32.xlu0 %v94_v16, %s144_s23 }
  0x7c   :  { %v12_v17 = vpop.permute.xlu0 %11  }
  0x7d   :  { %v24_v18 = vpop.permute.xlu1 %23   ;;  %100 = vst.msk [vmem:[%s223_s1 + $0x1] ss:$16 sm:$0x3] %vm8_vm0, %v12_v17  }
  0x7e   :  { %102 = vst.msk [vmem:[%s223_s1 + $0x3] ss:$16 sm:$0x3] %vm8_vm0, %v24_v18  }
  0x80   :  { %v18_v19 = vpop.permute.xlu0 %17  }
  0x81   :  { %v30_v20 = vpop.permute.xlu1 %29   ;;  %101 = vst.msk [vmem:[%s223_s1 + $0x2] ss:$16 sm:$0x3] %vm8_vm0, %v18_v19  }
  0x82   :  { %103 = vst.msk [vmem:[%s223_s1 + $0x4] ss:$16 sm:$0x3] %vm8_vm0, %v30_v20  }
  0x84   :  { %v36_v21 = vpop.permute.xlu0 %35  }
  0x85   :  { %v42_v22 = vpop.permute.xlu1 %41   ;;  %104 = vst.msk [vmem:[%s223_s1 + $0x5] ss:$16 sm:$0x3] %vm8_vm0, %v36_v21  }
  0x86   :  { %105 = vst.msk [vmem:[%s223_s1 + $0x6] ss:$16 sm:$0x3] %vm8_vm0, %v42_v22  }
  0x88   :  { %v48_v23 = vpop.permute.xlu0 %47  }
  0x89   :  { %v54_v24 = vpop.permute.xlu1 %53   ;;  %106 = vst.msk [vmem:[%s223_s1 + $0x7] ss:$16 sm:$0x3] %vm8_vm0, %v48_v23  }
  0x8a   :  { %107 = vst.msk [vmem:[%s223_s1 + $0x8] ss:$16 sm:$0x3] %vm8_vm0, %v54_v24  }
  0x8c   :  { %v60_v25 = vpop.permute.xlu0 %59  }
  0x8d   :  { %v66_v26 = vpop.permute.xlu1 %65   ;;  %108 = vst.msk [vmem:[%s223_s1 + $0x9] ss:$16 sm:$0x3] %vm8_vm0, %v60_v25  }
  0x8e   :  { %109 = vst.msk [vmem:[%s223_s1 + $0xa] ss:$16 sm:$0x3] %vm8_vm0, %v66_v26  }
  0x90   :  { %v72_v27 = vpop.permute.xlu0 %71  }
  0x91   :  { %v78_v28 = vpop.permute.xlu1 %77   ;;  %110 = vst.msk [vmem:[%s223_s1 + $0xb] ss:$16 sm:$0x3] %vm8_vm0, %v72_v27  }
  0x92   :  { %111 = vst.msk [vmem:[%s223_s1 + $0xc] ss:$16 sm:$0x3] %vm8_vm0, %v78_v28  }
  0x94   :  { %v84_v29 = vpop.permute.xlu0 %83  }
  0x95   :  { %v90_v30 = vpop.permute.xlu1 %89   ;;  %112 = vst.msk [vmem:[%s223_s1 + $0xd] ss:$16 sm:$0x3] %vm8_vm0, %v84_v29  }
  0x96   :  { %113 = vst.msk [vmem:[%s223_s1 + $0xe] ss:$16 sm:$0x3] %vm8_vm0, %v90_v30  }
  0x98   :  { %v96_v31 = vpop.permute.xlu0 %95  }
  0x99   :  { %114 = vst.msk [vmem:[%s223_s1 + $0xf] ss:$16 sm:$0x3] %vm8_vm0, %v96_v31  }

// kernel: prodlda_forward.1
= control target key start
LH: loop header
LB: loop body
LE: loop exit
PB: predicated region body
PF: predicated region fallthrough
CT: control target
= control target key end

     0   :  { %s8503_s0 = inlined_call_operand.vmem [shape: f32[256,256], index: 0, kind: input, shape index: {}]   ;;  %s8504_s1 = inlined_call_operand.vmem [shape: f32[256,32], index: 1, kind: input, shape index: {}]   ;;  %s8505_s2 = inlined_call_operand.hbm [shape: f32[256,128], index: 2, kind: input, shape index: {}]   ;;  %s8506_s3 = inlined_call_operand.vmem [shape: f32[256,32], index: 3, kind: input, shape index: {}]   ;;  %s8507_s4 = inlined_call_operand.vmem [shape: bf16[256,128], index: 4, kind: input, shape index: {}]   ;;  %s8508_s5 = inlined_call_operand.vmem [shape: f32[1,128], index: 5, kind: input, shape index: {}]   ;;  %s8509_s6 = inlined_call_operand.hbm [shape: bf16[128,128], index: 6, kind: input, shape index: {}]   ;;  %s8510_s7 = inlined_call_operand.vmem [shape: f32[1,128], index: 7, kind: input, shape index: {}]   ;;  %s8511_s8 = inlined_call_operand.vmem [shape: bf16[128,64], index: 8, kind: input, shape index: {}]   ;;  %s8512_s9 = inlined_call_operand.vmem [shape: f32[1,64], index: 9, kind: input, shape index: {}]   ;;  %s8513_s10 = inlined_call_operand.vmem [shape: bf16[32,128], index: 10, kind: input, shape index: {}]   ;;  %s8514_s11 = inlined_call_operand.hbm [shape: bf16[128,256], index: 11, kind: input, shape index: {}]   ;;  %s8515_s12 = inlined_call_operand.vmem [shape: f32[1,256], index: 12, kind: input, shape index: {}]   ;;  %s8516_s13 = inlined_call_operand.hbm [shape: f32[256,256], index: 13, kind: output, shape index: {0}]   ;;  %s8517_s14 = inlined_call_operand.vmem [shape: f32[256,128], index: 14, kind: output, shape index: {1}]   ;;  %s8518_s15 = inlined_call_operand.vmem [shape: f32[256,128], index: 15, kind: output, shape index: {2}]  }
   0x1   :  { %8559 = sst [smem:[#allocation46_spill]] %s8509_s6 }
   0x2   :  { %8560 = sst [smem:[#allocation47_spill]] %s8514_s11 }
   0x3   :  { %8561 = sst [smem:[#allocation48_spill]] %s8518_s15 }
   0x4   :  { %21 = vsyncpa [#allocation3], 0 }
   0x5   :  { %23 = vsyncpa [#allocation3 + $0x1], 0 }
   0x6   :  { %24 = vsyncpa [#allocation6], 0 }
   0x7   :  { %25 = vsyncpa [#allocation4], 0 }
   0x8   :  { %27 = vsyncpa [#allocation4 + $0x1], 0  ;;  %s5963_s18 = smov 0   ;;  %s5965_s19 = smov 0  }
   0x9   :  { %s5967_s20 = smov 0   ;;  %s5969_s21 = smov 0  }
   0xa LB: > { %8562 = sst [smem:[#allocation12_spill]] %s5856_s18  ;;  %s5984_s22 = sadd.s32 4294967295, %s5868_s21   ;;  %s5868_s21 = sphi %s5969_s21, %s8683_s21   ;;  %s5864_s20 = sphi %s5967_s20, %s8685_s20   ;;  %s5860_s19 = sphi %s5965_s19, %s8687_s19   ;;  %s5856_s18 = sphi %s5963_s18, %s8686_s18  }
   0xb   : > { %8563 = sst [smem:[#allocation13_spill]] %s5864_s20  ;;  %s4725_s23 = sadd.s32 4294967294, %s5868_s21  }
   0xc   : > { %8564 = sst [smem:[#allocation14_spill]] %s5868_s21  ;;  %p105_p0 = scmp.ne.s32.totalorder %s5860_s19, %s5856_s18 }
   0xd   : > { %p8521_p1 = scmp.eq.s32.totalorder %s5984_s22, 0  ;;  %p350_p3 = scmp.eq.s32.totalorder %s4725_s23, 1 }
   0xe   : > { %p4726_p5 = scmp.ge.s32.totalorder %s5868_s21, 1  ;;  %p409_p7 = scmp.lt.s32.totalorder %s5868_s21, 3 }
   0xf   : > { %p5993_p4 = por %p8521_p1, %p105_p0  ;;  %p5998_p6 = por %p350_p3, %p105_p0 }
  0x10   : > { %p6003_p8 = pnand %p4726_p5, %p409_p7  ;;  %s5870_s27 = smov [#allocation5]  }
  0x11   : > { %s8565_s24 = scalar_select %p5993_p4, 1, 0 }
  0x12   : > { %s8566_s25 = scalar_select %p5998_p6, 1, 0 }
  0x13   : > { %s8568_s26 = scalar_select %p6003_p8, 1, 0 }
  0x14   : > { %8567 = sst [smem:[#allocation15_spill]] %s8566_s25  ;;  %s427_s28 = sshll.u32 %s5870_s27, 4  ;;  %s428_s28 = int_to_ptr.vmem [resolvable:$true] %s427_s28 }
  0x15   : > { %p5054_p9 = pneg %p6003_p8  ;;  %s5871_s30 = smov [#allocation7]  }
  0x16   : > { %s452_s16 = sshll.u32 %s5871_s30, 4  ;;  %s5731_s17 = scalar_lea.vmem %s428_s28, 1024  ;;  %s453_s16 = int_to_ptr.vmem [resolvable:$true] %s452_s16 }
  0x17   : > { %p6012_p11 = pnand %p5054_p9, %p8521_p1  ;;  %p5732_p13 = scmp.ne.s32.totalorder %s428_s28, %s5731_s17 }
  0x18   : > { %p5739_p5 = scmp.lt.s32.totalorder %s428_s28, %s428_s28  ;;  %p5740_p7 = scmp.lt.s32.totalorder %s5731_s17, %s5731_s17 }
  0x19   : > { %p5722_p12 = pneg %p6012_p11 }
  0x1a   : > { %p5741_p10 = por %p5740_p7, %p5739_p5 }
  0x1b   : > { %p5734_p0 = pnand %p5732_p13, %p5722_p12 }
  0x1d   : > { %p5735_p3 = pneg %p5734_p0 }
  0x1f   : > { %p5742_p9 = pnand %p5741_p10, %p5735_p3 }
  0x21   : > { %5745 = shalt.err (!%p5742_p9)
}
  0x22   : > { %s5872_s23 = smov 64   ;;  %s5873_s27 = smov 4  }
  0x23   : > { %s8570_s6 = sld [smem:[#allocation46_spill]]  ;;  %s5757_s18 = scalar_lea.vmem %s453_s16, 2048 }
  0x24   : > { %p5758_p1 = scmp.ne.s32.totalorder %s453_s16, %s5757_s18  ;;  %p5765_p2 = scmp.lt.s32.totalorder %s453_s16, %s453_s16 }
  0x25   : > { %p5766_p6 = scmp.lt.s32.totalorder %s5757_s18, %s5757_s18 }
  0x26   : > { %p5760_p13 = pnand %p5758_p1, %p5722_p12 }
  0x27   : > { %p5767_p5 = por %p5766_p6, %p5765_p2 }
  0x28   : > { %p5761_p0 = pneg %p5760_p13 }
  0x29   : > { %5057 = dma.hbm_to_vmem [thread:$0]  (!%p6012_p11), %s8570_s6, 1024, %s428_s28, [#allocation6], %s5872_s23, %s5872_s23, %s5873_s27  }
  0x2a   : > { %p5768_p10 = pnand %p5767_p5, %p5761_p0 }
  0x2c   : > { %5771 = shalt.err (!%p5768_p10)
}
  0x2d   : > { %s8522_s17 = smov 128   ;;  %s8523_s25 = smov 8  }
  0x2e   : > { %s8571_s11 = sld [smem:[#allocation47_spill]]  ;;  %s6038_s23 = sadd.s32 1, %s5868_s21  }
  0x2f   : > { %8572 = sst [smem:[#allocation16_spill]] %s6038_s23  ;;  %s89_s27 = ssub.s32 %s5868_s21, %s6038_s23 }
  0x30   : > { %p90_p1 = scmp.eq.s32.totalorder %s89_s27, 0  ;;  %s92_s30 = sadd.s32 1, %s5864_s20 }
  0x31   : > { %p99_p2 = scmp.ne.s32.totalorder %s5864_s20, %s5860_s19  ;;  %p100_p6 = scmp.eq.s32.totalorder %s5868_s21, 0 }
  0x32   : > { %s6047_s6 = scalar_select %p90_p1, %s5864_s20, %s92_s30  }
  0x33   : > { %p101_p12 = por %p100_p6, %p99_p2  ;;  %p8574_p3 = scmp.eq.s32.totalorder %s5984_s22, 1 }
  0x34   : > { %5060 = dma.hbm_to_vmem [thread:$0]  (!%p6012_p11), %s8571_s11, 2048, %s453_s16, [#allocation6], %s8522_s17, %s8522_s17, %s8523_s25  }
  0x35   : > { %8573 = sst [smem:[#allocation17_spill]] %s6047_s6  ;;  %p6051_p7 = por %p8574_p3, %p99_p2 }
  0x36   : > { %p5071_p9 = scmp.lt.s32.totalorder %s5868_s21, 2  ;;  %s488_s15 = sand.u32 1, %s5864_s20  }
  0x37   : > { %s8575_s29 = scalar_select %p6051_p7, 1, 0 }
  0x38   : > { %s4730_s18 = sshll.u32 %s488_s15, 7  ;;  %s4832_s16 = sshll.u32 %s5868_s21, 11 }
  0x39   : > { %s6061_s25 = scalar_lea.hbm %s8505_s2, %s4832_s16  ;;  %s492_s27 = scalar_lea.vmem [#allocation2], %s4730_s18 }
  0x3a   : > { %s499_s30 = sshll.u32 %s492_s27, 4  ;;  %p6065_p11 = pnand %p5071_p9, %p101_p12  ;;  %s6063_s30 = int_to_ptr.vmem [resolvable:$true] %s499_s30 }
  0x3b   : > { %s6069_s6 = scalar_lea.sflag [#allocation3], %s488_s15  ;;  %s5772_s20 = scalar_lea.hbm %s6061_s25, 2048 }
  0x3c   : > { %p5773_p13 = scmp.ne.s32.totalorder %s6061_s25, %s5772_s20  ;;  %p5774_p0 = pneg %p6065_p11 }
  0x3d   : > { %s5777_s18 = scalar_lea.hbm %s8505_s2, 4096  ;;  %p5778_p1 = scmp.lt.s32.totalorder %s6061_s25, %s8505_s2 }
  0x3e   : > { %p5775_p5 = pnand %p5774_p0, %p5773_p13  ;;  %p5779_p2 = scmp.lt.s32.totalorder %s5777_s18, %s5772_s20 }
  0x40   : > { %p5776_p10 = pneg %p5775_p5  ;;  %p5780_p6 = por %p5779_p2, %p5778_p1 }
  0x42   : > { %p5781_p12 = pnand %p5780_p6, %p5776_p10 }
  0x44   : > { %5784 = shalt.err (!%p5781_p12)
}
  0x45   : > { %s5785_s15 = scalar_lea.vmem %s6063_s30, 2048  ;;  %s5876_s23 = smov [#allocation2]  }
  0x46   : > { %p5786_p3 = scmp.ne.s32.totalorder %s6063_s30, %s5785_s15  ;;  %s5790_s21 = sshll.u32 %s5876_s23, 4  ;;  %s5791_s21 = int_to_ptr.vmem [resolvable:$false] %s5790_s21 }
  0x47   : > { %s5792_s17 = scalar_lea.vmem %s5791_s21, 4096  ;;  %p5793_p5 = scmp.lt.s32.totalorder %s6063_s30, %s5791_s21 }
  0x48   : > { %p5788_p9 = pnand %p5786_p3, %p5774_p0  ;;  %p5794_p7 = scmp.lt.s32.totalorder %s5792_s17, %s5785_s15 }
  0x4a   : > { %p5789_p13 = pneg %p5788_p9  ;;  %p5795_p4 = por %p5794_p7, %p5793_p5 }
  0x4c   : > { %p5796_p8 = pnand %p5795_p4, %p5789_p13 }
  0x4e   : > { %5799 = shalt.err (!%p5796_p8)
}
  0x4f   : > { %s8577_s20 = smov 8   ;;  %s8578_s16 = smov 128  }
  0x50   : > { %5064 = dma.hbm_to_vmem [thread:$0]  (!%p6065_p11), %s6061_s25, 2048, %s6063_s30, %s6069_s6, %s8578_s16, %s8578_s16, %s8577_s20  }
  0x51   : > { %p8579_p0 = scmp.ne.s32.totalorder %s8568_s26, 0 }
  0x53   : > { %520 = sbr.rel (%p8579_p0) target bundleno = 2485 (0x9b5), region = 72 }
  0x58   : > { %s6096_s23 = sand.u32 1, %s5860_s19   ;;  %p8580_p4 = scmp.ne.s32.totalorder %s8565_s24, 0 }
  0x59   : > { %s4734_s21 = sshll.u32 %s6096_s23, 7  ;;  %s523_s18 = scalar_lea.sflag [#allocation3], %s6096_s23 }
  0x5a   : > { %s6100_s28 = scalar_lea.vmem [#allocation2], %s4734_s21 }
  0x5b   : > { %5843 = dma.done.wait (%p8580_p4), %s523_s18, 2048  }
  0x5c   : > { %5845 = vsyncadd (%p8580_p4), %s523_s18, 4294965248  ;;  %p8581_p8 = scmp.eq.s32.totalorder %s5984_s22, 0 }
  0x5e   : > { %5847 = dma.done.wait (%p8581_p8), [#allocation6], 3072   ;;  %p8582_p7 = pmov %p8581_p8 }
  0x5f   : > { %s4738_s6 = sshll.u32 %s5984_s22, 4  ;;  %v5118_v0 = vld [vmem:[%s8507_s4 + $0x78] sm:$0xff]   ;;  %v5120_v2 = vld [vmem:[%s8507_s4 + $0x70] sm:$0xff]   ;;  %v5122_v4 = vld [vmem:[%s8507_s4 + $0x68] sm:$0xff]   ;;  %s5877_s26 = smov 32  }
  0x60   : > { %5849 = vsyncadd (%p8582_p7), [#allocation6], 4294964224  ;;  %v5119_v1 = vld [vmem:[%s8507_s4 + $0x38] sm:$0xff]   ;;  %4836 = vmatprep.subr.bf16.mxu0 %v5118_v0  ;;  %p608_p11 = scmp.lt.s32.totalorder %s4738_s6, 31  ;;  %v5121_v3 = vld [vmem:[%s8507_s4 + $0x30] sm:$0xff]   ;;  %s5878_s27 = smov 96  }
  0x61   : > { %4837 = vmatpush3.bf16.msra.mxu0 %v5119_v1  ;;  %v5123_v5 = vld [vmem:[%s8507_s4 + $0x28] sm:$0xff]   ;;  %v5124_v6 = vld [vmem:[%s8507_s4 + $0x60] sm:$0xff]   ;;  %v5126_v8 = vld [vmem:[%s8507_s4 + $0x58] sm:$0xff]   ;;  %s4737_s15 = sshll.u32 %s6096_s23, 8  ;;  %p8676_p1 = scmp.ne.s32.totalorder %s8575_s29, 0 }
  0x62   : > { %4838 = vmatprep.subr.bf16.mxu0 %v5120_v2  ;;  %s8689_s6 = smov (!%p608_p11, %s4738_s6), 31  ;;  %v5125_v7 = vld [vmem:[%s8507_s4 + $0x20] sm:$0xff]   ;;  %v5127_v9 = vld [vmem:[%s8507_s4 + $0x18] sm:$0xff]   ;;  %v5128_v10 = vld [vmem:[%s8507_s4 + $0x50] sm:$0xff]   ;;  %s8253_s17 = scalar_lea.vmem [#allocation8], %s4737_s15 }
  0x63   : > { %s4833_s25 = sshll.u32 %s8689_s6, 4  ;;  %v5129_v14 = vld [vmem:[%s8507_s4 + $0x10] sm:$0xff]   ;;  %v5130_v15 = vld [vmem:[%s8507_s4 + $0x48] sm:$0xff]   ;;  %v5132_v17 = vld [vmem:[%s8507_s4 + $0x40] sm:$0xff]   ;;  %s6511_s20 = sshll.u32 %s8689_s6, 3 }
  0x64   : > { %s6144_s16 = scalar_lea.vmem %s8503_s0, %s4833_s25  ;;  %v5131_v16 = vld [vmem:[%s8507_s4 + $0x8] sm:$0xff]   ;;  %v5133_v18 = vld [vmem:[%s8507_s4] sm:$0xff]   ;;  %v5134_v0 = vld [vmem:[#allocation5 + $0x38] sm:$0xff]   ;;  %s6517_s11 = scalar_lea.vmem %s8504_s1, %s6511_s20 }
  0x65   : > { %4839 = vmatpush3.bf16.msra.mxu0 %v5121_v3  ;;  %v642_v11 = vld [vmem:[%s6144_s16 + $0x8] sm:$0xff]  ;;  %v644_v12 = vld [vmem:[%s6144_s16 + $0x18] sm:$0xff]  ;;  %v641_v19 = vld [vmem:[%s6144_s16] sm:$0xff]  ;;  %4942 = vmatprep.subr.bf16.mxu1 %v5134_v0  ;;  %s7426_s6 = scalar_lea.vmem %s8506_s3, %s6511_s20 }
  0x66   : > { %4840 = vmatprep.subr.bf16.mxu0 %v5122_v4  ;;  %v674_v13 = vpack.c.bf16 %v644_v12, %v642_v11  ;;  %v643_v20 = vld [vmem:[%s6144_s16 + $0x10] sm:$0xff]  ;;  %v646_v21 = vld [vmem:[%s6144_s16 + $0x28] sm:$0xff]  ;;  %v648_v22 = vld [vmem:[%s6144_s16 + $0x38] sm:$0xff]  ;;  %4943 = vmatpush3.bf16.msra.mxu1 %v5134_v0 }
  0x67   : > { %v673_v23 = vpack.c.bf16 %v643_v20, %v641_v19  ;;  %v676_v24 = vpack.c.bf16 %v648_v22, %v646_v21  ;;  %v645_v25 = vld [vmem:[%s6144_s16 + $0x20] sm:$0xff]  ;;  %v647_v26 = vld [vmem:[%s6144_s16 + $0x30] sm:$0xff]  ;;  %v650_v27 = vld [vmem:[%s6144_s16 + $0x48] sm:$0xff] }
  0x68   : > { %856 = vmatprep.mubr.bf16.mxu0 %v674_v13  ;;  %v652_v28 = vld [vmem:[%s6144_s16 + $0x58] sm:$0xff]  ;;  %v675_v29 = vpack.c.bf16 %v647_v26, %v645_v25  ;;  %v649_v31 = vld [vmem:[%s6144_s16 + $0x40] sm:$0xff]  ;;  %v651_v32 = vld [vmem:[%s6144_s16 + $0x50] sm:$0xff] }
  0x69   : > { %4841 = vmatpush3.bf16.msra.mxu0 %v5123_v5  ;;  %v678_v30 = vpack.c.bf16 %v652_v28, %v650_v27  ;;  %v654_v33 = vld [vmem:[%s6144_s16 + $0x68] sm:$0xff]  ;;  %v656_v34 = vld [vmem:[%s6144_s16 + $0x78] sm:$0xff]  ;;  %v677_v35 = vpack.c.bf16 %v651_v32, %v649_v31  ;;  %v653_v37 = vld [vmem:[%s6144_s16 + $0x60] sm:$0xff] }
  0x6a   : > { %4842 = vmatprep.subr.bf16.mxu0 %v5124_v6  ;;  %v680_v36 = vpack.c.bf16 %v656_v34, %v654_v33  ;;  %v655_v38 = vld [vmem:[%s6144_s16 + $0x70] sm:$0xff]  ;;  %v658_v39 = vld [vmem:[%s6144_s16 + $0x88] sm:$0xff]  ;;  %v660_v40 = vld [vmem:[%s6144_s16 + $0x98] sm:$0xff] }
  0x6b   : > { %v679_v41 = vpack.c.bf16 %v655_v38, %v653_v37  ;;  %v682_v42 = vpack.c.bf16 %v660_v40, %v658_v39  ;;  %v657_v43 = vld [vmem:[%s6144_s16 + $0x80] sm:$0xff]  ;;  %v659_v44 = vld [vmem:[%s6144_s16 + $0x90] sm:$0xff]  ;;  %v662_v45 = vld [vmem:[%s6144_s16 + $0xa8] sm:$0xff] }
  0x6c   : > { %v664_v46 = vld [vmem:[%s6144_s16 + $0xb8] sm:$0xff]  ;;  %v681_v47 = vpack.c.bf16 %v659_v44, %v657_v43  ;;  %v661_v49 = vld [vmem:[%s6144_s16 + $0xa0] sm:$0xff]  ;;  %v663_v50 = vld [vmem:[%s6144_s16 + $0xb0] sm:$0xff] }
  0x6d   : > { %4843 = vmatpush3.bf16.msra.mxu0 %v5125_v7  ;;  %v684_v48 = vpack.c.bf16 %v664_v46, %v662_v45  ;;  %v666_v51 = vld [vmem:[%s6144_s16 + $0xc8] sm:$0xff]  ;;  %v668_v52 = vld [vmem:[%s6144_s16 + $0xd8] sm:$0xff]  ;;  %v683_v53 = vpack.c.bf16 %v663_v50, %v661_v49  ;;  %v665_v55 = vld [vmem:[%s6144_s16 + $0xc0] sm:$0xff] }
  0x6e   : > { %4844 = vmatprep.subr.bf16.mxu0 %v5126_v8  ;;  %v686_v54 = vpack.c.bf16 %v668_v52, %v666_v51  ;;  %v667_v56 = vld [vmem:[%s6144_s16 + $0xd0] sm:$0xff]  ;;  %v670_v57 = vld [vmem:[%s6144_s16 + $0xe8] sm:$0xff]  ;;  %v672_v58 = vld [vmem:[%s6144_s16 + $0xf8] sm:$0xff] }
  0x6f   : > { %v685_v59 = vpack.c.bf16 %v667_v56, %v665_v55  ;;  %v688_v60 = vpack.c.bf16 %v672_v58, %v670_v57  ;;  %v669_v61 = vld [vmem:[%s6144_s16 + $0xe0] sm:$0xff]  ;;  %v671_v62 = vld [vmem:[%s6144_s16 + $0xf0] sm:$0xff]  ;;  %v5136_v2 = vld [vmem:[#allocation5 + $0x28] sm:$0xff]  }
  0x70   : > { %v687_v63 = vpack.c.bf16 %v671_v62, %v669_v61  ;;  %v5135_v1 = vld [vmem:[#allocation5 + $0x30] sm:$0xff]   ;;  %v5137_v3 = vld [vmem:[#allocation5 + $0x20] sm:$0xff]   ;;  %v5138_v4 = vld [vmem:[#allocation5 + $0x18] sm:$0xff]  }
  0x71   : > { %4845 = vmatpush3.bf16.msra.mxu0 %v5127_v9  ;;  %4944 = vmatprep.subr.bf16.mxu1 %v5135_v1  ;;  %v5139_v5 = vld [vmem:[#allocation5 + $0x10] sm:$0xff]   ;;  %v5140_v6 = vld [vmem:[#allocation5 + $0x8] sm:$0xff]   ;;  %v5141_v7 = vld [vmem:[#allocation5] sm:$0xff]  }
  0x72   : > { %4846 = vmatprep.subr.bf16.mxu0 %v5128_v10  ;;  %4945 = vmatpush3.bf16.msra.mxu1 %v5135_v1  ;;  %v6202_v9 = vld [vmem:[%s8508_s5] ss:$0 sm:$0xff] }
  0x73   : > { %4946 = vmatprep.subr.bf16.mxu1 %v5136_v2 }
  0x75   : > { %4847 = vmatpush3.bf16.msra.mxu0 %v5129_v14 }
  0x76   : > { %4848 = vmatprep.subr.bf16.mxu0 %v5130_v15  ;;  %4947 = vmatpush3.bf16.msra.mxu1 %v5136_v2 }
  0x77   : > { %4948 = vmatprep.subr.bf16.mxu1 %v5137_v3 }
  0x79   : > { %4849 = vmatpush3.bf16.msra.mxu0 %v5131_v16 }
  0x7a   : > { %4850 = vmatprep.subr.bf16.mxu0 %v5132_v17  ;;  %4949 = vmatpush3.bf16.msra.mxu1 %v5137_v3 }
  0x7b   : > { %4950 = vmatprep.subr.bf16.mxu1 %v5138_v4 }
  0x7d   : > { %4851 = vmatpush3.bf16.msra.mxu0 %v5133_v18 }
  0x7e   : > { %4951 = vmatpush3.bf16.msra.mxu1 %v5138_v4 }
  0x7f   : > { %4952 = vmatprep.subr.bf16.mxu1 %v5139_v5 }
  0x80   : > { %857 = vmatmul.mubr.bf16.vlgmr.msra.gmra.mxu0 %v673_v23 }
  0x81   : > { %864 = vmatprep.mubr.bf16.mxu0 %v676_v24 }
  0x82   : > { %4953 = vmatpush3.bf16.msra.mxu1 %v5139_v5 }
  0x83   : > { %4954 = vmatprep.subr.bf16.mxu1 %v5140_v6 }
  0x86   : > { %4955 = vmatpush3.bf16.msra.mxu1 %v5140_v6 }
  0x87   : > { %4956 = vmatprep.subr.bf16.mxu1 %v5141_v7 }
  0x88   : > { %865 = vmatmul.mubr.bf16.gmra.mxu0 %v675_v29 }
  0x89   : > { %872 = vmatprep.mubr.bf16.mxu0 %v678_v30 }
  0x8a   : > { %4957 = vmatpush3.bf16.msra.mxu1 %v5141_v7 }
  0x90   : > { %873 = vmatmul.mubr.bf16.gmra.mxu0 %v677_v35 }
  0x91   : > { %880 = vmatprep.mubr.bf16.mxu0 %v680_v36 }
  0x98   : > { %881 = vmatmul.mubr.bf16.gmra.mxu0 %v679_v41 }
  0x99   : > { %888 = vmatprep.mubr.bf16.mxu0 %v682_v42 }
  0xa0   : > { %889 = vmatmul.mubr.bf16.gmra.mxu0 %v681_v47 }
  0xa1   : > { %896 = vmatprep.mubr.bf16.mxu0 %v684_v48 }
  0xa8   : > { %897 = vmatmul.mubr.bf16.gmra.mxu0 %v683_v53 }
  0xa9   : > { %904 = vmatprep.mubr.bf16.mxu0 %v686_v54 }
  0xb0   : > { %905 = vmatmul.mubr.bf16.gmra.mxu0 %v685_v59 }
  0xb1   : > { %912 = vmatprep.mubr.bf16.mxu0 %v688_v60 }
  0xb8   : > { %913 = vmatmul.mubr.bf16.gmra.mxu0 %v687_v63 }
 0x140   : > { %v4852_v8 = vpop.f32.mrf.mxu0 }
 0x142   : > { %v4853_v10 = vpop.f32.mrf.mxu0 }
 0x143   : > { %v4854_v11 = vadd.f32 %v4853_v10, %v4852_v8 }
 0x144   : > { %v4855_v12 = vpop.f32.mrf.mxu0 }
 0x145   : > { %v6205_v13 = vadd.f32 %v4854_v11, %v6202_v9 }
 0x146   : > { %v4856_v14 = vpop.f32.mrf.mxu0 }
 0x147   : > { %v969_v15 = vand.u32 2147483647, %v6205_v13  ;;  %v4857_v16 = vadd.f32 %v4856_v14, %v4855_v12  ;;  %vm937_vm0 = vcmp.ne.f32.partialorder %v6205_v13, %v6205_v13 }
 0x148   : > { %v4858_v17 = vpop.f32.mrf.mxu0 }
 0x149   : > { %v985_v18 = vsub.f32 0.0, %v969_v15  ;;  %v6209_v19 = vadd.f32 %v4857_v16, %v6202_v9 }
 0x14a   : > { %v4859_v20 = vpop.f32.mrf.mxu0 }
 0x14b   : > { %v1001_v21 = vmul.f32 1.442695, %v985_v18  ;;  %v970_v22 = vand.u32 2147483647, %v6209_v19  ;;  %v4860_v23 = vadd.f32 %v4859_v20, %v4858_v17  ;;  %vm938_vm1 = vcmp.ne.f32.partialorder %v6209_v19, %v6209_v19 }
 0x14c   : > { %v4861_v24 = vpop.f32.mrf.mxu0 }
 0x14d   : > { %5176 = vpow2.f32 %v1001_v21  ;;  %v986_v25 = vsub.f32 0.0, %v970_v22  ;;  %v6213_v26 = vadd.f32 %v4860_v23, %v6202_v9  ;;  %v921_v22 = vmax.f32 %v6205_v13, 0.0 }
 0x14e   : > { %v4862_v27 = vpop.f32.mrf.mxu0 }
 0x14f   : > { %v1003_v28 = vmul.f32 1.442695, %v986_v25  ;;  %v971_v29 = vand.u32 2147483647, %v6213_v26  ;;  %v4863_v30 = vadd.f32 %v4862_v27, %v4861_v24  ;;  %vm939_vm6 = vcmp.ne.f32.partialorder %v6213_v26, %v6213_v26 }
 0x150   : > { %v4864_v31 = vpop.f32.mrf.mxu0 }
 0x151   : > { %5178 = vpow2.f32 %v1003_v28  ;;  %v987_v32 = vsub.f32 0.0, %v971_v29  ;;  %v6217_v33 = vadd.f32 %v4863_v30, %v6202_v9  ;;  %v922_v28 = vmax.f32 %v6209_v19, 0.0 }
 0x152   : > { %v4865_v34 = vpop.f32.mrf.mxu0  ;;  %v923_v30 = vmax.f32 %v6213_v26, 0.0 }
 0x153   : > { %v1005_v35 = vmul.f32 1.442695, %v987_v32  ;;  %v972_v36 = vand.u32 2147483647, %v6217_v33  ;;  %v4866_v37 = vadd.f32 %v4865_v34, %v4864_v31  ;;  %vm940_vm7 = vcmp.ne.f32.partialorder %v6217_v33, %v6217_v33 }
 0x154   : > { %v4867_v38 = vpop.f32.mrf.mxu0 }
 0x155   : > { %5180 = vpow2.f32 %v1005_v35  ;;  %v988_v39 = vsub.f32 0.0, %v972_v36  ;;  %v6221_v40 = vadd.f32 %v4866_v37, %v6202_v9  ;;  %v924_v36 = vmax.f32 %v6217_v33, 0.0 }
 0x156   : > { %v4868_v41 = vpop.f32.mrf.mxu0 }
 0x157   : > { %v1007_v42 = vmul.f32 1.442695, %v988_v39  ;;  %v973_v43 = vand.u32 2147483647, %v6221_v40  ;;  %v4869_v44 = vadd.f32 %v4868_v41, %v4867_v38  ;;  %vm941_vm10 = vcmp.ne.f32.partialorder %v6221_v40, %v6221_v40 }
 0x158   : > { %v4870_v45 = vpop.f32.mrf.mxu0 }
 0x159   : > { %5182 = vpow2.f32 %v1007_v42  ;;  %v989_v46 = vsub.f32 0.0, %v973_v43  ;;  %v6225_v47 = vadd.f32 %v4869_v44, %v6202_v9 }
 0x15a   : > { %v6227_v48 = vpop.eup %5176  ;;  %v4871_v49 = vpop.f32.mrf.mxu0 }
 0x15b   : > { %v1009_v50 = vmul.f32 1.442695, %v989_v46  ;;  %v974_v51 = vand.u32 2147483647, %v6225_v47  ;;  %v4872_v52 = vadd.f32 %v4871_v49, %v4870_v45  ;;  %v1033_v54 = vadd.f32 1.0, %v6227_v48 }
 0x15c   : > { %v4873_v53 = vpop.f32.mrf.mxu0  ;;  %v1036_v7 = vmul.f32 -0.5, %v6227_v48  ;;  %v1039_v32 = vand.u32 2147483647, %v6227_v48  ;;  %vm942_vm11 = vcmp.ne.f32.partialorder %v6225_v47, %v6225_v47 }
 0x15d   : > { %5184 = vpow2.f32 %v1009_v50  ;;  %v990_v55 = vsub.f32 0.0, %v974_v51  ;;  %v6232_v56 = vadd.f32 %v4872_v52, %v6202_v9 }
 0x15e   : > { %v6234_v57 = vpop.eup %5178  ;;  %v4874_v58 = vpop.f32.mrf.mxu0  ;;  %5186 = vlog2.f32 %v1033_v54  ;;  %v1037_v20 = vadd.f32 1.0, %v1036_v7  ;;  %vm6279_vm2 = vcmp.lt.f32.partialorder %v1039_v32, 0.0004427343 }
 0x15f   : > { %v1011_v59 = vmul.f32 1.442695, %v990_v55  ;;  %v975_v60 = vand.u32 2147483647, %v6232_v56  ;;  %v4875_v61 = vadd.f32 %v4874_v58, %v4873_v53  ;;  %v1042_v63 = vadd.f32 1.0, %v6234_v57 }
 0x160   : > { %v4876_v62 = vpop.f32.mrf.mxu0  ;;  %v1045_v23 = vmul.f32 -0.5, %v6234_v57  ;;  %v1038_v39 = vmul.f32 %v6227_v48, %v1037_v20  ;;  %v1048_v44 = vand.u32 2147483647, %v6234_v57  ;;  %vm943_vm14 = vcmp.ne.f32.partialorder %v6232_v56, %v6232_v56 }
 0x161   : > { %5188 = vpow2.f32 %v1011_v59  ;;  %v991_v0 = vsub.f32 0.0, %v975_v60  ;;  %v6239_v1 = vadd.f32 %v4875_v61, %v6202_v9 }
 0x162   : > { %v6241_v2 = vpop.eup %5180  ;;  %v4877_v3 = vpop.f32.mrf.mxu0  ;;  %5190 = vlog2.f32 %v1042_v63  ;;  %v1046_v43 = vadd.f32 1.0, %v1045_v23  ;;  %vm6288_vm3 = vcmp.lt.f32.partialorder %v1048_v44, 0.0004427343 }
 0x163   : > { %v1013_v4 = vmul.f32 1.442695, %v991_v0  ;;  %v976_v5 = vand.u32 2147483647, %v6239_v1  ;;  %v4878_v6 = vadd.f32 %v4877_v3, %v4876_v62  ;;  %v1051_v10 = vadd.f32 1.0, %v6241_v2 }
 0x164   : > { %v4879_v8 = vpop.f32.mrf.mxu0  ;;  %v1054_v34 = vmul.f32 -0.5, %v6241_v2  ;;  %v1057_v55 = vand.u32 2147483647, %v6241_v2  ;;  %v1047_v3 = vmul.f32 %v6234_v57, %v1046_v43  ;;  %vm944_vm15 = vcmp.ne.f32.partialorder %v6239_v1, %v6239_v1 }
 0x165   : > { %5192 = vpow2.f32 %v1013_v4  ;;  %v992_v11 = vsub.f32 0.0, %v976_v5  ;;  %v6247_v12 = vadd.f32 %v4878_v6, %v6202_v9 }
 0x166   : > { %v6249_v14 = vpop.eup %5182  ;;  %v4880_v15 = vpop.f32.mrf.mxu0  ;;  %5194 = vlog2.f32 %v1051_v10  ;;  %v1055_v54 = vadd.f32 1.0, %v1054_v34  ;;  %vm6301_vm4 = vcmp.lt.f32.partialorder %v1057_v55, 0.0004427343 }
 0x167   : > { %v1015_v16 = vmul.f32 1.442695, %v992_v11  ;;  %v977_v17 = vand.u32 2147483647, %v6247_v12  ;;  %v4881_v18 = vadd.f32 %v4880_v15, %v4879_v8  ;;  %v1060_v24 = vadd.f32 1.0, %v6249_v14 }
 0x168   : > { %v4882_v21 = vpop.f32.mrf.mxu0  ;;  %v1063_v48 = vmul.f32 -0.5, %v6249_v14  ;;  %v1066_v5 = vand.u32 2147483647, %v6249_v14  ;;  %v1056_v23 = vmul.f32 %v6241_v2, %v1055_v54 }
 0x169   : > { %5196 = vpow2.f32 %v1015_v16  ;;  %v993_v25 = vsub.f32 0.0, %v977_v17  ;;  %v6256_v27 = vadd.f32 %v4881_v18, %v6202_v9 }
 0x16a   : > { %v6259_v29 = vpop.eup %5184  ;;  %v4883_v31 = vpop.f32.mrf.mxu0  ;;  %5198 = vlog2.f32 %v1060_v24  ;;  %v1064_v7 = vadd.f32 1.0, %v1063_v48  ;;  %vm6312_vm5 = vcmp.lt.f32.partialorder %v1066_v5, 0.0004427343 }
 0x16b   : > { %v5187_v35 = vpop.eup %5186  ;;  %v978_v37 = vand.u32 2147483647, %v6256_v27  ;;  %v4884_v38 = vadd.f32 %v4883_v31, %v4882_v21  ;;  %v1069_v45 = vadd.f32 1.0, %v6259_v29  ;;  %v1017_v46 = vmul.f32 1.442695, %v993_v25 }
 0x16c   : > { %v4885_v41 = vpop.f32.mrf.mxu0  ;;  %v1035_v42 = vmul.f32 0.6931472, %v5187_v35  ;;  %v1072_v32 = vmul.f32 -0.5, %v6259_v29  ;;  %v1065_v35 = vmul.f32 %v6249_v14, %v1064_v7  ;;  %v1075_v54 = vand.u32 2147483647, %v6259_v29 }
 0x16d   : > { %v994_v49 = vsub.f32 0.0, %v978_v37  ;;  %v6270_v50 = vadd.f32 %v4884_v38, %v6202_v9  ;;  %5200 = vlog2.f32 %v1069_v45 }
 0x16e   : > { %v6277_v51 = vpop.eup %5188  ;;  %v4886_v52 = vpop.f32.mrf.mxu0  ;;  %v1041_v62 = vsel %vm6279_vm2, %v1038_v39, %v1035_v42  ;;  %5202 = vpow2.f32 %v1017_v46  ;;  %vm6351_vm8 = vcmp.lt.f32.partialorder %v1075_v54, 0.0004427343 }
 0x16f   : > { %v5191_v58 = vpop.eup %5190  ;;  %v1019_v59 = vmul.f32 1.442695, %v994_v49  ;;  %v979_v60 = vand.u32 2147483647, %v6270_v50  ;;  %v4887_v61 = vadd.f32 %v4886_v52, %v4885_v41  ;;  %v1078_v8 = vadd.f32 1.0, %v6277_v51 }
 0x170   : > { %v4888_v63 = vpop.f32.mrf.mxu0  ;;  %v1044_v0 = vmul.f32 0.6931472, %v5191_v58  ;;  %v1177_v16 = vadd.f32 %v1041_v62, %v921_v22  ;;  %v1073_v52 = vadd.f32 1.0, %v1072_v32  ;;  %v1081_v55 = vmul.f32 -0.5, %v6277_v51 }
 0x171   : > { %v6294_v6 = vadd.f32 %v4887_v61, %v6202_v9  ;;  %v995_v11 = vsub.f32 0.0, %v979_v60  ;;  %5204 = vpow2.f32 %v1019_v59 }
 0x172   : > { %v6297_v10 = vpop.eup %5192  ;;  %v4889_v15 = vpop.f32.mrf.mxu0  ;;  %v1050_v57 = vsel %vm6288_vm3, %v1047_v3, %v1044_v0  ;;  %5206 = vlog2.f32 %v1078_v8  ;;  %v1074_v8 = vmul.f32 %v6259_v29, %v1073_v52  ;;  %vm946_vm3 = vcmp.ne.f32.partialorder %v6256_v27, %v6256_v27 }
 0x173   : > { %v5195_v18 = vpop.eup %5194  ;;  %v980_v20 = vand.u32 2147483647, %v6294_v6  ;;  %v4890_v21 = vadd.f32 %v4889_v15, %v4888_v63  ;;  %v1178_v25 = vadd.f32 %v1050_v57, %v922_v28  ;;  %v1021_v39 = vmul.f32 1.442695, %v995_v11 }
 0x174   : > { %v4891_v24 = vpop.f32.mrf.mxu0  ;;  %v1053_v31 = vmul.f32 0.6931472, %v5195_v18  ;;  %v1193_v28 = vsel %vm937_vm0, %v6205_v13, %v1177_v16  ;;  %v1087_v14 = vadd.f32 1.0, %v6297_v10  ;;  %v1082_v18 = vadd.f32 1.0, %v1081_v55 }
 0x175   : > { %v996_v34 = vsub.f32 0.0, %v980_v20  ;;  %v6309_v22 = vadd.f32 %v4890_v21, %v6202_v9  ;;  %v1194_v41 = vsel %vm938_vm1, %v6209_v19, %v1178_v25  ;;  %v925_v25 = vmax.f32 %v6221_v40, 0.0 }
 0x176   : > { %v6316_v38 = vpop.eup %5196  ;;  %v4892_v2 = vpop.f32.mrf.mxu0  ;;  %v1059_v46 = vsel %vm6301_vm4, %v1056_v23, %v1053_v31  ;;  %v1209_v49 = vpack.c.bf16 %v1194_v41, %v1193_v28  ;;  %5208 = vlog2.f32 %v1087_v14  ;;  %v1090_v32 = vmul.f32 -0.5, %v6297_v10 }
 0x177   : > { %v5199_v42 = vpop.eup %5198  ;;  %v1023_v43 = vmul.f32 1.442695, %v996_v34  ;;  %v981_v44 = vand.u32 2147483647, %v6309_v22  ;;  %v4893_v45 = vadd.f32 %v4892_v2, %v4891_v24  ;;  %5210 = vpow2.f32 %v1021_v39 }
 0x178   : > { %v4894_v13 = vpop.f32.mrf.mxu0  ;;  %v1062_v48 = vmul.f32 0.6931472, %v5199_v42  ;;  %4958 = vmatprep.mubr.bf16.mxu1 %v1209_v49  ;;  %v1179_v60 = vadd.f32 %v1059_v46, %v923_v30  ;;  %v1096_v61 = vadd.f32 1.0, %v6316_v38  ;;  %v1083_v28 = vmul.f32 %v6277_v51, %v1082_v18 }
 0x179   : > { %v997_v53 = vsub.f32 0.0, %v981_v44  ;;  %v6333_v19 = vadd.f32 %v4893_v45, %v6202_v9  ;;  %5212 = vpow2.f32 %v1023_v43  ;;  %v1091_v44 = vadd.f32 1.0, %v1090_v32 }
 0x17a   : > { %v4895_v58 = vpop.f32.mrf.mxu0  ;;  %v1068_v59 = vsel %vm6312_vm5, %v1065_v35, %v1062_v48  ;;  %v5201_v62 = vpop.eup %5200  ;;  %v1195_v23 = vsel %vm939_vm6, %v6213_v26, %v1179_v60  ;;  %v926_v26 = vmax.f32 %v6225_v47, 0.0  ;;  %v1099_v45 = vmul.f32 -0.5, %v6316_v38 }
 0x17b   : > { %v1025_v63 = vmul.f32 1.442695, %v997_v53  ;;  %v982_v0 = vand.u32 2147483647, %v6333_v19  ;;  %v4896_v3 = vadd.f32 %v4895_v58, %v4894_v13  ;;  %v1180_v5 = vadd.f32 %v1068_v59, %v924_v36  ;;  %v6355_v57 = vpop.eup %5202 }
 0x17c   : > { %v4897_v4 = vpop.f32.mrf.mxu0  ;;  %v1071_v7 = vmul.f32 0.6931472, %v5201_v62  ;;  %v1084_v36 = vand.u32 2147483647, %v6277_v51  ;;  %v1105_v39 = vadd.f32 1.0, %v6355_v57  ;;  %v1092_v60 = vmul.f32 %v6297_v10, %v1091_v44 }
 0x17d   : > { %5214 = vpow2.f32 %v1025_v63  ;;  %v998_v30 = vsub.f32 0.0, %v982_v0  ;;  %v6349_v11 = vadd.f32 %v4896_v3, %v6202_v9  ;;  %v1196_v17 = vsel %vm940_vm7, %v6217_v33, %v1180_v5 }
 0x17e   : > { %v4898_v16 = vpop.f32.mrf.mxu0  ;;  %5216 = vlog2.f32 %v1096_v61  ;;  %v6364_v24 = vpop.eup %5204  ;;  %v1210_v31 = vpack.c.bf16 %v1196_v17, %v1195_v23  ;;  %v1077_v33 = vsel %vm6351_vm8, %v1074_v8, %v1071_v7  ;;  %vm1085_vm9 = vcmp.lt.f32.partialorder %v1084_v36, 0.0004427343 }
 0x17f   : > { %v1027_v20 = vmul.f32 1.442695, %v998_v30  ;;  %v983_v29 = vand.u32 2147483647, %v6349_v11  ;;  %v4899_v21 = vadd.f32 %v4898_v16, %v4897_v4  ;;  %v5207_v34 = vpop.eup %5206  ;;  %v1181_v42 = vadd.f32 %v1077_v33, %v925_v25 }
 0x180   : > { %4959 = vmatmul.mubr.bf16.vlgmr.msra.gmra.mxu1 %v1210_v31  ;;  %v1080_v2 = vmul.f32 0.6931472, %v5207_v34  ;;  %v1093_v48 = vand.u32 2147483647, %v6297_v10  ;;  %v1100_v61 = vadd.f32 1.0, %v1099_v45  ;;  %v1108_v62 = vmul.f32 -0.5, %v6355_v57 }
 0x181   : > { %5218 = vpow2.f32 %v1027_v20  ;;  %v999_v35 = vsub.f32 0.0, %v983_v29  ;;  %v6371_v37 = vadd.f32 %v4899_v21, %v6202_v9  ;;  %v1114_v9 = vadd.f32 1.0, %v6364_v24 }
 0x182   : > { %5220 = vlog2.f32 %v1105_v39  ;;  %v1086_v43 = vsel %vm1085_vm9, %v1083_v28, %v1080_v2  ;;  %v1197_v54 = vsel %vm941_vm10, %v6221_v40, %v1181_v42  ;;  %vm6392_vm12 = vcmp.lt.f32.partialorder %v1093_v48, 0.0004427343 }
 0x183   : > { %v1029_v41 = vmul.f32 1.442695, %v999_v35  ;;  %v984_v14 = vand.u32 2147483647, %v6371_v37  ;;  %v5209_v46 = vpop.eup %5208  ;;  %v1182_v13 = vadd.f32 %v1086_v43, %v926_v26  ;;  %v1102_v0 = vand.u32 2147483647, %v6316_v38 }
 0x184   : > { %v1089_v51 = vmul.f32 0.6931472, %v5209_v46  ;;  %v6384_v52 = vpop.eup %5210  ;;  %v927_v10 = vmax.f32 %v6232_v56, 0.0  ;;  %v1117_v5 = vmul.f32 -0.5, %v6364_v24  ;;  %v1101_v30 = vmul.f32 %v6316_v38, %v1100_v61 }
 0x185   : > { %5222 = vpow2.f32 %v1029_v41  ;;  %v1000_v49 = vsub.f32 0.0, %v984_v14  ;;  %v1198_v55 = vsel %vm942_vm11, %v6225_v47, %v1182_v13  ;;  %v1123_v47 = vadd.f32 1.0, %v6384_v52 }
 0x186   : > { %5224 = vlog2.f32 %v1114_v9  ;;  %v6388_v58 = vpop.eup %5212  ;;  %v1211_v59 = vpack.c.bf16 %v1198_v55, %v1197_v54  ;;  %v1095_v40 = vsel %vm6392_vm12, %v1092_v60, %v1089_v51  ;;  %v1109_v15 = vadd.f32 1.0, %v1108_v62 }
 0x187   : > { %v1031_v53 = vmul.f32 1.442695, %v1000_v49  ;;  %v1132_v7 = vadd.f32 1.0, %v6388_v58  ;;  %v928_v16 = vmax.f32 %v6239_v1, 0.0  ;;  %vm1103_vm13 = vcmp.lt.f32.partialorder %v1102_v0, 0.0004427343 }
 0x188   : > { %4962 = vmatprep.mubr.bf16.mxu1 %v1211_v59  ;;  %v1183_v17 = vadd.f32 %v1095_v40, %v927_v10  ;;  %v1111_v20 = vand.u32 2147483647, %v6355_v57  ;;  %v1118_v21 = vadd.f32 1.0, %v1117_v5  ;;  %v1110_v25 = vmul.f32 %v6355_v57, %v1109_v15  ;;  %v5148_v59 = vld [vmem:[%s8511_s8 + $0x8] sm:$0xff]  }
 0x189   : > { %5226 = vpow2.f32 %v1031_v53  ;;  %v1120_v31 = vand.u32 2147483647, %v6364_v24  ;;  %v1126_v39 = vmul.f32 -0.5, %v6384_v52  ;;  %v1135_v28 = vmul.f32 -0.5, %v6388_v58 }
 0x18a   : > { %v6397_v3 = vpop.eup %5214  ;;  %5228 = vlog2.f32 %v1123_v47  ;;  %v1199_v32 = vsel %vm943_vm14, %v6232_v56, %v1183_v17  ;;  %vm1112_vm0 = vcmp.lt.f32.partialorder %v1111_v20, 0.0004427343  ;;  %v929_v41 = vmax.f32 %v6247_v12, 0.0 }
 0x18b   : > { %v5217_v4 = vpop.eup %5216  ;;  %5230 = vlog2.f32 %v1132_v7  ;;  %v1141_v29 = vadd.f32 1.0, %v6397_v3  ;;  %vm945_vm1 = vcmp.ne.f32.partialorder %v6247_v12, %v6247_v12  ;;  %v1129_v42 = vand.u32 2147483647, %v6384_v52 }
 0x18c   : > { %v1098_v8 = vmul.f32 0.6931472, %v5217_v4  ;;  %v930_v44 = vmax.f32 %v6256_v27, 0.0  ;;  %vm1121_vm2 = vcmp.lt.f32.partialorder %v1120_v31, 0.0004427343  ;;  %v1127_v9 = vadd.f32 1.0, %v1126_v39 }
 0x18d   : > { %5232 = vlog2.f32 %v1141_v29  ;;  %v1136_v13 = vadd.f32 1.0, %v1135_v28  ;;  %v1144_v48 = vmul.f32 -0.5, %v6397_v3  ;;  %v931_v54 = vmax.f32 %v6270_v50, 0.0 }
 0x18e   : > { %v6407_v18 = vpop.eup %5218  ;;  %v1104_v36 = vsel %vm1103_vm13, %v1101_v30, %v1098_v8  ;;  %v932_v55 = vmax.f32 %v6294_v6, 0.0  ;;  %vm6440_vm4 = vcmp.lt.f32.partialorder %v1129_v42, 0.0004427343  ;;  %v1138_v60 = vand.u32 2147483647, %v6388_v58 }
 0x18f   : > { %v1184_v38 = vadd.f32 %v1104_v36, %v928_v16  ;;  %v5221_v23 = vpop.eup %5220  ;;  %v1150_v33 = vadd.f32 1.0, %v6407_v18  ;;  %v1153_v51 = vmul.f32 -0.5, %v6407_v18  ;;  %v1128_v0 = vmul.f32 %v6384_v52, %v1127_v9 }
 0x190   : > { %v1107_v35 = vmul.f32 0.6931472, %v5221_v23  ;;  %v1137_v10 = vmul.f32 %v6388_v58, %v1136_v13  ;;  %v1145_v5 = vadd.f32 1.0, %v1144_v48  ;;  %v1147_v8 = vand.u32 2147483647, %v6397_v3 }
 0x191   : > { %v1200_v34 = vsel %vm944_vm15, %v6239_v1, %v1184_v38  ;;  %5234 = vlog2.f32 %v1150_v33  ;;  %v1119_v1 = vmul.f32 %v6364_v24, %v1118_v21  ;;  %v1154_v30 = vadd.f32 1.0, %v1153_v51 }
 0x192   : > { %v6421_v26 = vpop.eup %5222  ;;  %v1212_v2 = vpack.c.bf16 %v1200_v34, %v1199_v32  ;;  %v1113_v14 = vsel %vm1112_vm0, %v1110_v25, %v1107_v35  ;;  %v933_v16 = vmax.f32 %v6309_v22, 0.0  ;;  %vm1139_vm5 = vcmp.lt.f32.partialorder %v1138_v60, 0.0004427343  ;;  %v5149_v60 = vld [vmem:[%s8511_s8] sm:$0xff]  }
 0x193   : > { %v5225_v57 = vpop.eup %5224  ;;  %v1159_v43 = vadd.f32 1.0, %v6421_v26  ;;  %v1185_v45 = vadd.f32 %v1113_v14, %v929_v41  ;;  %v1162_v15 = vmul.f32 -0.5, %v6421_v26  ;;  %vm947_vm6 = vcmp.ne.f32.partialorder %v6270_v50, %v6270_v50 }
 0x194   : > { %4963 = vmatmul.mubr.bf16.gmra.mxu1 %v1212_v2  ;;  %v1116_v56 = vmul.f32 0.6931472, %v5225_v57  ;;  %v1156_v36 = vand.u32 2147483647, %v6407_v18  ;;  %vm948_vm7 = vcmp.ne.f32.partialorder %v6294_v6, %v6294_v6  ;;  %v1146_v38 = vmul.f32 %v6397_v3, %v1145_v5  ;;  %v2305_v5 = vld [vmem:[%s6517_s11 + $0x30] sm:$0xff] }
 0x195   : > { %5236 = vlog2.f32 %v1159_v43  ;;  %v1201_v62 = vsel %vm945_vm1, %v6247_v12, %v1185_v45  ;;  %v934_v12 = vmax.f32 %v6333_v19, 0.0  ;;  %vm1148_vm8 = vcmp.lt.f32.partialorder %v1147_v8, 0.0004427343 }
 0x196   : > { %v6431_v46 = vpop.eup %5226  ;;  %v1122_v49 = vsel %vm1121_vm2, %v1119_v1, %v1116_v56  ;;  %v1155_v23 = vmul.f32 %v6407_v18, %v1154_v30  ;;  %v1163_v25 = vadd.f32 1.0, %v1162_v15  ;;  %vm1157_vm9 = vcmp.lt.f32.partialorder %v1156_v36, 0.0004427343 }
 0x197   : > { %v1186_v24 = vadd.f32 %v1122_v49, %v930_v44  ;;  %v1168_v53 = vadd.f32 1.0, %v6431_v46  ;;  %v5229_v61 = vpop.eup %5228  ;;  %v1171_v31 = vmul.f32 -0.5, %v6431_v46  ;;  %v1165_v28 = vand.u32 2147483647, %v6421_v26 }
 0x198   : > { %v5231_v40 = vpop.eup %5230  ;;  %v1125_v4 = vmul.f32 0.6931472, %v5229_v61  ;;  %vm949_vm10 = vcmp.ne.f32.partialorder %v6309_v22, %v6309_v22  ;;  %vm950_vm11 = vcmp.ne.f32.partialorder %v6333_v19, %v6333_v19  ;;  %v1174_v14 = vand.u32 2147483647, %v6431_v46  ;;  %v2301_v61 = vld [vmem:[%s6517_s11 + $0x10] sm:$0xff] }
 0x199   : > { %v1202_v63 = vsel %vm946_vm3, %v6256_v27, %v1186_v24  ;;  %5238 = vlog2.f32 %v1168_v53  ;;  %v1134_v7 = vmul.f32 0.6931472, %v5231_v40  ;;  %v1172_v41 = vadd.f32 1.0, %v1171_v31  ;;  %v5143_v53 = vld [vmem:[%s8511_s8 + $0x30] sm:$0xff]   ;;  %2335 = vrot.lane.b32.xlu1 %v2301_v61, %s5877_s26  ;;  %v2303_v40 = vld [vmem:[%s6517_s11 + $0x20] sm:$0xff]  ;;  %v2310_v31 = vld [vmem:[%s6517_s11 + $0x58] sm:$0xff] }
 0x19a   : > { %v1213_v47 = vpack.c.bf16 %v1202_v63, %v1201_v62  ;;  %v1131_v27 = vsel %vm6440_vm4, %v1128_v0, %v1125_v4  ;;  %v5233_v52 = vpop.eup %5232  ;;  %vm1166_vm12 = vcmp.lt.f32.partialorder %v1165_v28, 0.0004427343  ;;  %v935_v43 = vmax.f32 %v6349_v11, 0.0  ;;  %v2299_v62 = vld [vmem:[%s6517_s11] sm:$0xff]  ;;  %v2302_v63 = vld [vmem:[%s6517_s11 + $0x18] sm:$0xff]  ;;  %v2300_v0 = vld [vmem:[%s6517_s11 + $0x8] sm:$0xff] }
 0x19b   : > { %v1140_v58 = vsel %vm1139_vm5, %v1137_v10, %v1134_v7  ;;  %v1187_v17 = vadd.f32 %v1131_v27, %v931_v54  ;;  %v1143_v29 = vmul.f32 0.6931472, %v5233_v52  ;;  %v1173_v49 = vmul.f32 %v6431_v46, %v1172_v41  ;;  %v5142_v46 = vld [vmem:[%s8511_s8 + $0x38] sm:$0xff]   ;;  %2331 = vrot.lane.b32.xlu0 %v2299_v62, %s5877_s26  ;;  %v6532_v4 = vld [vmem:[%s8510_s7] ss:$0 sm:$0xff]  ;;  %v2308_v52 = vld [vmem:[%s6517_s11 + $0x48] sm:$0xff] }
 0x19c   : > { %4966 = vmatprep.mubr.bf16.mxu1 %v1213_v47  ;;  %v1188_v20 = vadd.f32 %v1140_v58, %v932_v55  ;;  %v936_v13 = vmax.f32 %v6371_v37, 0.0  ;;  %vm1175_vm13 = vcmp.lt.f32.partialorder %v1174_v14, 0.0004427343  ;;  %vm951_vm14 = vcmp.ne.f32.partialorder %v6349_v11, %v6349_v11  ;;  %4974 = vmatprep.subr.bf16.mxu1 %v5142_v46  ;;  %v5146_v54 = vld [vmem:[%s8511_s8 + $0x18] sm:$0xff]   ;;  %v5147_v55 = vld [vmem:[%s8511_s8 + $0x10] sm:$0xff]   ;;  %v2304_v47 = vld [vmem:[%s6517_s11 + $0x28] sm:$0xff] }
 0x19d   : > { %v1203_v33 = vsel %vm947_vm6, %v6270_v50, %v1187_v17  ;;  %v1149_v34 = vsel %vm1148_vm8, %v1146_v38, %v1143_v29  ;;  %vm952_vm15 = vcmp.ne.f32.partialorder %v6371_v37, %v6371_v37  ;;  %4975 = vmatpush3.bf16.msra.mxu1 %v5142_v46  ;;  %2337 = vrot.lane.b32.xlu1 %v2302_v63, %s5877_s26  ;;  %v2306_v7 = vld [vmem:[%s6517_s11 + $0x38] sm:$0xff]  ;;  %v2307_v27 = vld [vmem:[%s6517_s11 + $0x40] sm:$0xff] }
 0x19e   : > { %v5235_v21 = vpop.eup %5234  ;;  %v1204_v32 = vsel %vm948_vm7, %v6294_v6, %v1188_v20  ;;  %v1189_v2 = vadd.f32 %v1149_v34, %v933_v16  ;;  %v1164_v6 = vmul.f32 %v6421_v26, %v1163_v25  ;;  %4976 = vmatprep.subr.bf16.mxu1 %v5143_v53  ;;  %v2309_v25 = vld [vmem:[%s6517_s11 + $0x50] sm:$0xff] }
 0x19f   : > { %v1152_v35 = vmul.f32 0.6931472, %v5235_v21  ;;  %v1214_v39 = vpack.c.bf16 %v1204_v32, %v1203_v33  ;;  %2333 = vrot.lane.b32.xlu0 %v2300_v0, %s5877_s26 }
 0x1a0   : > { %v1205_v56 = vsel %vm949_vm10, %v6309_v22, %v1189_v2 }
 0x1a1   : > { %v1158_v57 = vsel %vm1157_vm9, %v1155_v23, %v1152_v35  ;;  %4967 = vmatmul.mubr.bf16.gmra.mxu1 %v1214_v39  ;;  %2341 = vrot.lane.b32.xlu1 %v2304_v47, %s5877_s26 }
 0x1a2   : > { %v5237_v3 = vpop.eup %5236  ;;  %v1190_v18 = vadd.f32 %v1158_v57, %v934_v12  ;;  %4977 = vmatpush3.bf16.msra.mxu1 %v5143_v53 }
 0x1a3   : > { %v1161_v50 = vmul.f32 0.6931472, %v5237_v3  ;;  %2339 = vrot.lane.b32.xlu0 %v2303_v40, %s5877_s26 }
 0x1a4   : > { %v1206_v1 = vsel %vm950_vm11, %v6333_v19, %v1190_v18 }
 0x1a5   : > { %v1215_v44 = vpack.c.bf16 %v1206_v1, %v1205_v56  ;;  %v1167_v45 = vsel %vm1166_vm12, %v1164_v6, %v1161_v50  ;;  %2345 = vrot.lane.b32.xlu1 %v2306_v7, %s5877_s26 }
 0x1a6   : > { %v5239_v42 = vpop.eup %5238  ;;  %v1191_v26 = vadd.f32 %v1167_v45, %v935_v43 }
 0x1a7   : > { %v1170_v9 = vmul.f32 0.6931472, %v5239_v42  ;;  %4970 = vmatprep.mubr.bf16.mxu1 %v1215_v44  ;;  %2343 = vrot.lane.b32.xlu0 %v2305_v5, %s5877_s26 }
 0x1a8   : > { %v1207_v22 = vsel %vm951_vm14, %v6349_v11, %v1191_v26  ;;  %v5144_v11 = vld [vmem:[%s8511_s8 + $0x28] sm:$0xff]  }
 0x1a9   : > { %v1176_v48 = vsel %vm1175_vm13, %v1173_v49, %v1170_v9  ;;  %4978 = vmatprep.subr.bf16.mxu1 %v5144_v11  ;;  %2349 = vrot.lane.b32.xlu1 %v2308_v52, %s5877_s26 }
 0x1aa   : > { %v1192_v24 = vadd.f32 %v1176_v48, %v936_v13  ;;  %4979 = vmatpush3.bf16.msra.mxu1 %v5144_v11 }
 0x1ab   : > { %2347 = vrot.lane.b32.xlu0 %v2307_v27, %s5877_s26 }
 0x1ac   : > { %v1208_v19 = vsel %vm952_vm15, %v6371_v37, %v1192_v24  ;;  %v5145_v37 = vld [vmem:[%s8511_s8 + $0x20] sm:$0xff]  }
 0x1ad   : > { %v1216_v51 = vpack.c.bf16 %v1208_v19, %v1207_v22  ;;  %4980 = vmatprep.subr.bf16.mxu1 %v5145_v37  ;;  %2353 = vrot.lane.b32.xlu1 %v2310_v31, %s5877_s26 }
 0x1ae   : > { %4981 = vmatpush3.bf16.msra.mxu1 %v5145_v37 }
 0x1af   : > { %4971 = vmatmul.mubr.bf16.gmra.mxu1 %v1216_v51  ;;  %4982 = vmatprep.subr.bf16.mxu1 %v5146_v54 }
 0x1b0   : > { %2351 = vrot.lane.b32.xlu0 %v2309_v25, %s5877_s26 }
 0x1b2   : > { %4983 = vmatpush3.bf16.msra.mxu1 %v5146_v54 }
 0x1b3   : > { %4984 = vmatprep.subr.bf16.mxu1 %v5147_v55 }
 0x1b6   : > { %4985 = vmatpush3.bf16.msra.mxu1 %v5147_v55 }
 0x1b7   : > { %4986 = vmatprep.subr.bf16.mxu1 %v5148_v59 }
 0x1ba   : > { %4987 = vmatpush3.bf16.msra.mxu1 %v5148_v59 }
 0x1bb   : > { %4988 = vmatprep.subr.bf16.mxu1 %v5149_v60 }
 0x1be   : > { %4989 = vmatpush3.bf16.msra.mxu1 %v5149_v60 }
 0x240   : > { %v4960_v10 = vpop.f32.mrf.mxu1 }
 0x241   : > { %v6539_v8 = vadd.f32 %v4960_v10, %v6532_v4 }
 0x242   : > { %v1322_v30 = vpop.f32.mrf.mxu1 }
 0x243   : > { %v1435_v15 = vand.u32 2147483647, %v6539_v8  ;;  %v6543_v16 = vadd.f32 %v6532_v4, %v1322_v30  ;;  %v1387_v27 = vmax.f32 %v6539_v8, 0.0  ;;  %vm1403_vm0 = vcmp.ne.f32.partialorder %v6539_v8, %v6539_v8 }
 0x244   : > { %v4961_v12 = vpop.f32.mrf.mxu1 }
 0x245   : > { %v1451_v58 = vsub.f32 0.0, %v1435_v15  ;;  %v1433_v17 = vand.u32 2147483647, %v6543_v16  ;;  %v6551_v36 = vadd.f32 %v4961_v12, %v6532_v4  ;;  %v1385_v52 = vmax.f32 %v6543_v16, 0.0 }
 0x246   : > { %v1325_v20 = vpop.f32.mrf.mxu1  ;;  %vm1401_vm6 = vcmp.ne.f32.partialorder %v6543_v16, %v6543_v16 }
 0x247   : > { %v1469_v29 = vmul.f32 1.442695, %v1451_v58  ;;  %v1449_v38 = vsub.f32 0.0, %v1433_v17  ;;  %v6554_v21 = vadd.f32 %v6532_v4, %v1325_v20  ;;  %v1436_v23 = vand.u32 2147483647, %v6551_v36 }
 0x248   : > { %v1388_v17 = vmax.f32 %v6551_v36, 0.0  ;;  %vm1404_vm4 = vcmp.ne.f32.partialorder %v6551_v36, %v6551_v36 }
 0x249   : > { %5240 = vpow2.f32 %v1469_v29  ;;  %v1452_v33 = vsub.f32 0.0, %v1436_v23  ;;  %v1434_v32 = vand.u32 2147483647, %v6554_v21  ;;  %v1465_v34 = vmul.f32 1.442695, %v1449_v38 }
 0x24a   : > { %v1386_v38 = vmax.f32 %v6554_v21, 0.0  ;;  %vm1402_vm8 = vcmp.ne.f32.partialorder %v6554_v21, %v6554_v21 }
 0x24b   : > { %v1471_v35 = vmul.f32 1.442695, %v1452_v33  ;;  %v1450_v39 = vsub.f32 0.0, %v1434_v32 }
 0x24d   : > { %5242 = vpow2.f32 %v1471_v35  ;;  %v1467_v2 = vmul.f32 1.442695, %v1450_v39 }
 0x24e   : > { %5244 = vpow2.f32 %v1465_v34 }
 0x24f   : > { %5246 = vpow2.f32 %v1467_v2 }
 0x254   : > { %v4964_v28 = vpop.f32.mrf.mxu1 }
 0x255   : > { %v6565_v57 = vadd.f32 %v4964_v28, %v6532_v4 }
 0x256   : > { %v1338_v3 = vpop.f32.mrf.mxu1  ;;  %v6571_v50 = vpop.eup %5240 }
 0x257   : > { %v1439_v18 = vand.u32 2147483647, %v6565_v57  ;;  %v6569_v41 = vadd.f32 %v6532_v4, %v1338_v3  ;;  %v1515_v56 = vadd.f32 1.0, %v6571_v50  ;;  %v1518_v61 = vmul.f32 -0.5, %v6571_v50 }
 0x258   : > { %v4965_v6 = vpop.f32.mrf.mxu1  ;;  %v1521_v20 = vand.u32 2147483647, %v6571_v50  ;;  %v1391_v33 = vmax.f32 %v6565_v57, 0.0  ;;  %vm1407_vm11 = vcmp.ne.f32.partialorder %v6565_v57, %v6565_v57 }
 0x259   : > { %v1455_v14 = vsub.f32 0.0, %v1439_v18  ;;  %v1437_v1 = vand.u32 2147483647, %v6569_v41  ;;  %v6576_v42 = vadd.f32 %v4965_v6, %v6532_v4  ;;  %5248 = vlog2.f32 %v1515_v56 }
 0x25a   : > { %v6578_v45 = vpop.eup %5242  ;;  %v1341_v48 = vpop.f32.mrf.mxu1  ;;  %v1519_v7 = vadd.f32 1.0, %v1518_v61  ;;  %v1389_v2 = vmax.f32 %v6569_v41, 0.0  ;;  %vm6626_vm1 = vcmp.lt.f32.partialorder %v1521_v20, 0.0004427343  ;;  %vm1405_vm10 = vcmp.ne.f32.partialorder %v6569_v41, %v6569_v41 }
 0x25b   : > { %v1477_v43 = vmul.f32 1.442695, %v1455_v14  ;;  %v1453_v44 = vsub.f32 0.0, %v1437_v1  ;;  %v6580_v9 = vpop.eup %5244  ;;  %v1524_v49 = vadd.f32 1.0, %v6578_v45  ;;  %v1440_v26 = vand.u32 2147483647, %v6576_v42 }
 0x25c   : > { %v1497_v24 = vadd.f32 1.0, %v6580_v9  ;;  %v6585_v22 = vpop.eup %5246  ;;  %v6588_v51 = vadd.f32 %v6532_v4, %v1341_v48  ;;  %v1500_v58 = vmul.f32 -0.5, %v6580_v9  ;;  %v1527_v29 = vmul.f32 -0.5, %v6578_v45 }
 0x25d   : > { %5250 = vpow2.f32 %v1477_v43  ;;  %v1473_v13 = vmul.f32 1.442695, %v1453_v44  ;;  %v1456_v19 = vsub.f32 0.0, %v1440_v26  ;;  %v1506_v37 = vadd.f32 1.0, %v6585_v22 }
 0x25e   : > { %v1438_v11 = vand.u32 2147483647, %v6588_v51  ;;  %v1520_v35 = vmul.f32 %v6571_v50, %v1519_v7  ;;  %v1503_v39 = vand.u32 2147483647, %v6580_v9  ;;  %v1501_v18 = vadd.f32 1.0, %v1500_v58 }
 0x25f   : > { %5252 = vpow2.f32 %v1473_v13  ;;  %v1479_v53 = vmul.f32 1.442695, %v1456_v19  ;;  %v1530_v6 = vand.u32 2147483647, %v6578_v45  ;;  %v1509_v14 = vmul.f32 -0.5, %v6585_v22 }
 0x260   : > { %5254 = vlog2.f32 %v1524_v49  ;;  %v1454_v59 = vsub.f32 0.0, %v1438_v11  ;;  %v1528_v50 = vadd.f32 1.0, %v1527_v29  ;;  %v1512_v44 = vand.u32 2147483647, %v6585_v22 }
 0x261   : > { %v4968_v46 = vpop.f32.mrf.mxu1  ;;  %5256 = vlog2.f32 %v1497_v24  ;;  %vm6638_vm2 = vcmp.lt.f32.partialorder %v1503_v39, 0.0004427343  ;;  %v1502_v11 = vmul.f32 %v6580_v9, %v1501_v18  ;;  %vm6644_vm3 = vcmp.lt.f32.partialorder %v1530_v6, 0.0004427343 }
 0x262   : > { %v6593_v54 = vadd.f32 %v4968_v46, %v6532_v4  ;;  %5258 = vpow2.f32 %v1479_v53  ;;  %v1475_v0 = vmul.f32 1.442695, %v1454_v59  ;;  %v1392_v53 = vmax.f32 %v6576_v42, 0.0 }
 0x263   : > { %v1354_v55 = vpop.f32.mrf.mxu1  ;;  %5260 = vlog2.f32 %v1506_v37  ;;  %vm6652_vm5 = vcmp.lt.f32.partialorder %v1512_v44, 0.0004427343  ;;  %v1676_v37 = vld [vmem:[%s6100_s28 + $0x18] sm:$0xff]  ;;  %vm1406_vm12 = vcmp.ne.f32.partialorder %v6588_v51, %v6588_v51  ;;  %vm1408_vm14 = vcmp.ne.f32.partialorder %v6576_v42, %v6576_v42 }
 0x264   : > { %v6596_v60 = vadd.f32 %v6532_v4, %v1354_v55  ;;  %v1443_v62 = vand.u32 2147483647, %v6593_v54  ;;  %5262 = vpow2.f32 %v1475_v0  ;;  %v1510_v55 = vadd.f32 1.0, %v1509_v14 }
 0x265   : > { %v4969_v63 = vpop.f32.mrf.mxu1  ;;  %v1529_v0 = vmul.f32 %v6578_v45, %v1528_v50 }
 0x266   : > { %v1441_v40 = vand.u32 2147483647, %v6596_v60  ;;  %v1459_v47 = vsub.f32 0.0, %v1443_v62  ;;  %v6602_v10 = vadd.f32 %v4969_v63, %v6532_v4  ;;  %v5249_v5 = vpop.eup %5248  ;;  %v1511_v58 = vmul.f32 %v6585_v22, %v1510_v55 }
 0x267   : > { %v1517_v31 = vmul.f32 0.6931472, %v5249_v5  ;;  %v1357_v34 = vpop.f32.mrf.mxu1  ;;  %v1390_v5 = vmax.f32 %v6588_v51, 0.0  ;;  %v1393_v14 = vmax.f32 %v6596_v60, 0.0 }
 0x268   : > { %v1485_v30 = vmul.f32 1.442695, %v1459_v47  ;;  %v1457_v15 = vsub.f32 0.0, %v1441_v40  ;;  %v1444_v32 = vand.u32 2147483647, %v6602_v10  ;;  %v6634_v48 = vadd.f32 %v6532_v4, %v1357_v34 }
 0x269   : > { %v1523_v13 = vsel %vm6626_vm1, %v1520_v35, %v1517_v31 }
 0x26a   : > { %v6604_v12 = vpop.eup %5250  ;;  %5264 = vpow2.f32 %v1485_v30  ;;  %v1481_v28 = vmul.f32 1.442695, %v1457_v15  ;;  %v1460_v26 = vsub.f32 0.0, %v1444_v32  ;;  %v1643_v62 = vadd.f32 %v1523_v13, %v1387_v27  ;;  %v1675_v32 = vld [vmem:[%s6100_s28 + $0x10] sm:$0xff] }
 0x26b   : > { %v1551_v23 = vadd.f32 1.0, %v6604_v12  ;;  %v1442_v7 = vand.u32 2147483647, %v6634_v48  ;;  %v1554_v20 = vmul.f32 -0.5, %v6604_v12  ;;  %v1557_v18 = vand.u32 2147483647, %v6604_v12 }
 0x26c   : > { %v6614_v25 = vpop.eup %5252  ;;  %v1487_v40 = vmul.f32 1.442695, %v1460_v26  ;;  %v1659_v31 = vsel %vm1403_vm0, %v6539_v8, %v1643_v62 }
 0x26d   : > { %v5255_v3 = vpop.eup %5254  ;;  %v1533_v56 = vadd.f32 1.0, %v6614_v25  ;;  %5266 = vlog2.f32 %v1551_v23  ;;  %v1395_v23 = vmax.f32 %v6593_v54, 0.0  ;;  %v1458_v35 = vsub.f32 0.0, %v1442_v7 }
 0x26e   : > { %v5257_v49 = vpop.eup %5256  ;;  %v1526_v46 = vmul.f32 0.6931472, %v5255_v3  ;;  %v1691_v43 = vmul.f32 %v1675_v32, %v1659_v31  ;;  %v1555_v50 = vadd.f32 1.0, %v1554_v20  ;;  %v1536_v44 = vmul.f32 -0.5, %v6614_v25 }
 0x26f   : > { %v4972_v1 = vpop.f32.mrf.mxu1  ;;  %5268 = vlog2.f32 %v1533_v56  ;;  %v6636_v24 = vpop.eup %5258  ;;  %v1499_v63 = vmul.f32 0.6931472, %v5257_v49  ;;  %v1483_v8 = vmul.f32 1.442695, %v1458_v35  ;;  %v1396_v49 = vmax.f32 %v6602_v10, 0.0 }
 0x270   : > { %5270 = vpow2.f32 %v1481_v28  ;;  %v1560_v59 = vadd.f32 1.0, %v6636_v24  ;;  %v5261_v47 = vpop.eup %5260  ;;  %v1532_v15 = vsel %vm6644_vm3, %v1529_v0, %v1526_v46  ;;  %v6663_v45 = vadd.f32 %v4972_v1, %v6532_v4 }
 0x271   : > { %v1370_v61 = vpop.f32.mrf.mxu1  ;;  %v6658_v30 = vpop.eup %5262  ;;  %v1505_v34 = vsel %vm6638_vm2, %v1502_v11, %v1499_v63  ;;  %v1644_v22 = vadd.f32 %v1532_v15, %v1388_v17  ;;  %v1508_v3 = vmul.f32 0.6931472, %v5261_v47  ;;  %vm6698_vm7 = vcmp.lt.f32.partialorder %v1557_v18, 0.0004427343 }
 0x272   : > { %5272 = vlog2.f32 %v1560_v59  ;;  %v6666_v27 = vadd.f32 %v6532_v4, %v1370_v61  ;;  %v1542_v29 = vadd.f32 1.0, %v6658_v30  ;;  %v1447_v39 = vand.u32 2147483647, %v6663_v45 }
 0x273   : > { %5274 = vpow2.f32 %v1487_v40  ;;  %v4973_v28 = vpop.f32.mrf.mxu1  ;;  %v1641_v17 = vadd.f32 %v1505_v34, %v1385_v52  ;;  %v1660_v11 = vsel %vm1404_vm4, %v6551_v36, %v1644_v22  ;;  %v1539_v59 = vand.u32 2147483647, %v6614_v25 }
 0x274   : > { %5276 = vlog2.f32 %v1542_v29  ;;  %v1463_v56 = vsub.f32 0.0, %v1447_v39  ;;  %v1445_v1 = vand.u32 2147483647, %v6666_v27  ;;  %v6705_v52 = vadd.f32 %v4973_v28, %v6532_v4 }
 0x275   : > { %5278 = vpow2.f32 %v1483_v8  ;;  %v1373_v19 = vpop.f32.mrf.mxu1  ;;  %v1514_v63 = vsel %vm6652_vm5, %v1511_v58, %v1508_v3  ;;  %v1545_v36 = vmul.f32 -0.5, %v6658_v30  ;;  %v6714_v47 = vmul.f32 1.25, %v1691_v43 }
 0x276   : > { %v1493_v13 = vmul.f32 1.442695, %v1463_v56  ;;  %v1461_v26 = vsub.f32 0.0, %v1445_v1  ;;  %v1556_v7 = vmul.f32 %v6604_v12, %v1555_v50  ;;  %v1537_v15 = vadd.f32 1.0, %v1536_v44  ;;  %v1677_v12 = vld [vmem:[%s6100_s28 + $0x20] sm:$0xff] }
 0x277   : > { %v6683_v6 = vpop.eup %5264  ;;  %v6718_v20 = vadd.f32 %v6532_v4, %v1373_v19  ;;  %v1692_v29 = vmul.f32 %v1676_v37, %v1660_v11  ;;  %v1563_v31 = vmul.f32 -0.5, %v6636_v24  ;;  %v1642_v58 = vadd.f32 %v1514_v63, %v1386_v38  ;;  %v1674_v19 = vld [vmem:[%s6100_s28 + $0x8] sm:$0xff] }
 0x278   : > { %v1587_v61 = vadd.f32 1.0, %v6683_v6  ;;  %5280 = vpow2.f32 %v1493_v13  ;;  %v1489_v0 = vmul.f32 1.442695, %v1461_v26  ;;  %v1448_v34 = vand.u32 2147483647, %v6705_v52  ;;  %v1673_v26 = vld [vmem:[%s6100_s28] sm:$0xff] }
 0x279   : > { %vm6725_vm9 = vcmp.lt.f32.partialorder %v1539_v59, 0.0004427343  ;;  %v1546_v4 = vadd.f32 1.0, %v1545_v36  ;;  %v1538_v38 = vmul.f32 %v6614_v25, %v1537_v15  ;;  %v1566_v22 = vand.u32 2147483647, %v6636_v24 }
 0x27a   : > { %v5267_v46 = vpop.eup %5266  ;;  %5282 = vpow2.f32 %v1489_v0  ;;  %v1464_v3 = vsub.f32 0.0, %v1448_v34  ;;  %v1446_v18 = vand.u32 2147483647, %v6718_v20  ;;  %v6736_v8 = vmul.f32 1.25, %v1692_v29 }
 0x27b   : > { %5284 = vlog2.f32 %v1587_v61  ;;  %v1553_v39 = vmul.f32 0.6931472, %v5267_v46  ;;  %v1564_v56 = vadd.f32 1.0, %v1563_v31  ;;  %v1548_v1 = vand.u32 2147483647, %v6658_v30 }
 0x27c   : > { %v5269_v62 = vpop.eup %5268  ;;  %v1495_v44 = vmul.f32 1.442695, %v1464_v3  ;;  %v1462_v13 = vsub.f32 0.0, %v1446_v18  ;;  %v1657_v25 = vsel %vm1401_vm6, %v6543_v16, %v1641_v17  ;;  %v1547_v59 = vmul.f32 %v6658_v30, %v1546_v4 }
 0x27d   : > { %v6712_v40 = vpop.eup %5270  ;;  %v1535_v32 = vmul.f32 0.6931472, %v5269_v62  ;;  %v1559_v11 = vsel %vm6698_vm7, %v1556_v7, %v1553_v39  ;;  %v1658_v16 = vsel %vm1402_vm8, %v6554_v21, %v1642_v58  ;;  %vm6761_vm13 = vcmp.lt.f32.partialorder %v1548_v1, 0.0004427343 }
 0x27e   : > { %v1569_v9 = vadd.f32 1.0, %v6712_v40  ;;  %v1491_v62 = vmul.f32 1.442695, %v1462_v13  ;;  %v1689_v30 = vmul.f32 %v1673_v26, %v1657_v25  ;;  %v1690_v63 = vmul.f32 %v1674_v19, %v1658_v16 }
 0x27f   : > { %v5273_v35 = vpop.eup %5272  ;;  %v1541_v50 = vsel %vm6725_vm9, %v1538_v38, %v1535_v32  ;;  %v1565_v0 = vmul.f32 %v6636_v24, %v1564_v56  ;;  %v1590_v21 = vmul.f32 -0.5, %v6683_v6  ;;  %vm6775_vm15 = vcmp.lt.f32.partialorder %v1566_v22, 0.0004427343 }
 0x280   : > { %5286 = vlog2.f32 %v1569_v9  ;;  %v6729_v28 = vpop.eup %5274  ;;  %v1562_v37 = vmul.f32 0.6931472, %v5273_v35  ;;  %v1645_v17 = vadd.f32 %v1541_v50, %v1389_v2  ;;  %v1647_v2 = vadd.f32 %v1559_v11, %v1391_v33  ;;  %v1678_v50 = vld [vmem:[%s6100_s28 + $0x28] sm:$0xff] }
 0x281   : > { %v1596_v43 = vadd.f32 1.0, %v6729_v28  ;;  %v5277_v46 = vpop.eup %5276  ;;  %v1572_v29 = vmul.f32 -0.5, %v6712_v40  ;;  %v1599_v58 = vmul.f32 -0.5, %v6729_v28  ;;  %v1705_v32 = vmul.f32 1.25, %v1689_v30 }
 0x282   : > { %v1544_v61 = vmul.f32 0.6931472, %v5277_v46  ;;  %v6765_v36 = vpop.eup %5278  ;;  %v1568_v24 = vsel %vm6775_vm15, %v1565_v0, %v1562_v37  ;;  %v1706_v34 = vmul.f32 1.25, %v1690_v63  ;;  %v1661_v39 = vsel %vm1405_vm10, %v6569_v41, %v1645_v17 }
 0x283   : > { %5288 = vlog2.f32 %v1596_v43  ;;  %v1578_v31 = vadd.f32 1.0, %v6765_v36  ;;  %v1591_v38 = vadd.f32 1.0, %v1590_v21  ;;  %v1593_v22 = vand.u32 2147483647, %v6683_v6 }
 0x284   : > { %5290 = vpow2.f32 %v1495_v44  ;;  %v1550_v7 = vsel %vm6761_vm13, %v1547_v59, %v1544_v61  ;;  %v1575_v3 = vand.u32 2147483647, %v6712_v40  ;;  %v1721_v18 = vpack.c.bf16 %v1706_v34, %v1705_v32 }
 0x285   : > { %5292 = vpow2.f32 %v1491_v62  ;;  %v6781_v9 = vpop.eup %5280  ;;  %v1646_v33 = vadd.f32 %v1550_v7, %v1390_v5  ;;  %v1648_v5 = vadd.f32 %v1568_v24, %v1392_v53  ;;  %v1573_v1 = vadd.f32 1.0, %v1572_v29  ;;  %v1679_v53 = vld [vmem:[%s6100_s28 + $0x30] sm:$0xff] }
 0x286   : > { %5294 = vlog2.f32 %v1578_v31  ;;  %v1623_v35 = vadd.f32 1.0, %v6781_v9  ;;  %v1722_v41 = vpack.c.bf16 %v6736_v8, %v6714_v47  ;;  %v1602_v13 = vand.u32 2147483647, %v6729_v28  ;;  %4990 = vmatprep.mubr.bf16.mxu1 %v1721_v18  ;;  %v1680_v8 = vld [vmem:[%s6100_s28 + $0x38] sm:$0xff] }
 0x287   : > { %v6794_v4 = vpop.eup %5282  ;;  %v1693_v25 = vmul.f32 %v1677_v12, %v1661_v39  ;;  %v1663_v26 = vsel %vm1407_vm11, %v6565_v57, %v1647_v2  ;;  %v1600_v46 = vadd.f32 1.0, %v1599_v58  ;;  %v1662_v47 = vsel %vm1406_vm12, %v6588_v51, %v1646_v33  ;;  %v1684_v18 = vld [vmem:[%s6100_s28 + $0x58] sm:$0xff] }
 0x288   : > { %v5285_v56 = vpop.eup %5284  ;;  %v1605_v43 = vadd.f32 1.0, %v6794_v4  ;;  %5296 = vlog2.f32 %v1623_v35  ;;  %4991 = vmatmul.mubr.bf16.vlgmr.msra.gmra.mxu1 %v1722_v41  ;;  %v1592_v37 = vmul.f32 %v6683_v6, %v1591_v38  ;;  %vm6816_vm0 = vcmp.lt.f32.partialorder %v1593_v22, 0.0004427343 }
 0x289   : > { %v1589_v11 = vmul.f32 0.6931472, %v5285_v56  ;;  %v1694_v61 = vmul.f32 %v1678_v50, %v1662_v47  ;;  %v1574_v57 = vmul.f32 %v6712_v40, %v1573_v1  ;;  %v1581_v62 = vmul.f32 -0.5, %v6765_v36 }
 0x28a   : > { %5298 = vlog2.f32 %v1605_v43  ;;  %v1664_v16 = vsel %vm1408_vm14, %v6576_v42, %v1648_v5  ;;  %v1695_v17 = vmul.f32 %v1679_v53, %v1663_v26  ;;  %vm6826_vm1 = vcmp.lt.f32.partialorder %v1575_v3, 0.0004427343  ;;  %v1681_v43 = vld [vmem:[%s6100_s28 + $0x40] sm:$0xff] }
 0x28b   : > { %v1709_v6 = vmul.f32 1.25, %v1693_v25  ;;  %v1710_v30 = vmul.f32 1.25, %v1694_v61  ;;  %v1696_v63 = vmul.f32 %v1680_v8, %v1664_v16  ;;  %v1601_v21 = vmul.f32 %v6729_v28, %v1600_v46  ;;  %v1682_v46 = vld [vmem:[%s6100_s28 + $0x48] sm:$0xff] }
 0x28c   : > { %vm1603_vm2 = vcmp.lt.f32.partialorder %v1602_v13, 0.0004427343  ;;  %v1595_v42 = vsel %vm6816_vm0, %v1592_v37, %v1589_v11  ;;  %v1584_v2 = vand.u32 2147483647, %v6765_v36  ;;  %v1582_v58 = vadd.f32 1.0, %v1581_v62 }
 0x28d   : > { %v5287_v44 = vpop.eup %5286  ;;  %v1723_v29 = vpack.c.bf16 %v1710_v30, %v1709_v6  ;;  %v1711_v32 = vmul.f32 1.25, %v1695_v17  ;;  %v1712_v34 = vmul.f32 1.25, %v1696_v63  ;;  %v1626_v35 = vmul.f32 -0.5, %v6781_v9 }
 0x28e   : > { %v1571_v19 = vmul.f32 0.6931472, %v5287_v44  ;;  %v1651_v39 = vadd.f32 %v1595_v42, %v1395_v23  ;;  %v1608_v12 = vmul.f32 -0.5, %v6794_v4  ;;  %vm1411_vm3 = vcmp.ne.f32.partialorder %v6593_v54, %v6593_v54 }
 0x28f   : > { %4994 = vmatprep.mubr.bf16.mxu1 %v1723_v29  ;;  %v1724_v22 = vpack.c.bf16 %v1712_v34, %v1711_v32  ;;  %vm1409_vm4 = vcmp.ne.f32.partialorder %v6596_v60, %v6596_v60  ;;  %vm1412_vm5 = vcmp.ne.f32.partialorder %v6602_v10, %v6602_v10  ;;  %v1583_v23 = vmul.f32 %v6765_v36, %v1582_v58 }
 0x290   : > { %v5289_v51 = vpop.eup %5288  ;;  %v1577_v40 = vsel %vm6826_vm1, %v1574_v57, %v1571_v19  ;;  %v1394_v56 = vmax.f32 %v6634_v48, 0.0  ;;  %vm1585_vm6 = vcmp.lt.f32.partialorder %v1584_v2, 0.0004427343  ;;  %v1629_v5 = vand.u32 2147483647, %v6781_v9 }
 0x291   : > { %v6830_v0 = vpop.eup %5290  ;;  %v1598_v7 = vmul.f32 0.6931472, %v5289_v51  ;;  %v1649_v33 = vadd.f32 %v1577_v40, %v1393_v14  ;;  %4995 = vmatmul.mubr.bf16.gmra.mxu1 %v1724_v22  ;;  %v1627_v44 = vadd.f32 1.0, %v1626_v35  ;;  %v1609_v13 = vadd.f32 1.0, %v1608_v12  ;;  %v1688_v12 = vld [vmem:[%s6100_s28 + $0x78] sm:$0xff] }
 0x292   : > { %v1632_v15 = vadd.f32 1.0, %v6830_v0  ;;  %v6839_v31 = vpop.eup %5292  ;;  %v1667_v36 = vsel %vm1411_vm3, %v6593_v54, %v1651_v39  ;;  %v1611_v53 = vand.u32 2147483647, %v6794_v4  ;;  %v1635_v19 = vmul.f32 -0.5, %v6830_v0 }
 0x293   : > { %v1604_v24 = vsel %vm1603_vm2, %v1601_v21, %v1598_v7  ;;  %v1614_v38 = vadd.f32 1.0, %v6839_v31  ;;  %v5295_v3 = vpop.eup %5294  ;;  %v1665_v1 = vsel %vm1409_vm4, %v6596_v60, %v1649_v33  ;;  %vm1410_vm7 = vcmp.ne.f32.partialorder %v6634_v48, %v6634_v48 }
 0x294   : > { %v1652_v28 = vadd.f32 %v1604_v24, %v1396_v49  ;;  %5300 = vlog2.f32 %v1632_v15  ;;  %v1580_v14 = vmul.f32 0.6931472, %v5295_v3  ;;  %v1697_v8 = vmul.f32 %v1681_v43, %v1665_v1  ;;  %v1685_v3 = vld [vmem:[%s6100_s28 + $0x60] sm:$0xff] }
 0x295   : > { %5302 = vlog2.f32 %v1614_v38  ;;  %v5297_v41 = vpop.eup %5296  ;;  %vm6874_vm8 = vcmp.lt.f32.partialorder %v1629_v5, 0.0004427343  ;;  %v1610_v61 = vmul.f32 %v6794_v4, %v1609_v13  ;;  %v1617_v57 = vmul.f32 -0.5, %v6839_v31  ;;  %v1686_v5 = vld [vmem:[%s6100_s28 + $0x68] sm:$0xff] }
 0x296   : > { %v1668_v49 = vsel %vm1412_vm5, %v6602_v10, %v1652_v28  ;;  %v1586_v50 = vsel %vm1585_vm6, %v1583_v23, %v1580_v14  ;;  %v1683_v10 = vld [vmem:[%s6100_s28 + $0x50] sm:$0xff]  ;;  %v1625_v11 = vmul.f32 0.6931472, %v5297_v41  ;;  %v1628_v16 = vmul.f32 %v6781_v9, %v1627_v44 }
 0x297   : > { %v5299_v25 = vpop.eup %5298  ;;  %v1650_v26 = vadd.f32 %v1586_v50, %v1394_v56  ;;  %v1700_v47 = vmul.f32 %v1684_v18, %v1668_v49  ;;  %v1699_v59 = vmul.f32 %v1683_v10, %v1667_v36  ;;  %vm1612_vm9 = vcmp.lt.f32.partialorder %v1611_v53, 0.0004427343  ;;  %v1687_v18 = vld [vmem:[%s6100_s28 + $0x70] sm:$0xff]  ;;  %v2311_v10 = vld [vmem:[%s6517_s11 + $0x60] sm:$0xff]  ;;  %s7502_s28 = scalar_lea.vmem %s8517_s14, %s6511_s20 }
 0x298   : > { %v1607_v60 = vmul.f32 0.6931472, %v5299_v25  ;;  %v1636_v17 = vadd.f32 1.0, %v1635_v19  ;;  %v1638_v6 = vand.u32 2147483647, %v6830_v0  ;;  %v1713_v30 = vmul.f32 1.25, %v1697_v8  ;;  %2355 = vrot.lane.b32.xlu0 %v2311_v10, %s5877_s26 }
 0x299   : > { %v1666_v37 = vsel %vm1410_vm7, %v6634_v48, %v1650_v26  ;;  %v1716_v51 = vmul.f32 1.25, %v1700_v47  ;;  %v1631_v63 = vsel %vm6874_vm8, %v1628_v16, %v1625_v11  ;;  %v1397_v40 = vmax.f32 %v6666_v27, 0.0  ;;  %v2312_v25 = vld [vmem:[%s6517_s11 + $0x68] sm:$0xff]  ;;  %v2313_v26 = vld [vmem:[%s6517_s11 + $0x70] sm:$0xff]  ;;  %v6918_v53 = vld [vmem:[%s8512_s9] ss:$0 sm:$0xff] }
 0x29a   : > { %v1698_v62 = vmul.f32 %v1682_v46, %v1666_v37  ;;  %v1613_v55 = vsel %vm1612_vm9, %v1610_v61, %v1607_v60  ;;  %v1715_v7 = vmul.f32 1.25, %v1699_v59  ;;  %v1399_v21 = vmax.f32 %v6663_v45, 0.0  ;;  %2357 = vrot.lane.b32.xlu1 %v2312_v25, %s5877_s26 }
 0x29b   : > { %v1618_v42 = vadd.f32 1.0, %v1617_v57  ;;  %v1620_v9 = vand.u32 2147483647, %v6839_v31  ;;  %v1653_v15 = vadd.f32 %v1613_v55, %v1397_v40  ;;  %v1637_v24 = vmul.f32 %v6830_v0, %v1636_v17 }
 0x29c   : > { %v1714_v48 = vmul.f32 1.25, %v1698_v62  ;;  %v1726_v58 = vpack.c.bf16 %v1716_v51, %v1715_v7  ;;  %v1655_v32 = vadd.f32 %v1631_v63, %v1399_v21  ;;  %v1400_v34 = vmax.f32 %v6705_v52, 0.0  ;;  %2359 = vrot.lane.b32.xlu0 %v2313_v26, %s5877_s26 }
 0x29d   : > { %vm1639_vm10 = vcmp.lt.f32.partialorder %v1638_v6, 0.0004427343  ;;  %vm1415_vm11 = vcmp.ne.f32.partialorder %v6663_v45, %v6663_v45  ;;  %vm1413_vm12 = vcmp.ne.f32.partialorder %v6666_v27, %v6666_v27  ;;  %v1619_v39 = vmul.f32 %v6839_v31, %v1618_v42 }
 0x29e   : > { %v1725_v2 = vpack.c.bf16 %v1714_v48, %v1713_v30  ;;  %vm1416_vm13 = vcmp.ne.f32.partialorder %v6705_v52, %v6705_v52  ;;  %v1398_v38 = vmax.f32 %v6718_v20, 0.0  ;;  %vm1621_vm14 = vcmp.lt.f32.partialorder %v1620_v9, 0.0004427343 }
 0x29f   : > { %v1669_v22 = vsel %vm1413_vm12, %v6666_v27, %v1653_v15  ;;  %v1671_v23 = vsel %vm1415_vm11, %v6663_v45, %v1655_v32  ;;  %vm1414_vm15 = vcmp.ne.f32.partialorder %v6718_v20, %v6718_v20  ;;  %vm1897_vm0 = vcmask 523264  }
 0x2a0   : > { %4998 = vmatprep.mubr.bf16.mxu1 %v1725_v2  ;;  %v1701_v1 = vmul.f32 %v1685_v3, %v1669_v22  ;;  %v1703_v27 = vmul.f32 %v1687_v18, %v1671_v23  ;;  %vm2475_vm1 = vcmask 261120  }
 0x2a1   : > { %v5301_v4 = vpop.eup %5300  ;;  %4999 = vmatmul.mubr.bf16.gmra.mxu1 %v1726_v58 }
 0x2a2   : > { %v1634_v29 = vmul.f32 0.6931472, %v5301_v4  ;;  %v5303_v33 = vpop.eup %5302  ;;  %v1717_v45 = vmul.f32 1.25, %v1701_v1 }
 0x2a3   : > { %v1616_v0 = vmul.f32 0.6931472, %v5303_v33 }
 0x2a4   : > { %v1640_v28 = vsel %vm1639_vm10, %v1637_v24, %v1634_v29 }
 0x2a5   : > { %v1656_v35 = vadd.f32 %v1640_v28, %v1400_v34  ;;  %v1622_v14 = vsel %vm1621_vm14, %v1619_v39, %v1616_v0 }
 0x2a6   : > { %v1654_v56 = vadd.f32 %v1622_v14, %v1398_v38 }
 0x2a7   : > { %v1672_v49 = vsel %vm1416_vm13, %v6705_v52, %v1656_v35  ;;  %v1719_v52 = vmul.f32 1.25, %v1703_v27 }
 0x2a8   : > { %v1704_v31 = vmul.f32 %v1688_v12, %v1672_v49  ;;  %v1670_v43 = vsel %vm1414_vm15, %v6718_v20, %v1654_v56  ;;  %v2314_v20 = vld [vmem:[%s6517_s11 + $0x78] sm:$0xff] }
 0x2a9   : > { %v1702_v41 = vmul.f32 %v1686_v5, %v1670_v43  ;;  %2361 = vrot.lane.b32.xlu1 %v2314_v20, %s5877_s26 }
 0x2aa   : > { %v1720_v50 = vmul.f32 1.25, %v1704_v31 }
 0x2ab   : > { %v1718_v44 = vmul.f32 1.25, %v1702_v41 }
 0x2ac   : > { %v1728_v36 = vpack.c.bf16 %v1720_v50, %v1719_v52 }
 0x2ad   : > { %v1727_v13 = vpack.c.bf16 %v1718_v44, %v1717_v45 }
 0x2af   : > { %5002 = vmatprep.mubr.bf16.mxu1 %v1727_v13 }
 0x2b0   : > { %5003 = vmatmul.mubr.bf16.gmra.mxu1 %v1728_v36 }
 0x348   : > { %v4992_v19 = vpop.f32.mrf.mxu1 }
 0x349   : > { %v1843_v46 = vadd.f32 %v4992_v19, %v6918_v53 }
 0x34a   : > { %v1834_v47 = vpop.f32.mrf.mxu1 }
 0x34b   : > { %v1912_v60 = vsel %vm1897_vm0, %v1843_v46, 0.0  ;;  %v1835_v8 = vadd.f32 %v6918_v53, %v1834_v47 }
 0x34c   : > { %v1913_v11 = vrot.slane %v1912_v60, 4  ;;  %v4993_v37 = vpop.f32.mrf.mxu1 }
 0x34d   : > { %v1898_v59 = vsel %vm1897_vm0, %v1835_v8, 0.0  ;;  %v1846_v54 = vadd.f32 %v4993_v37, %v6918_v53 }
 0x34e   : > { %v1914_v61 = vadd.f32 %v1913_v11, %v1912_v60  ;;  %v1899_v57 = vrot.slane %v1898_v59, 4  ;;  %v1837_v62 = vpop.f32.mrf.mxu1 }
 0x34f   : > { %v1919_v16 = vsel %vm1897_vm0, %v1846_v54, 0.0  ;;  %v1838_v17 = vadd.f32 %v6918_v53, %v1837_v62 }
 0x350   : > { %v1915_v51 = vrot.slane %v1914_v61, 2  ;;  %v1900_v55 = vadd.f32 %v1899_v57, %v1898_v59  ;;  %v1920_v6 = vrot.slane %v1919_v16, 4 }
 0x351   : > { %v1905_v30 = vsel %vm1897_vm0, %v1838_v17, 0.0  ;;  %v4996_v4 = vpop.f32.mrf.mxu1 }
 0x352   : > { %v1916_v48 = vadd.f32 %v1915_v51, %v1914_v61  ;;  %v1901_v63 = vrot.slane %v1900_v55, 2  ;;  %v1921_v40 = vadd.f32 %v1920_v6, %v1919_v16  ;;  %v1906_v7 = vrot.slane %v1905_v30, 4 }
 0x353   : > { %v6929_v21 = vadd.f32 %v4996_v4, %v6918_v53  ;;  %v1850_v29 = vpop.f32.mrf.mxu1 }
 0x354   : > { %v1917_v42 = vrot.slane %v1916_v48, 1  ;;  %v1902_v9 = vadd.f32 %v1901_v63, %v1900_v55  ;;  %v1922_v2 = vrot.slane %v1921_v40, 2  ;;  %v1907_v15 = vadd.f32 %v1906_v7, %v1905_v30 }
 0x355   : > { %v1940_v24 = vsel %vm1897_vm0, %v6929_v21, 0.0  ;;  %v6934_v58 = vadd.f32 %v6918_v53, %v1850_v29  ;;  %v4997_v35 = vpop.f32.mrf.mxu1 }
 0x356   : > { %v1918_v32 = vadd.f32 %v1917_v42, %v1916_v48  ;;  %v1903_v34 = vrot.slane %v1902_v9, 1  ;;  %v1923_v33 = vadd.f32 %v1922_v2, %v1921_v40  ;;  %v1908_v28 = vrot.slane %v1907_v15, 2 }
 0x357   : > { %v1941_v0 = vrot.slane %v1940_v24, 4  ;;  %v1926_v39 = vsel %vm1897_vm0, %v6934_v58, 0.0  ;;  %v6939_v12 = vadd.f32 %v4997_v35, %v6918_v53  ;;  %v1853_v23 = vpop.f32.mrf.mxu1 }
 0x358   : > { %v2013_v38 = vmul.f32 0.125, %v1918_v32  ;;  %v1904_v22 = vadd.f32 %v1903_v34, %v1902_v9  ;;  %v1924_v3 = vrot.slane %v1923_v33, 1  ;;  %v1909_v14 = vadd.f32 %v1908_v28, %v1907_v15 }
 0x359   : > { %v1942_v49 = vadd.f32 %v1941_v0, %v1940_v24  ;;  %v1927_v18 = vrot.slane %v1926_v39, 4  ;;  %v1947_v56 = vsel %vm1897_vm0, %v6939_v12, 0.0  ;;  %v6944_v5 = vadd.f32 %v6918_v53, %v1853_v23 }
 0x35a   : > { %v6946_v31 = vsub.f32 %v1843_v46, %v2013_v38  ;;  %v2011_v1 = vmul.f32 0.125, %v1904_v22  ;;  %v1925_v43 = vadd.f32 %v1924_v3, %v1923_v33  ;;  %v1910_v27 = vrot.slane %v1909_v14, 1 }
 0x35b   : > { %v1943_v41 = vrot.slane %v1942_v49, 2  ;;  %v1928_v50 = vadd.f32 %v1927_v18, %v1926_v39  ;;  %v1948_v45 = vrot.slane %v1947_v56, 4  ;;  %v1933_v44 = vsel %vm1897_vm0, %v6944_v5, 0.0 }
 0x35c   : > { %v2045_v52 = vmul.f32 %v6946_v31, %v6946_v31  ;;  %v6952_v13 = vsub.f32 %v1835_v8, %v2011_v1  ;;  %v2014_v36 = vmul.f32 0.125, %v1925_v43  ;;  %v1911_v10 = vadd.f32 %v1910_v27, %v1909_v14 }
 0x35d   : > { %v1944_v25 = vadd.f32 %v1943_v41, %v1942_v49  ;;  %v1929_v26 = vrot.slane %v1928_v50, 2  ;;  %v1949_v20 = vadd.f32 %v1948_v45, %v1947_v56  ;;  %v1934_v19 = vrot.slane %v1933_v44, 4 }
 0x35e   : > { %v2073_v46 = vsel %vm1897_vm0, %v2045_v52, 0.0  ;;  %v2043_v47 = vmul.f32 %v6952_v13, %v6952_v13  ;;  %v6957_v60 = vsub.f32 %v1846_v54, %v2014_v36  ;;  %v2012_v11 = vmul.f32 0.125, %v1911_v10 }
 0x35f   : > { %v2074_v37 = vrot.slane %v2073_v46, 4  ;;  %v1945_v59 = vrot.slane %v1944_v25, 1  ;;  %v1930_v61 = vadd.f32 %v1929_v26, %v1928_v50  ;;  %v1950_v57 = vrot.slane %v1949_v20, 2 }
 0x360   : > { %v2059_v8 = vsel %vm1897_vm0, %v2043_v47, 0.0  ;;  %v2046_v62 = vmul.f32 %v6957_v60, %v6957_v60  ;;  %v6962_v16 = vsub.f32 %v1838_v17, %v2012_v11  ;;  %v1935_v51 = vadd.f32 %v1934_v19, %v1933_v44 }
 0x361   : > { %v2075_v55 = vadd.f32 %v2074_v37, %v2073_v46  ;;  %v2060_v6 = vrot.slane %v2059_v8, 4  ;;  %v1946_v30 = vadd.f32 %v1945_v59, %v1944_v25  ;;  %v1931_v48 = vrot.slane %v1930_v61, 1  ;;  %v5000_v43 = vpop.f32.mrf.mxu1 }
 0x362   : > { %v2080_v54 = vsel %vm1897_vm0, %v2046_v62, 0.0  ;;  %v2044_v63 = vmul.f32 %v6962_v16, %v6962_v16  ;;  %v1951_v40 = vadd.f32 %v1950_v57, %v1949_v20  ;;  %v1936_v7 = vrot.slane %v1935_v51, 2 }
 0x363   : > { %v2076_v4 = vrot.slane %v2075_v55, 2  ;;  %v2061_v42 = vadd.f32 %v2060_v6, %v2059_v8  ;;  %v2081_v9 = vrot.slane %v2080_v54, 4  ;;  %v2017_v2 = vmul.f32 0.125, %v1946_v30  ;;  %v1866_v11 = vpop.f32.mrf.mxu1 }
 0x364   : > { %v2066_v15 = vsel %vm1897_vm0, %v2044_v63, 0.0  ;;  %v1932_v17 = vadd.f32 %v1931_v48, %v1930_v61  ;;  %v1952_v29 = vrot.slane %v1951_v40, 1  ;;  %v1937_v24 = vadd.f32 %v1936_v7, %v1935_v51 }
 0x365   : > { %v2077_v32 = vadd.f32 %v2076_v4, %v2075_v55  ;;  %v2062_v34 = vrot.slane %v2061_v42, 2  ;;  %v2082_v33 = vadd.f32 %v2081_v9, %v2080_v54  ;;  %v2067_v28 = vrot.slane %v2066_v15, 4 }
 0x366   : > { %v6969_v35 = vsub.f32 %v6929_v21, %v2017_v2  ;;  %v2015_v0 = vmul.f32 0.125, %v1932_v17  ;;  %v1953_v39 = vadd.f32 %v1952_v29, %v1951_v40  ;;  %v1938_v38 = vrot.slane %v1937_v24, 1  ;;  %v5001_v40 = vpop.f32.mrf.mxu1 }
 0x367   : > { %v2078_v22 = vrot.slane %v2077_v32, 1  ;;  %v2063_v3 = vadd.f32 %v2062_v34, %v2061_v42  ;;  %v2083_v14 = vrot.slane %v2082_v33, 2  ;;  %v2068_v23 = vadd.f32 %v2067_v28, %v2066_v15 }
 0x368   : > { %v2049_v49 = vmul.f32 %v6969_v35, %v6969_v35  ;;  %v6974_v18 = vsub.f32 %v6934_v58, %v2015_v0  ;;  %v2018_v56 = vmul.f32 0.125, %v1953_v39  ;;  %v1939_v1 = vadd.f32 %v1938_v38, %v1937_v24  ;;  %v1869_v39 = vpop.f32.mrf.mxu1 }
 0x369   : > { %v2079_v27 = vadd.f32 %v2078_v22, %v2077_v32  ;;  %v2064_v41 = vrot.slane %v2063_v3, 1  ;;  %v2084_v21 = vadd.f32 %v2083_v14, %v2082_v33  ;;  %v2069_v50 = vrot.slane %v2068_v23, 2 }
 0x36a   : > { %v2101_v45 = vsel %vm1897_vm0, %v2049_v49, 0.0  ;;  %v2047_v44 = vmul.f32 %v6974_v18, %v6974_v18  ;;  %v6980_v52 = vsub.f32 %v6939_v12, %v2018_v56  ;;  %v2016_v36 = vmul.f32 0.125, %v1939_v1 }
 0x36b   : > { %v2173_v10 = vmul.f32 0.125, %v2079_v27  ;;  %v2065_v25 = vadd.f32 %v2064_v41, %v2063_v3  ;;  %v2085_v58 = vrot.slane %v2084_v21, 1  ;;  %v2070_v26 = vadd.f32 %v2069_v50, %v2068_v23 }
 0x36c   : > { %v2102_v20 = vrot.slane %v2101_v45, 4  ;;  %v2087_v19 = vsel %vm1897_vm0, %v2047_v44, 0.0  ;;  %v2050_v46 = vmul.f32 %v6980_v52, %v6980_v52  ;;  %v6986_v47 = vsub.f32 %v6944_v5, %v2016_v36 }
 0x36d   : > { %v2189_v37 = vadd.f32 1e-05, %v2173_v10  ;;  %v2171_v59 = vmul.f32 0.125, %v2065_v25  ;;  %v2086_v61 = vadd.f32 %v2085_v58, %v2084_v21  ;;  %v2071_v12 = vrot.slane %v2070_v26, 1 }
 0x36e   : > { %v2103_v57 = vadd.f32 %v2102_v20, %v2101_v45  ;;  %v2088_v8 = vrot.slane %v2087_v19, 4  ;;  %v2108_v62 = vsel %vm1897_vm0, %v2050_v46, 0.0  ;;  %v2048_v51 = vmul.f32 %v6986_v47, %v6986_v47 }
 0x36f   : > { %5304 = vrsqrt.f32 %v2189_v37  ;;  %v2187_v55 = vadd.f32 1e-05, %v2171_v59  ;;  %v2174_v6 = vmul.f32 0.125, %v2086_v61  ;;  %v2072_v30 = vadd.f32 %v2071_v12, %v2070_v26 }
 0x370   : > { %v2104_v48 = vrot.slane %v2103_v57, 2  ;;  %v2089_v54 = vadd.f32 %v2088_v8, %v2087_v19  ;;  %v2109_v5 = vrot.slane %v2108_v62, 4  ;;  %v2094_v63 = vsel %vm1897_vm0, %v2048_v51, 0.0 }
 0x371   : > { %5306 = vrsqrt.f32 %v2187_v55  ;;  %v2190_v7 = vadd.f32 1e-05, %v2174_v6  ;;  %v2172_v4 = vmul.f32 0.125, %v2072_v30  ;;  %v2095_v42 = vrot.slane %v2094_v63, 4 }
 0x372   : > { %v2105_v9 = vadd.f32 %v2104_v48, %v2103_v57  ;;  %v2090_v2 = vrot.slane %v2089_v54, 2  ;;  %v2110_v15 = vadd.f32 %v2109_v5, %v2108_v62  ;;  %v6993_v17 = vadd.f32 %v5000_v43, %v6918_v53 }
 0x373   : > { %5308 = vrsqrt.f32 %v2190_v7  ;;  %v2188_v29 = vadd.f32 1e-05, %v2172_v4  ;;  %v2096_v24 = vadd.f32 %v2095_v42, %v2094_v63  ;;  %v6996_v32 = vadd.f32 %v6918_v53, %v1866_v11 }
 0x374   : > { %v2106_v34 = vrot.slane %v2105_v9, 1  ;;  %v2091_v33 = vadd.f32 %v2090_v2, %v2089_v54  ;;  %v2111_v28 = vrot.slane %v2110_v15, 2  ;;  %v1968_v0 = vsel %vm1897_vm0, %v6993_v17, 0.0 }
 0x375   : > { %5310 = vrsqrt.f32 %v2188_v29  ;;  %v2097_v38 = vrot.slane %v2096_v24, 2  ;;  %v1969_v22 = vrot.slane %v1968_v0, 4  ;;  %v1954_v3 = vsel %vm1897_vm0, %v6996_v32, 0.0  ;;  %v5004_v29 = vpop.f32.mrf.mxu1 }
 0x376   : > { %v2107_v14 = vadd.f32 %v2106_v34, %v2105_v9  ;;  %v2092_v23 = vrot.slane %v2091_v33, 1  ;;  %v2112_v49 = vadd.f32 %v2111_v28, %v2110_v15  ;;  %v1955_v56 = vrot.slane %v1954_v3, 4 }
 0x377   : > { %v2098_v1 = vadd.f32 %v2097_v38, %v2096_v24  ;;  %v1970_v43 = vadd.f32 %v1969_v22, %v1968_v0  ;;  %v7003_v27 = vadd.f32 %v5001_v40, %v6918_v53  ;;  %v7006_v41 = vadd.f32 %v6918_v53, %v1869_v39 }
 0x378   : > { %v2177_v21 = vmul.f32 0.125, %v2107_v14  ;;  %v2093_v50 = vadd.f32 %v2092_v23, %v2091_v33  ;;  %v2113_v45 = vrot.slane %v2112_v49, 1  ;;  %v1956_v44 = vadd.f32 %v1955_v56, %v1954_v3 }
 0x379   : > { %v2099_v36 = vrot.slane %v2098_v1, 1  ;;  %v1971_v10 = vrot.slane %v1970_v43, 2  ;;  %v1975_v25 = vsel %vm1897_vm0, %v7003_v27, 0.0  ;;  %v1961_v58 = vsel %vm1897_vm0, %v7006_v41, 0.0 }
 0x37a   : > { %v2193_v26 = vadd.f32 1e-05, %v2177_v21  ;;  %v2175_v20 = vmul.f32 0.125, %v2093_v50  ;;  %v2114_v19 = vadd.f32 %v2113_v45, %v2112_v49  ;;  %v1957_v46 = vrot.slane %v1956_v44, 2 }
 0x37b   : > { %v2100_v11 = vadd.f32 %v2099_v36, %v2098_v1  ;;  %v1972_v37 = vadd.f32 %v1971_v10, %v1970_v43  ;;  %v1976_v59 = vrot.slane %v1975_v25, 4  ;;  %v1962_v61 = vrot.slane %v1961_v58, 4  ;;  %v1882_v1 = vpop.f32.mrf.mxu1 }
 0x37c   : > { %v5305_v12 = vpop.eup %5304  ;;  %5312 = vrsqrt.f32 %v2193_v26  ;;  %v2191_v57 = vadd.f32 1e-05, %v2175_v20  ;;  %v2178_v8 = vmul.f32 0.125, %v2114_v19  ;;  %v1958_v62 = vadd.f32 %v1957_v46, %v1956_v44 }
 0x37d   : > { %v7013_v51 = vmul.f32 %v5305_v12, %v6946_v31  ;;  %v2176_v55 = vmul.f32 0.125, %v2100_v11  ;;  %v1973_v6 = vrot.slane %v1972_v37, 1  ;;  %v1977_v30 = vadd.f32 %v1976_v59, %v1975_v25 }
 0x37e   : > { %v5307_v48 = vpop.eup %5306  ;;  %5314 = vrsqrt.f32 %v2191_v57  ;;  %v2194_v54 = vadd.f32 1e-05, %v2178_v8  ;;  %v1959_v5 = vrot.slane %v1958_v62, 1  ;;  %v1963_v63 = vadd.f32 %v1962_v61, %v1961_v58 }
 0x37f   : > { %v2237_v40 = vmul.f32 0.5, %v7013_v51  ;;  %v7017_v7 = vmul.f32 %v5307_v48, %v6952_v13  ;;  %v2192_v4 = vadd.f32 1e-05, %v2176_v55  ;;  %v1974_v42 = vadd.f32 %v1973_v6, %v1972_v37 }
 0x380   : > { %v5309_v9 = vpop.eup %5308  ;;  %5316 = vrsqrt.f32 %v2194_v54  ;;  %v1960_v2 = vadd.f32 %v1959_v5, %v1958_v62  ;;  %v1978_v31 = vrot.slane %v1977_v30, 2  ;;  %v1964_v15 = vrot.slane %v1963_v63, 2 }
 0x381   : > { %v2255_v24 = vmul.f32 1.442695, %v2237_v40  ;;  %v2235_v34 = vmul.f32 0.5, %v7017_v7  ;;  %v7021_v33 = vmul.f32 %v5309_v9, %v6957_v60  ;;  %5318 = vrsqrt.f32 %v2192_v4 }
 0x382   : > { %v5311_v28 = vpop.eup %5310  ;;  %v2021_v0 = vmul.f32 0.125, %v1974_v42  ;;  %v2019_v39 = vmul.f32 0.125, %v1960_v2  ;;  %v1979_v13 = vadd.f32 %v1978_v31, %v1977_v30  ;;  %v1965_v38 = vadd.f32 %v1964_v15, %v1963_v63 }
 0x383   : > { %5320 = vpow2.f32 %v2255_v24  ;;  %v2251_v22 = vmul.f32 1.442695, %v2235_v34  ;;  %v2238_v3 = vmul.f32 0.5, %v7021_v33  ;;  %v7025_v14 = vmul.f32 %v5311_v28, %v6962_v16 }
 0x384   : > { %v7028_v23 = vsub.f32 %v6993_v17, %v2021_v0  ;;  %v7031_v49 = vsub.f32 %v6996_v32, %v2019_v39  ;;  %v1980_v60 = vrot.slane %v1979_v13, 1  ;;  %v1966_v56 = vrot.slane %v1965_v38, 1 }
 0x385   : > { %5322 = vpow2.f32 %v2251_v22  ;;  %v2257_v43 = vmul.f32 1.442695, %v2238_v3  ;;  %v2236_v21 = vmul.f32 0.5, %v7025_v14  ;;  %v7035_v50 = vadd.f32 %v5004_v29, %v6918_v53 }
 0x386   : > { %v2053_v16 = vmul.f32 %v7028_v23, %v7028_v23  ;;  %v2051_v17 = vmul.f32 %v7031_v49, %v7031_v49  ;;  %v1981_v45 = vadd.f32 %v1980_v60, %v1979_v13  ;;  %v1967_v44 = vadd.f32 %v1966_v56, %v1965_v38  ;;  %v5005_v38 = vpop.f32.mrf.mxu1 }
 0x387   : > { %5324 = vpow2.f32 %v2257_v43  ;;  %v2253_v32 = vmul.f32 1.442695, %v2236_v21  ;;  %v1996_v36 = vsel %vm1897_vm0, %v7035_v50, 0.0  ;;  %v7044_v10 = vadd.f32 %v6918_v53, %v1882_v1 }
 0x388   : > { %v2129_v25 = vsel %vm1897_vm0, %v2053_v16, 0.0  ;;  %v2115_v58 = vsel %vm1897_vm0, %v2051_v17, 0.0  ;;  %v2022_v26 = vmul.f32 0.125, %v1981_v45  ;;  %v2020_v20 = vmul.f32 0.125, %v1967_v44 }
 0x389   : > { %v5313_v19 = vpop.eup %5312  ;;  %5326 = vpow2.f32 %v2253_v32  ;;  %v2130_v46 = vrot.slane %v2129_v25, 4  ;;  %v2116_v11 = vrot.slane %v2115_v58, 4  ;;  %v1997_v37 = vrot.slane %v1996_v36, 4 }
 0x38a   : > { %v7049_v59 = vmul.f32 %v5313_v19, %v6969_v35  ;;  %v7052_v61 = vsub.f32 %v7003_v27, %v2022_v26  ;;  %v7055_v12 = vsub.f32 %v7006_v41, %v2020_v20  ;;  %v1982_v57 = vsel %vm1897_vm0, %v7044_v10, 0.0 }
 0x38b   : > { %v5315_v8 = vpop.eup %5314  ;;  %v2131_v62 = vadd.f32 %v2130_v46, %v2129_v25  ;;  %v2117_v55 = vadd.f32 %v2116_v11, %v2115_v58  ;;  %v1998_v6 = vadd.f32 %v1997_v37, %v1996_v36  ;;  %v1983_v30 = vrot.slane %v1982_v57, 4  ;;  %v1885_v58 = vpop.f32.mrf.mxu1 }
 0x38c   : > { %v2241_v48 = vmul.f32 0.5, %v7049_v59  ;;  %v7061_v54 = vmul.f32 %v5315_v8, %v6974_v18  ;;  %v2054_v35 = vmul.f32 %v7052_v61, %v7052_v61  ;;  %v2052_v27 = vmul.f32 %v7055_v12, %v7055_v12  ;;  %v2332_v46 = vpop.permute.xlu0 %2331 }
 0x38d   : > { %v5317_v41 = vpop.eup %5316  ;;  %v2132_v5 = vrot.slane %v2131_v62, 2  ;;  %v2118_v63 = vrot.slane %v2117_v55, 2  ;;  %v1999_v40 = vrot.slane %v1998_v6, 2  ;;  %v1984_v4 = vadd.f32 %v1983_v30, %v1982_v57 }
 0x38e   : > { %v5319_v42 = vpop.eup %5318  ;;  %v2263_v9 = vmul.f32 1.442695, %v2241_v48  ;;  %v2239_v2 = vmul.f32 0.5, %v7061_v54  ;;  %v7069_v31 = vmul.f32 %v5317_v41, %v6980_v52  ;;  %v2136_v18 = vsel %vm1897_vm0, %v2054_v35, 0.0  ;;  %v2336_v35 = vpop.permute.xlu1 %2335 }
 0x38f   : > { %v7073_v15 = vmul.f32 %v5319_v42, %v6986_v47  ;;  %v2133_v29 = vadd.f32 %v2132_v5, %v2131_v62  ;;  %v2119_v24 = vadd.f32 %v2118_v63, %v2117_v55  ;;  %v2137_v34 = vrot.slane %v2136_v18, 4 }
 0x390   : > { %8619 = vst [vmem:[#allocation18_spill] sm:$0xff] %v7069_v31  ;;  %v7075_v28 = vpop.eup %5320  ;;  %5328 = vpow2.f32 %v2263_v9  ;;  %v2259_v0 = vmul.f32 1.442695, %v2239_v2  ;;  %v2242_v39 = vmul.f32 0.5, %v7069_v31  ;;  %v2122_v13 = vsel %vm1897_vm0, %v2052_v27, 0.0 }
 0x391   : > { %v2240_v52 = vmul.f32 0.5, %v7073_v15  ;;  %v2134_v22 = vrot.slane %v2133_v29, 1  ;;  %v2120_v3 = vrot.slane %v2119_v24, 1  ;;  %v2138_v60 = vadd.f32 %v2137_v34, %v2136_v18  ;;  %v2334_v34 = vpop.permute.xlu0 %2333 }
 0x392   : > { %v7080_v56 = vpop.eup %5322  ;;  %5330 = vpow2.f32 %v2259_v0  ;;  %v2265_v47 = vmul.f32 1.442695, %v2242_v39  ;;  %v2123_v1 = vrot.slane %v2122_v13, 4  ;;  %v2000_v43 = vadd.f32 %v1999_v40, %v1998_v6 }
 0x393   : > { %v2261_v21 = vmul.f32 1.442695, %v2240_v52  ;;  %v2135_v16 = vadd.f32 %v2134_v22, %v2133_v29  ;;  %v2121_v17 = vadd.f32 %v2120_v3, %v2119_v24  ;;  %v2139_v45 = vrot.slane %v2138_v60, 2 }
 0x394   : > { %v7082_v44 = vpop.eup %5324  ;;  %5332 = vpow2.f32 %v2265_v47  ;;  %v2124_v32 = vadd.f32 %v2123_v1, %v2122_v13  ;;  %v2001_v36 = vrot.slane %v2000_v43, 1  ;;  %v1985_v25 = vrot.slane %v1984_v4, 2  ;;  %v2338_v47 = vpop.permute.xlu1 %2337 }
 0x395   : > { %5334 = vpow2.f32 %v2261_v21  ;;  %v2181_v26 = vmul.f32 0.125, %v2135_v16  ;;  %v2179_v20 = vmul.f32 0.125, %v2121_v17  ;;  %v2140_v19 = vadd.f32 %v2139_v45, %v2138_v60 }
 0x396   : > { %v7084_v11 = vpop.eup %5326  ;;  %v2125_v37 = vrot.slane %v2124_v32, 2  ;;  %v2002_v57 = vadd.f32 %v2001_v36, %v2000_v43  ;;  %v1986_v8 = vadd.f32 %v1985_v25, %v1984_v4  ;;  %v7087_v62 = vadd.f32 %v5005_v38, %v6918_v53  ;;  %v2340_v36 = vpop.permute.xlu0 %2339 }
 0x397   : > { %v2197_v55 = vadd.f32 1e-05, %v2181_v26  ;;  %v2195_v6 = vadd.f32 1e-05, %v2179_v20  ;;  %v2141_v30 = vrot.slane %v2140_v19, 1  ;;  %v7090_v48 = vadd.f32 %v6918_v53, %v1885_v58 }
 0x398   : > { %v2126_v27 = vadd.f32 %v2125_v37, %v2124_v32  ;;  %v2025_v41 = vmul.f32 0.125, %v2002_v57  ;;  %v1987_v5 = vrot.slane %v1986_v8, 1  ;;  %v2003_v63 = vsel %vm1897_vm0, %v7087_v62, 0.0  ;;  %v2342_v37 = vpop.permute.xlu1 %2341 }
 0x399   : > { %5336 = vrsqrt.f32 %v2197_v55  ;;  %v2142_v40 = vadd.f32 %v2141_v30, %v2140_v19  ;;  %v2004_v42 = vrot.slane %v2003_v63, 4  ;;  %v1989_v4 = vsel %vm1897_vm0, %v7090_v48, 0.0 }
 0x39a   : > { %5338 = vrsqrt.f32 %v2195_v6  ;;  %v2127_v9 = vrot.slane %v2126_v27, 1  ;;  %v7097_v2 = vsub.f32 %v7035_v50, %v2025_v41  ;;  %v1988_v53 = vadd.f32 %v1987_v5, %v1986_v8 }
 0x39b   : > { %v2182_v18 = vmul.f32 0.125, %v2142_v40  ;;  %v2005_v29 = vadd.f32 %v2004_v42, %v2003_v63  ;;  %v1990_v24 = vrot.slane %v1989_v4, 4  ;;  %v2379_v38 = vmul.f32 %v7080_v56, %v2332_v46 }
 0x39c   : > { %v2128_v0 = vadd.f32 %v2127_v9, %v2126_v27  ;;  %v2057_v39 = vmul.f32 %v7097_v2, %v7097_v2  ;;  %v2023_v13 = vmul.f32 0.125, %v1988_v53  ;;  %v2380_v21 = vmul.f32 %v7084_v11, %v2334_v34  ;;  %v2344_v9 = vpop.permute.xlu0 %2343 }
 0x39d   : > { %v7102_v52 = vpop.eup %5328  ;;  %v2198_v22 = vadd.f32 1e-05, %v2182_v18  ;;  %v2006_v3 = vrot.slane %v2005_v29, 2  ;;  %v1991_v60 = vadd.f32 %v1990_v24, %v1989_v4  ;;  %2411 = vrot.lane.b32.xlu0 %v2379_v38, %s5878_s27  ;;  %v2381_v26 = vmul.f32 %v7075_v28, %v2336_v35 }
 0x39e   : > { %v2180_v50 = vmul.f32 0.125, %v2128_v0  ;;  %v2157_v1 = vsel %vm1897_vm0, %v2057_v39, 0.0  ;;  %v7106_v43 = vsub.f32 %v7044_v10, %v2023_v13  ;;  %2413 = vrot.lane.b32.xlu1 %v2380_v21, %s5878_s27  ;;  %v2382_v55 = vmul.f32 %v7082_v44, %v2338_v47  ;;  %v2346_v39 = vpop.permute.xlu1 %2345 }
 0x39f   : > { %v7110_v16 = vpop.eup %5330  ;;  %5340 = vrsqrt.f32 %v2198_v22  ;;  %v2158_v17 = vrot.slane %v2157_v1, 4  ;;  %v2007_v45 = vadd.f32 %v2006_v3, %v2005_v29  ;;  %v1992_v32 = vrot.slane %v1991_v60, 2 }
 0x3a0   : > { %v2196_v25 = vadd.f32 1e-05, %v2180_v50  ;;  %v2055_v58 = vmul.f32 %v7106_v43, %v7106_v43  ;;  %v2383_v6 = vmul.f32 %v7110_v16, %v2340_v36  ;;  %v2385_v22 = vmul.f32 %v7102_v52, %v2344_v9 }
 0x3a1   : > { %v7116_v10 = vpop.eup %5332  ;;  %v2159_v20 = vadd.f32 %v2158_v17, %v2157_v1  ;;  %v2008_v19 = vrot.slane %v2007_v45, 1  ;;  %v1993_v46 = vadd.f32 %v1992_v32, %v1991_v60  ;;  %2415 = vrot.lane.b32.xlu0 %v2381_v26, %s5878_s27 }
 0x3a2   : > { %8620 = vst [vmem:[#allocation19_spill] sm:$0xff] %v7116_v10  ;;  %v7118_v57 = vpop.eup %5334  ;;  %5342 = vrsqrt.f32 %v2196_v25  ;;  %v2143_v8 = vsel %vm1897_vm0, %v2055_v58, 0.0  ;;  %2417 = vrot.lane.b32.xlu1 %v2382_v55, %s5878_s27 }
 0x3a3   : > { %v2160_v30 = vrot.slane %v2159_v20, 2  ;;  %v2144_v35 = vrot.slane %v2143_v8, 4  ;;  %v2009_v27 = vadd.f32 %v2008_v19, %v2007_v45  ;;  %v1994_v41 = vrot.slane %v1993_v46, 1 }
 0x3a4   : > { %v2384_v5 = vmul.f32 %v7118_v57, %v2342_v37 }
 0x3a5   : > { %v2161_v63 = vadd.f32 %v2160_v30, %v2159_v20  ;;  %v2145_v40 = vadd.f32 %v2144_v35, %v2143_v8  ;;  %v2026_v42 = vmul.f32 0.125, %v2009_v27  ;;  %v1995_v4 = vadd.f32 %v1994_v41, %v1993_v46  ;;  %2419 = vrot.lane.b32.xlu0 %v2383_v6, %s5878_s27 }
 0x3a6   : > { %v5337_v53 = vpop.eup %5336  ;;  %2421 = vrot.lane.b32.xlu1 %v2384_v5, %s5878_s27 }
 0x3a7   : > { %v5339_v18 = vpop.eup %5338  ;;  %v7128_v29 = vmul.f32 %v5337_v53, %v7028_v23  ;;  %v2162_v24 = vrot.slane %v2161_v63, 1  ;;  %v2146_v34 = vrot.slane %v2145_v40, 2  ;;  %v7131_v0 = vsub.f32 %v7087_v62, %v2026_v42 }
 0x3a8   : > { %v7134_v13 = vmul.f32 %v5339_v18, %v7031_v49  ;;  %v2024_v38 = vmul.f32 0.125, %v1995_v4  ;;  %v2386_v49 = vmul.f32 %v7116_v10, %v2346_v39 }
 0x3a9   : > { %8621 = vst [vmem:[#allocation20_spill] sm:$0xff] %v7128_v29  ;;  %v2245_v3 = vmul.f32 0.5, %v7128_v29  ;;  %v2163_v60 = vadd.f32 %v2162_v24, %v2161_v63  ;;  %v2147_v47 = vadd.f32 %v2146_v34, %v2145_v40  ;;  %v2058_v23 = vmul.f32 %v7131_v0, %v7131_v0  ;;  %2423 = vrot.lane.b32.xlu0 %v2385_v22, %s5878_s27  ;;  %v2348_v63 = vpop.permute.xlu0 %2347 }
 0x3aa   : > { %8622 = vst [vmem:[#allocation21_spill] sm:$0xff] %v7134_v13  ;;  %v2243_v50 = vmul.f32 0.5, %v7134_v13  ;;  %v7143_v62 = vsub.f32 %v7090_v48, %v2024_v38  ;;  %2425 = vrot.lane.b32.xlu1 %v2386_v49, %s5878_s27 }
 0x3ab   : > { %v2271_v1 = vmul.f32 1.442695, %v2245_v3  ;;  %v2185_v21 = vmul.f32 0.125, %v2163_v60  ;;  %v2148_v17 = vrot.slane %v2147_v47, 1  ;;  %v2164_v45 = vsel %vm1897_vm0, %v2058_v23, 0.0 }
 0x3ac   : > { %v5341_v32 = vpop.eup %5340  ;;  %v2267_v36 = vmul.f32 1.442695, %v2243_v50  ;;  %v2165_v25 = vrot.slane %v2164_v45, 4  ;;  %v2056_v58 = vmul.f32 %v7143_v62, %v7143_v62 }
 0x3ad   : > { %5344 = vpow2.f32 %v2271_v1  ;;  %v7152_v48 = vmul.f32 %v5341_v32, %v7052_v61  ;;  %v2201_v26 = vadd.f32 1e-05, %v2185_v21  ;;  %v2149_v20 = vadd.f32 %v2148_v17, %v2147_v47  ;;  %v2350_v17 = vpop.permute.xlu1 %2349 }
 0x3ae   : > { %5346 = vpow2.f32 %v2267_v36  ;;  %v2166_v19 = vadd.f32 %v2165_v25, %v2164_v45  ;;  %v2150_v46 = vsel %vm1897_vm0, %v2056_v58, 0.0 }
 0x3af   : > { %8623 = vst [vmem:[#allocation22_spill] sm:$0xff] %v7152_v48  ;;  %v5343_v37 = vpop.eup %5342  ;;  %5348 = vrsqrt.f32 %v2201_v26  ;;  %v2183_v8 = vmul.f32 0.125, %v2149_v20  ;;  %v2151_v55 = vrot.slane %v2150_v46, 4  ;;  %v2246_v6 = vmul.f32 0.5, %v7152_v48 }
 0x3b0   : > { %v7157_v30 = vmul.f32 %v5343_v37, %v7055_v12  ;;  %v2167_v35 = vrot.slane %v2166_v19, 2  ;;  %v2352_v12 = vpop.permute.xlu0 %2351 }
 0x3b1   : > { %v2199_v27 = vadd.f32 1e-05, %v2183_v8  ;;  %v2152_v41 = vadd.f32 %v2151_v55, %v2150_v46  ;;  %v2273_v42 = vmul.f32 1.442695, %v2246_v6  ;;  %v2354_v20 = vpop.permute.xlu1 %2353 }
 0x3b2   : > { %8624 = vst [vmem:[#allocation23_spill] sm:$0xff] %v7157_v30  ;;  %v2244_v61 = vmul.f32 0.5, %v7157_v30  ;;  %v2168_v5 = vadd.f32 %v2167_v35, %v2166_v19 }
 0x3b3   : > { %v2153_v40 = vrot.slane %v2152_v41, 2  ;;  %5350 = vrsqrt.f32 %v2199_v27 }
 0x3b4   : > { %v2269_v4 = vmul.f32 1.442695, %v2244_v61  ;;  %v2169_v9 = vrot.slane %v2168_v5, 1  ;;  %v2356_v37 = vpop.permute.xlu0 %2355 }
 0x3b5   : > { %v2154_v53 = vadd.f32 %v2153_v40, %v2152_v41 }
 0x3b6   : > { %5352 = vpow2.f32 %v2269_v4  ;;  %v2170_v18 = vadd.f32 %v2169_v9, %v2168_v5 }
 0x3b7   : > { %v2155_v24 = vrot.slane %v2154_v53, 1  ;;  %5354 = vpow2.f32 %v2273_v42 }
 0x3b8   : > { %v2186_v34 = vmul.f32 0.125, %v2170_v18  ;;  %v2360_v27 = vpop.permute.xlu0 %2359 }
 0x3b9   : > { %v2156_v39 = vadd.f32 %v2155_v24, %v2154_v53 }
 0x3ba   : > { %v7160_v38 = vpop.eup %5344  ;;  %v2202_v22 = vadd.f32 1e-05, %v2186_v34 }
 0x3bb   : > { %8625 = vst [vmem:[#allocation24_spill] sm:$0xff] %v7160_v38  ;;  %v7162_v3 = vpop.eup %5346  ;;  %v2184_v60 = vmul.f32 0.125, %v2156_v39  ;;  %v2389_v47 = vmul.f32 %v7160_v38, %v2352_v12 }
 0x3bc   : > { %8626 = vst [vmem:[#allocation25_spill] sm:$0xff] %v7162_v3  ;;  %v5349_v23 = vpop.eup %5348  ;;  %5356 = vrsqrt.f32 %v2202_v22  ;;  %v2387_v21 = vmul.f32 %v7162_v3, %v2348_v63 }
 0x3bd   : > { %v7166_v50 = vmul.f32 %v5349_v23, %v7097_v2  ;;  %v2200_v49 = vadd.f32 1e-05, %v2184_v60  ;;  %2431 = vrot.lane.b32.xlu0 %v2389_v47, %s5878_s27 }
 0x3bf   : > { %8627 = vst [vmem:[#allocation26_spill] sm:$0xff] %v7166_v50  ;;  %v2249_v1 = vmul.f32 0.5, %v7166_v50  ;;  %5358 = vrsqrt.f32 %v2200_v49 }
 0x3c0   : > { %v5351_v45 = vpop.eup %5350 }
 0x3c1   : > { %v2279_v32 = vmul.f32 1.442695, %v2249_v1  ;;  %2427 = vrot.lane.b32.xlu0 %v2387_v21, %s5878_s27  ;;  %v7173_v36 = vmul.f32 %v5351_v45, %v7106_v43 }
 0x3c3   : > { %8628 = vst [vmem:[#allocation27_spill] sm:$0xff] %v7173_v36  ;;  %v7175_v25 = vpop.eup %5352  ;;  %5360 = vpow2.f32 %v2279_v32  ;;  %v2247_v2 = vmul.f32 0.5, %v7173_v36 }
 0x3c4   : > { %8629 = vst [vmem:[#allocation28_spill] sm:$0xff] %v7175_v25  ;;  %v2388_v58 = vmul.f32 %v7175_v25, %v2350_v17  ;;  %v7179_v26 = vpop.eup %5354 }
 0x3c5   : > { %8630 = vst [vmem:[#allocation29_spill] sm:$0xff] %v7179_v26  ;;  %v2275_v19 = vmul.f32 1.442695, %v2247_v2  ;;  %v2390_v46 = vmul.f32 %v7179_v26, %v2354_v20 }
 0x3c6   : > { %2429 = vrot.lane.b32.xlu1 %v2388_v58, %s5878_s27 }
 0x3c7   : > { %5362 = vpow2.f32 %v2275_v19 }
 0x3c9   : > { %v5357_v8 = vpop.eup %5356 }
 0x3ca   : > { %v7184_v43 = vmul.f32 %v5357_v8, %v7131_v0  ;;  %2433 = vrot.lane.b32.xlu1 %v2390_v46, %s5878_s27 }
 0x3cc   : > { %8631 = vst [vmem:[#allocation30_spill] sm:$0xff] %v7184_v43  ;;  %v5359_v55 = vpop.eup %5358  ;;  %v2250_v6 = vmul.f32 0.5, %v7184_v43 }
 0x3cd   : > { %v7189_v35 = vmul.f32 %v5359_v55, %v7143_v62  ;;  %v2358_v62 = vpop.permute.xlu1 %2357 }
 0x3ce   : > { %v2281_v5 = vmul.f32 1.442695, %v2250_v6 }
 0x3cf   : > { %8632 = vst [vmem:[#allocation31_spill] sm:$0xff] %v7189_v35  ;;  %v2248_v41 = vmul.f32 0.5, %v7189_v35 }
 0x3d0   : > { %v7192_v61 = vpop.eup %5360 }
 0x3d1   : > { %8633 = vst [vmem:[#allocation32_spill] sm:$0xff] %v7192_v61  ;;  %v2277_v63 = vmul.f32 1.442695, %v2248_v41  ;;  %v2393_v40 = vmul.f32 %v7192_v61, %v2360_v27  ;;  %v2362_v18 = vpop.permute.xlu1 %2361 }
 0x3d3   : > { %5364 = vpow2.f32 %v2277_v63  ;;  %2439 = vrot.lane.b32.xlu0 %v2393_v40, %s5878_s27 }
 0x3d4   : > { %v7196_v0 = vpop.eup %5362  ;;  %5366 = vpow2.f32 %v2281_v5 }
 0x3d5   : > { %8634 = vst [vmem:[#allocation33_spill] sm:$0xff] %v7196_v0  ;;  %v2391_v42 = vmul.f32 %v7196_v0, %v2356_v37 }
 0x3d7   : > { %2435 = vrot.lane.b32.xlu0 %v2391_v42, %s5878_s27 }
 0x3e0   : > { %v7200_v4 = vpop.eup %5364 }
 0x3e1   : > { %8635 = vst [vmem:[#allocation34_spill] sm:$0xff] %v7200_v4  ;;  %v2392_v9 = vmul.f32 %v7200_v4, %v2358_v62  ;;  %v7203_v53 = vpop.eup %5366 }
 0x3e2   : > { %8636 = vst [vmem:[#allocation35_spill] sm:$0xff] %v7203_v53  ;;  %v2394_v24 = vmul.f32 %v7203_v53, %v2362_v18 }
 0x3e3   : > { %2437 = vrot.lane.b32.xlu1 %v2392_v9, %s5878_s27 }
 0x3e7   : > { %2441 = vrot.lane.b32.xlu1 %v2394_v24, %s5878_s27 }
 0x40f   : > { %v2412_v34 = vpop.permute.xlu0 %2411 }
 0x410   : > { %v7209_v12 = vadd.f32 %v2412_v34, %v7017_v7  ;;  %v2414_v39 = vpop.permute.xlu1 %2413 }
 0x411   : > { %v7212_v22 = vadd.f32 %v2414_v39, %v7025_v14 }
 0x412   : > { %v2476_v60 = vsel %vm2475_vm1, %v7209_v12, -inf }
 0x413   : > { %2477 = vmax.xlane.f32.xlu0 %v2476_v60  ;;  %v2416_v47 = vpop.permute.xlu0 %2415  ;;  %v2479_v49 = vsel %vm2475_vm1, %v7212_v22, -inf }
 0x414   : > { %v7217_v23 = vadd.f32 %v2416_v47, %v7013_v51  ;;  %2480 = vmax.xlane.f32.xlu1 %v2479_v49  ;;  %v2418_v1 = vpop.permute.xlu1 %2417 }
 0x415   : > { %v7222_v21 = vadd.f32 %v2418_v1, %v7021_v33 }
 0x416   : > { %v2482_v17 = vsel %vm2475_vm1, %v7217_v23, -inf }
 0x417   : > { %2483 = vmax.xlane.f32.xlu0 %v2482_v17  ;;  %v2420_v45 = vpop.permute.xlu0 %2419  ;;  %v2485_v32 = vsel %vm2475_vm1, %v7222_v21, -inf }
 0x418   : > { %v7229_v2 = vadd.f32 %v2420_v45, %v7061_v54  ;;  %v2422_v58 = vpop.permute.xlu1 %2421 }
 0x419   : > { %v7232_v20 = vadd.f32 %v2422_v58, %v7073_v15 }
 0x41a   : > { %v2488_v19 = vsel %vm2475_vm1, %v7229_v2, -inf }
 0x41b   : > { %2486 = vmax.xlane.f32.xlu0 %v2485_v32  ;;  %2489 = vmax.xlane.f32.xlu1 %v2488_v19  ;;  %v2424_v46 = vpop.permute.xlu0 %2423  ;;  %v2491_v8 = vsel %vm2475_vm1, %v7232_v20, -inf }
 0x41c   : > { %v7237_v37 = vadd.f32 %v2424_v46, %v7049_v59  ;;  %v2426_v55 = vpop.permute.xlu1 %2425 }
 0x41d   : > { %v7242_v6 = vadd.f32 %v2426_v55, %v7069_v31 }
 0x41e   : > { %v2494_v27 = vsel %vm2475_vm1, %v7237_v37, -inf }
 0x41f   : > { %2492 = vmax.xlane.f32.xlu0 %v2491_v8  ;;  %2495 = vmax.xlane.f32.xlu1 %v2494_v27  ;;  %v2497_v41 = vsel %vm2475_vm1, %v7242_v6, -inf }
 0x423   : > { %2498 = vmax.xlane.f32.xlu0 %v2497_v41 }
 0x42f   : > { %v2432_v5 = vpop.permute.xlu0 %2431 }
 0x430   : > { %v7252_v42 = vadd.f32 %v2432_v5, %v7128_v29 }
 0x432   : > { %v2506_v24 = vsel %vm2475_vm1, %v7252_v42, -inf }
 0x433   : > { %v2428_v63 = vpop.permute.xlu0 %2427 }
 0x434   : > { %v7249_v40 = vadd.f32 %v2428_v63, %v7134_v13 }
 0x436   : > { %v2500_v62 = vsel %vm2475_vm1, %v7249_v40, -inf }
 0x437   : > { %2501 = vmax.xlane.f32.xlu1 %v2500_v62 }
 0x438   : > { %v2430_v9 = vpop.permute.xlu1 %2429 }
 0x439   : > { %v7257_v18 = vadd.f32 %v2430_v9, %v7157_v30 }
 0x43b   : > { %v2503_v34 = vsel %vm2475_vm1, %v7257_v18, -inf  ;;  %2507 = vmax.xlane.f32.xlu1 %v2506_v24 }
 0x43c   : > { %v2434_v39 = vpop.permute.xlu1 %2433  ;;  %2504 = vmax.xlane.f32.xlu0 %v2503_v34 }
 0x43d   : > { %v7264_v60 = vadd.f32 %v2434_v39, %v7152_v48 }
 0x43f   : > { %v2509_v47 = vsel %vm2475_vm1, %v7264_v60, -inf }
 0x440   : > { %2510 = vmax.xlane.f32.xlu0 %v2509_v47 }
 0x445   : > { %v2440_v49 = vpop.permute.xlu0 %2439 }
 0x446   : > { %v7272_v45 = vadd.f32 %v2440_v49, %v7166_v50 }
 0x448   : > { %v2518_v58 = vsel %vm2475_vm1, %v7272_v45, -inf }
 0x449   : > { %v2436_v1 = vpop.permute.xlu0 %2435 }
 0x44a   : > { %v7269_v17 = vadd.f32 %v2436_v1, %v7173_v36 }
 0x44c   : > { %v2512_v32 = vsel %vm2475_vm1, %v7269_v17, -inf }
 0x44d   : > { %2513 = vmax.xlane.f32.xlu1 %v2512_v32 }
 0x451   : > { %2519 = vmax.xlane.f32.xlu1 %v2518_v58 }
 0x455   : > { %v2438_v19 = vpop.permute.xlu1 %2437 }
 0x456   : > { %v7279_v46 = vadd.f32 %v2438_v19, %v7189_v35 }
 0x458   : > { %v2515_v8 = vsel %vm2475_vm1, %v7279_v46, -inf }
 0x459   : > { %v2442_v55 = vpop.permute.xlu1 %2441  ;;  %2516 = vmax.xlane.f32.xlu0 %v2515_v8 }
 0x45a   : > { %v7284_v27 = vadd.f32 %v2442_v55, %v7184_v43 }
 0x45c   : > { %v2521_v41 = vsel %vm2475_vm1, %v7284_v27, -inf }
 0x45d   : > { %2522 = vmax.xlane.f32.xlu0 %v2521_v41 }
 0x49c   : > { %v2478_v5 = vpop.xlane.xlu0 %2477 }
 0x49d   : > { %v2524_v63 = vsub.f32 %v7209_v12, %v2478_v5  ;;  %v2481_v62 = vpop.xlane.xlu1 %2480 }
 0x49e   : > { %v2525_v24 = vsub.f32 %v7212_v22, %v2481_v62  ;;  %v5150_v22 = vld [vmem:[%s8513_s10 + $0x8] sm:$0xff]  }
 0x49f   : > { %v2540_v9 = vmul.f32 1.442695, %v2524_v63  ;;  %5006 = vmatprep.subr.bf16.mxu0 %v5150_v22 }
 0x4a0   : > { %v2484_v34 = vpop.xlane.xlu0 %2483  ;;  %v2542_v39 = vmul.f32 1.442695, %v2525_v24  ;;  %5007 = vmatpush3.bf16.msra.mxu0 %v5150_v22 }
 0x4a1   : > { %5368 = vpow2.f32 %v2540_v9  ;;  %v2526_v47 = vsub.f32 %v7217_v23, %v2484_v34 }
 0x4a2   : > { %5370 = vpow2.f32 %v2542_v39 }
 0x4a3   : > { %v2544_v49 = vmul.f32 1.442695, %v2526_v47 }
 0x4a4   : > { %v2487_v1 = vpop.xlane.xlu0 %2486  ;;  %v2490_v32 = vpop.xlane.xlu1 %2489 }
 0x4a5   : > { %5372 = vpow2.f32 %v2544_v49  ;;  %v2527_v58 = vsub.f32 %v7222_v21, %v2487_v1  ;;  %v2528_v19 = vsub.f32 %v7229_v2, %v2490_v32 }
 0x4a7   : > { %v2546_v8 = vmul.f32 1.442695, %v2527_v58  ;;  %v2548_v12 = vmul.f32 1.442695, %v2528_v19 }
 0x4a8   : > { %v2496_v55 = vpop.xlane.xlu1 %2495  ;;  %v2493_v41 = vpop.xlane.xlu0 %2492 }
 0x4a9   : > { %5374 = vpow2.f32 %v2546_v8  ;;  %v2530_v23 = vsub.f32 %v7237_v37, %v2496_v55  ;;  %v2529_v5 = vsub.f32 %v7232_v20, %v2493_v41 }
 0x4aa   : > { %5376 = vpow2.f32 %v2548_v12 }
 0x4ab   : > { %v2552_v63 = vmul.f32 1.442695, %v2530_v23  ;;  %v2550_v21 = vmul.f32 1.442695, %v2529_v5 }
 0x4ac   : > { %v2499_v62 = vpop.xlane.xlu0 %2498 }
 0x4ad   : > { %5378 = vpow2.f32 %v2552_v63  ;;  %v2531_v2 = vsub.f32 %v7242_v6, %v2499_v62 }
 0x4ae   : > { %v7299_v9 = vpop.eup %5368  ;;  %5380 = vpow2.f32 %v2550_v21 }
 0x4af   : > { %v2572_v24 = vsel %vm2475_vm1, %v7299_v9, 0.0  ;;  %v2554_v34 = vmul.f32 1.442695, %v2531_v2  ;;  %v7303_v39 = vpop.eup %5370 }
 0x4b0   : > { %2573 = vadd.xlane.f32.xlu1 %v2572_v24  ;;  %v2575_v20 = vsel %vm2475_vm1, %v7303_v39, 0.0 }
 0x4b1   : > { %5382 = vpow2.f32 %v2554_v34  ;;  %2576 = vadd.xlane.f32.xlu0 %v2575_v20 }
 0x4b2   : > { %v7307_v37 = vpop.eup %5372 }
 0x4b3   : > { %v2578_v6 = vsel %vm2475_vm1, %v7307_v37, 0.0 }
 0x4b4   : > { %2579 = vadd.xlane.f32.xlu1 %v2578_v6 }
 0x4b6   : > { %v7311_v47 = vpop.eup %5374 }
 0x4b7   : > { %v7313_v49 = vpop.eup %5376  ;;  %v2581_v1 = vsel %vm2475_vm1, %v7311_v47, 0.0 }
 0x4b8   : > { %2582 = vadd.xlane.f32.xlu0 %v2581_v1  ;;  %v2584_v32 = vsel %vm2475_vm1, %v7313_v49, 0.0 }
 0x4b9   : > { %2585 = vadd.xlane.f32.xlu1 %v2584_v32 }
 0x4ba   : > { %v7319_v58 = vpop.eup %5378 }
 0x4bb   : > { %v7321_v19 = vpop.eup %5380  ;;  %v2590_v8 = vsel %vm2475_vm1, %v7319_v58, 0.0 }
 0x4bc   : > { %v2587_v12 = vsel %vm2475_vm1, %v7321_v19, 0.0 }
 0x4bd   : > { %2591 = vadd.xlane.f32.xlu1 %v2590_v8  ;;  %2588 = vadd.xlane.f32.xlu0 %v2587_v12 }
 0x4be   : > { %v7327_v22 = vpop.eup %5382 }
 0x4bf   : > { %v2593_v41 = vsel %vm2475_vm1, %v7327_v22, 0.0 }
 0x4c0   : > { %v2502_v55 = vpop.xlane.xlu1 %2501 }
 0x4c1   : > { %v2532_v23 = vsub.f32 %v7249_v40, %v2502_v55  ;;  %2594 = vadd.xlane.f32.xlu0 %v2593_v41  ;;  %v5151_v40 = vld [vmem:[%s8513_s10] sm:$0xff]  }
 0x4c2   : > { %5008 = vmatprep.subr.bf16.mxu0 %v5151_v40 }
 0x4c3   : > { %v2556_v5 = vmul.f32 1.442695, %v2532_v23  ;;  %5009 = vmatpush3.bf16.msra.mxu0 %v5151_v40 }
 0x4c4   : > { %v2508_v63 = vpop.xlane.xlu1 %2507 }
 0x4c5   : > { %5384 = vpow2.f32 %v2556_v5  ;;  %v2505_v21 = vpop.xlane.xlu0 %2504  ;;  %v2534_v62 = vsub.f32 %v7252_v42, %v2508_v63 }
 0x4c6   : > { %v2533_v2 = vsub.f32 %v7257_v18, %v2505_v21 }
 0x4c7   : > { %v2560_v24 = vmul.f32 1.442695, %v2534_v62 }
 0x4c8   : > { %v2558_v34 = vmul.f32 1.442695, %v2533_v2 }
 0x4c9   : > { %5386 = vpow2.f32 %v2560_v24  ;;  %v2511_v20 = vpop.xlane.xlu0 %2510 }
 0x4ca   : > { %5388 = vpow2.f32 %v2558_v34  ;;  %v2535_v6 = vsub.f32 %v7264_v60, %v2511_v20 }
 0x4cc   : > { %v2562_v1 = vmul.f32 1.442695, %v2535_v6 }
 0x4ce   : > { %5390 = vpow2.f32 %v2562_v1 }
 0x4d2   : > { %v7338_v32 = vpop.eup %5384 }
 0x4d3   : > { %v2596_v42 = vsel %vm2475_vm1, %v7338_v32, 0.0 }
 0x4d4   : > { %2597 = vadd.xlane.f32.xlu1 %v2596_v42 }
 0x4d6   : > { %v7342_v18 = vpop.eup %5386  ;;  %v2514_v12 = vpop.xlane.xlu1 %2513 }
 0x4d7   : > { %v7344_v8 = vpop.eup %5388  ;;  %v2602_v60 = vsel %vm2475_vm1, %v7342_v18, 0.0  ;;  %v2536_v55 = vsub.f32 %v7269_v17, %v2514_v12 }
 0x4d8   : > { %v2599_v41 = vsel %vm2475_vm1, %v7344_v8, 0.0  ;;  %2603 = vadd.xlane.f32.xlu1 %v2602_v60 }
 0x4d9   : > { %2600 = vadd.xlane.f32.xlu0 %v2599_v41  ;;  %v2564_v23 = vmul.f32 1.442695, %v2536_v55  ;;  %v4194_v41 = vmul.f32 %v7017_v7, %v7017_v7 }
 0x4da   : > { %v2520_v63 = vpop.xlane.xlu1 %2519 }
 0x4db   : > { %v7351_v5 = vpop.eup %5390  ;;  %5392 = vpow2.f32 %v2564_v23  ;;  %v2538_v21 = vsub.f32 %v7272_v45, %v2520_v63  ;;  %v4210_v23 = vmul.f32 1.0050251, %v4194_v41  ;;  %v4196_v63 = vmul.f32 %v7013_v51, %v7013_v51 }
 0x4dc   : > { %v2605_v62 = vsel %vm2475_vm1, %v7351_v5, 0.0 }
 0x4dd   : > { %2606 = vadd.xlane.f32.xlu0 %v2605_v62  ;;  %v2568_v2 = vmul.f32 1.442695, %v2538_v21  ;;  %v4212_v21 = vmul.f32 1.0050251, %v4196_v63  ;;  %v4197_v62 = vmul.f32 %v7021_v33, %v7021_v33 }
 0x4df   : > { %5394 = vpow2.f32 %v2568_v2  ;;  %v4213_v2 = vmul.f32 1.0050251, %v4197_v62 }
 0x4e2   : > { %v2517_v24 = vpop.xlane.xlu0 %2516 }
 0x4e3   : > { %v2537_v17 = vsub.f32 %v7279_v46, %v2517_v24  ;;  %v4199_v24 = vmul.f32 %v7073_v15, %v7073_v15 }
 0x4e5   : > { %v2566_v34 = vmul.f32 1.442695, %v2537_v17  ;;  %v4195_v17 = vmul.f32 %v7025_v14, %v7025_v14 }
 0x4e6   : > { %v2523_v20 = vpop.xlane.xlu0 %2522 }
 0x4e7   : > { %5396 = vpow2.f32 %v2566_v34  ;;  %v2539_v6 = vsub.f32 %v7284_v27, %v2523_v20  ;;  %v4215_v34 = vmul.f32 1.0050251, %v4199_v24  ;;  %v4201_v20 = vmul.f32 %v7069_v31, %v7069_v31 }
 0x4e8   : > { %v7358_v1 = vpop.eup %5392 }
 0x4e9   : > { %v2570_v40 = vmul.f32 1.442695, %v2539_v6  ;;  %v2608_v45 = vsel %vm2475_vm1, %v7358_v1, 0.0  ;;  %v4211_v6 = vmul.f32 1.0050251, %v4195_v17  ;;  %v4204_v17 = vmul.f32 %v7128_v29, %v7128_v29 }
 0x4ea   : > { %2609 = vadd.xlane.f32.xlu1 %v2608_v45  ;;  %v4217_v45 = vmul.f32 1.0050251, %v4201_v20  ;;  %v4209_v20 = vmul.f32 %v7184_v43, %v7184_v43 }
 0x4eb   : > { %5398 = vpow2.f32 %v2570_v40  ;;  %v4198_v40 = vmul.f32 %v7061_v54, %v7061_v54 }
 0x4ec   : > { %v7362_v42 = vpop.eup %5394 }
 0x4ed   : > { %v2614_v12 = vsel %vm2475_vm1, %v7362_v42, 0.0 }
 0x4ee   : > { %2615 = vadd.xlane.f32.xlu1 %v2614_v12  ;;  %v4203_v12 = vmul.f32 %v7157_v30, %v7157_v30 }
 0x4f0   : > { %v4219_v41 = vmul.f32 1.0050251, %v4203_v12 }
 0x4f4   : > { %v7366_v46 = vpop.eup %5396 }
 0x4f5   : > { %v2611_v60 = vsel %vm2475_vm1, %v7366_v46, 0.0 }
 0x4f6   : > { %2612 = vadd.xlane.f32.xlu0 %v2611_v60  ;;  %v4214_v60 = vmul.f32 1.0050251, %v4198_v40  ;;  %v4206_v40 = vmul.f32 %v7173_v36, %v7173_v36 }
 0x4f8   : > { %v7370_v27 = vpop.eup %5398  ;;  %v4222_v12 = vmul.f32 1.0050251, %v4206_v40  ;;  %v2653_v40 = vld [vmem:[%s7426_s6 + $0x8] sm:$0xff] }
 0x4f9   : > { %v2617_v55 = vsel %vm2475_vm1, %v7370_v27, 0.0 }
 0x4fa   : > { %2618 = vadd.xlane.f32.xlu0 %v2617_v55  ;;  %v4200_v55 = vmul.f32 %v7049_v59, %v7049_v59 }
 0x4fc   : > { %v4216_v63 = vmul.f32 1.0050251, %v4200_v55 }
 0x4ff   : > { %4258 = vrot.lane.b32.xlu1 %v4210_v23, %s5877_s26  ;;  %v4205_v23 = vmul.f32 %v7152_v48, %v7152_v48 }
 0x501   : > { %v4221_v62 = vmul.f32 1.0050251, %v4205_v23 }
 0x503   : > { %4262 = vrot.lane.b32.xlu1 %v4212_v21, %s5877_s26  ;;  %v4202_v21 = vmul.f32 %v7134_v13, %v7134_v13 }
 0x505   : > { %v4218_v24 = vmul.f32 1.0050251, %v4202_v21 }
 0x507   : > { %4264 = vrot.lane.b32.xlu1 %v4213_v2, %s5877_s26  ;;  %v4207_v2 = vmul.f32 %v7189_v35, %v7189_v35 }
 0x50b   : > { %4268 = vrot.lane.b32.xlu1 %v4215_v34, %s5877_s26  ;;  %v4223_v34 = vmul.f32 1.0050251, %v4207_v2 }
 0x50f   : > { %4272 = vrot.lane.b32.xlu1 %v4217_v45, %s5877_s26  ;;  %v4225_v45 = vmul.f32 1.0050251, %v4209_v20 }
 0x510   : > { %4260 = vrot.lane.b32.xlu0 %v4211_v6, %s5877_s26  ;;  %v4220_v6 = vmul.f32 1.0050251, %v4204_v17 }
 0x513   : > { %4276 = vrot.lane.b32.xlu1 %v4219_v41, %s5877_s26 }
 0x514   : > { %4266 = vrot.lane.b32.xlu0 %v4214_v60, %s5877_s26  ;;  %v4208_v60 = vmul.f32 %v7166_v50, %v7166_v50 }
 0x516   : > { %v4224_v55 = vmul.f32 1.0050251, %v4208_v60 }
 0x517   : > { %4280 = vrot.lane.b32.xlu1 %v4221_v62, %s5877_s26 }
 0x518   : > { %4270 = vrot.lane.b32.xlu0 %v4216_v63, %s5877_s26 }
 0x51b   : > { %4284 = vrot.lane.b32.xlu1 %v4223_v34, %s5877_s26  ;;  %v2652_v34 = vld [vmem:[%s7426_s6] sm:$0xff] }
 0x51c   : > { %4274 = vrot.lane.b32.xlu0 %v4218_v24, %s5877_s26 }
 0x51f   : > { %4288 = vrot.lane.b32.xlu1 %v4225_v45, %s5877_s26 }
 0x520   : > { %4278 = vrot.lane.b32.xlu0 %v4220_v6, %s5877_s26 }
 0x524   : > { %4282 = vrot.lane.b32.xlu0 %v4222_v12, %s5877_s26 }
 0x528   : > { %4286 = vrot.lane.b32.xlu0 %v4224_v55, %s5877_s26 }
 0x539   : > { %v2574_v41 = vpop.xlane.xlu1 %2573 }
 0x53a   : > { %5400 = vrcp.f32 %v2574_v41  ;;  %v2577_v23 = vpop.xlane.xlu0 %2576 }
 0x53b   : > { %5402 = vrcp.f32 %v2577_v23 }
 0x53d   : > { %v2580_v63 = vpop.xlane.xlu1 %2579 }
 0x53e   : > { %5404 = vrcp.f32 %v2580_v63  ;;  %v2654_v63 = vld [vmem:[%s7426_s6 + $0x10] sm:$0xff] }
 0x541   : > { %v2583_v21 = vpop.xlane.xlu0 %2582 }
 0x542   : > { %5406 = vrcp.f32 %v2583_v21  ;;  %v2586_v62 = vpop.xlane.xlu1 %2585 }
 0x543   : > { %5408 = vrcp.f32 %v2586_v62 }
 0x546   : > { %v2592_v2 = vpop.xlane.xlu1 %2591  ;;  %v2589_v24 = vpop.xlane.xlu0 %2588 }
 0x547   : > { %v5401_v17 = vpop.eup %5400  ;;  %5410 = vrcp.f32 %v2592_v2 }
 0x548   : > { %5412 = vrcp.f32 %v2589_v24  ;;  %v2636_v20 = vmul.f32 %v5401_v17, %v7299_v9  ;;  %v5403_v6 = vpop.eup %5402  ;;  %v2655_v24 = vld [vmem:[%s7426_s6 + $0x18] sm:$0xff] }
 0x549   : > { %v2637_v12 = vmul.f32 %v5403_v6, %v7303_v39 }
 0x54a   : > { %v2595_v45 = vpop.xlane.xlu0 %2594  ;;  %v2668_v60 = vmul.f32 %v2652_v34, %v2636_v20 }
 0x54b   : > { %v5405_v55 = vpop.eup %5404  ;;  %5414 = vrcp.f32 %v2595_v45  ;;  %v2669_v23 = vmul.f32 %v2653_v40, %v2637_v12  ;;  %v2657_v12 = vld [vmem:[%s7426_s6 + $0x28] sm:$0xff] }
 0x54c   : > { %v2638_v41 = vmul.f32 %v5405_v55, %v7307_v37  ;;  %v2684_v21 = vmul.f32 1.25, %v2668_v60  ;;  %v2656_v37 = vld [vmem:[%s7426_s6 + $0x20] sm:$0xff] }
 0x54d   : > { %v2685_v62 = vmul.f32 1.25, %v2669_v23 }
 0x54e   : > { %v2670_v9 = vmul.f32 %v2654_v63, %v2638_v41 }
 0x54f   : > { %v5407_v2 = vpop.eup %5406  ;;  %v2700_v61 = vpack.c.bf16 %v2685_v62, %v2684_v21  ;;  %v2659_v21 = vld [vmem:[%s7426_s6 + $0x38] sm:$0xff] }
 0x550   : > { %v5409_v50 = vpop.eup %5408  ;;  %v2639_v17 = vmul.f32 %v5407_v2, %v7311_v47  ;;  %v2686_v6 = vmul.f32 1.25, %v2670_v9  ;;  %v2658_v47 = vld [vmem:[%s7426_s6 + $0x30] sm:$0xff] }
 0x551   : > { %5010 = vmatprep.mubr.msk.bf16.mxu0 %vm2475_vm1, %v2700_v61  ;;  %v2640_v34 = vmul.f32 %v5409_v50, %v7313_v49 }
 0x552   : > { %v2671_v39 = vmul.f32 %v2655_v24, %v2639_v17 }
 0x553   : > { %v2672_v23 = vmul.f32 %v2656_v37, %v2640_v34 }
 0x554   : > { %v5411_v20 = vpop.eup %5410  ;;  %v2687_v40 = vmul.f32 1.25, %v2671_v39 }
 0x555   : > { %v5413_v45 = vpop.eup %5412  ;;  %v2642_v60 = vmul.f32 %v5411_v20, %v7319_v58  ;;  %v2688_v62 = vmul.f32 1.25, %v2672_v23 }
 0x556   : > { %v2701_v55 = vpack.c.bf16 %v2687_v40, %v2686_v6  ;;  %v2641_v41 = vmul.f32 %v5413_v45, %v7321_v19  ;;  %v2660_v40 = vld [vmem:[%s7426_s6 + $0x40] sm:$0xff] }
 0x557   : > { %v2674_v49 = vmul.f32 %v2658_v47, %v2642_v60  ;;  %v2661_v60 = vld [vmem:[%s7426_s6 + $0x48] sm:$0xff]  ;;  %v2662_v47 = vld [vmem:[%s7426_s6 + $0x50] sm:$0xff] }
 0x558   : > { %v5415_v63 = vpop.eup %5414  ;;  %5011 = vmatmul.mubr.msk.bf16.vlgmr.msra.gmra.mxu0 %vm2475_vm1, %v2701_v55  ;;  %v2673_v61 = vmul.f32 %v2657_v12, %v2641_v41 }
 0x559   : > { %v2643_v50 = vmul.f32 %v5415_v63, %v7327_v22  ;;  %v2690_v58 = vmul.f32 1.25, %v2674_v49 }
 0x55a   : > { %v2689_v2 = vmul.f32 1.25, %v2673_v61 }
 0x55b   : > { %v2675_v24 = vmul.f32 %v2659_v21, %v2643_v50  ;;  %v2663_v50 = vld [vmem:[%s7426_s6 + $0x58] sm:$0xff] }
 0x55c   : > { %v2702_v17 = vpack.c.bf16 %v2689_v2, %v2688_v62 }
 0x55d   : > { %v2598_v9 = vpop.xlane.xlu1 %2597  ;;  %v2691_v19 = vmul.f32 1.25, %v2675_v24 }
 0x55e   : > { %5416 = vrcp.f32 %v2598_v9  ;;  %5014 = vmatprep.mubr.msk.bf16.mxu0 %vm2475_vm1, %v2702_v17 }
 0x55f   : > { %v2703_v39 = vpack.c.bf16 %v2691_v19, %v2690_v58 }
 0x561   : > { %v2604_v34 = vpop.xlane.xlu1 %2603  ;;  %5015 = vmatmul.mubr.msk.bf16.gmra.mxu0 %vm2475_vm1, %v2703_v39  ;;  %v2285_v39 = vmul.f32 %v7075_v28, %v7075_v28 }
 0x562   : > { %v2601_v37 = vpop.xlane.xlu0 %2600  ;;  %5418 = vrcp.f32 %v2604_v34 }
 0x563   : > { %5420 = vrcp.f32 %v2601_v37 }
 0x566   : > { %v2607_v22 = vpop.xlane.xlu0 %2606 }
 0x567   : > { %5422 = vrcp.f32 %v2607_v22 }
 0x56b   : > { %v5417_v20 = vpop.eup %5416 }
 0x56c   : > { %v2644_v6 = vmul.f32 %v5417_v20, %v7338_v32  ;;  %v2283_v32 = vmul.f32 %v7080_v56, %v7080_v56 }
 0x56e   : > { %v2676_v41 = vmul.f32 %v2660_v40, %v2644_v6  ;;  %v4178_v19 = vmul.f32 1.0050251, %v2283_v32  ;;  %v4180_v6 = vmul.f32 1.0050251, %v2285_v39  ;;  %v2286_v40 = vmul.f32 %v7082_v44, %v7082_v44 }
 0x56f   : > { %v5419_v45 = vpop.eup %5418  ;;  %v4229_v44 = vsub.f32 -0.005012542, %v7021_v33  ;;  %v4231_v33 = vsub.f32 -0.005012542, %v7073_v15  ;;  %v5160_v15 = vld [vmem:[#allocation7 + $0x54] ss:$8 sps:$4 sm:$0xff]  }
 0x570   : > { %v5421_v12 = vpop.eup %5420  ;;  %v2646_v23 = vmul.f32 %v5419_v45, %v7342_v18  ;;  %v2692_v49 = vmul.f32 1.25, %v2676_v41  ;;  %v4181_v41 = vmul.f32 1.0050251, %v2286_v40 }
 0x571   : > { %v2645_v55 = vmul.f32 %v5421_v12, %v7344_v8  ;;  %v4228_v12 = vsub.f32 -0.005012542, %v7013_v51 }
 0x572   : > { %v2678_v24 = vmul.f32 %v2662_v47, %v2646_v23  ;;  %v2288_v23 = vmul.f32 %v7118_v57, %v7118_v57  ;;  %v4227_v57 = vsub.f32 -0.005012542, %v7025_v14  ;;  %v5155_v14 = vld [vmem:[#allocation7 + $0x60] ss:$8 sps:$4 sm:$0xff]  }
 0x573   : > { %v2677_v63 = vmul.f32 %v2661_v60, %v2645_v55  ;;  %v2610_v21 = vpop.xlane.xlu1 %2609 }
 0x574   : > { %v5423_v61 = vpop.eup %5422  ;;  %5424 = vrcp.f32 %v2610_v21  ;;  %v2694_v18 = vmul.f32 1.25, %v2678_v24  ;;  %v2287_v21 = vmul.f32 %v7110_v16, %v7110_v16 }
 0x575   : > { %v2693_v62 = vmul.f32 1.25, %v2677_v63  ;;  %v2647_v2 = vmul.f32 %v5423_v61, %v7351_v5  ;;  %v4226_v5 = vsub.f32 -0.005012542, %v7017_v7  ;;  %v2284_v7 = vmul.f32 %v7084_v11, %v7084_v11 }
 0x577   : > { %v2704_v9 = vpack.c.bf16 %v2693_v62, %v2692_v49  ;;  %v2679_v17 = vmul.f32 %v2663_v50, %v2647_v2  ;;  %v2616_v58 = vpop.xlane.xlu1 %2615  ;;  %v4179_v61 = vmul.f32 1.0050251, %v2284_v7  ;;  %v4183_v49 = vmul.f32 1.0050251, %v2288_v23  ;;  %v5152_v62 = vld [vmem:[#allocation7 + $0x70] ss:$8 sps:$4 sm:$0xff]  }
 0x578   : > { %5426 = vrcp.f32 %v2616_v58  ;;  %v5154_v2 = vld [vmem:[#allocation7 + $0x74] ss:$8 sps:$4 sm:$0xff]   ;;  %v4232_v7 = vsub.f32 -0.005012542, %v7049_v59 }
 0x579   : > { %5018 = vmatprep.mubr.msk.bf16.mxu0 %vm2475_vm1, %v2704_v9  ;;  %v2695_v8 = vmul.f32 1.25, %v2679_v17  ;;  %v5157_v9 = vld [vmem:[#allocation7 + $0x64] ss:$8 sps:$4 sm:$0xff]   ;;  %2977 = vmatprep.subr.bf16.mxu0 %v5154_v2 }
 0x57a   : > { %2978 = vmatpush1.bf16.msra.mxu0 %v5152_v62  ;;  %5026 = vmatprep.subr.bf16.mxu1 %v5154_v2  ;;  %v5169_v2 = vld [vmem:[#allocation7 + $0x24] ss:$8 sps:$4 sm:$0xff]  }
 0x57b   : > { %v2705_v34 = vpack.c.bf16 %v2695_v8, %v2694_v18  ;;  %v4259_v37 = vpop.permute.xlu1 %4258  ;;  %v4182_v18 = vmul.f32 1.0050251, %v2287_v21  ;;  %v2289_v8 = vmul.f32 %v7102_v52, %v7102_v52  ;;  %2979 = vmatprep.subr.bf16.mxu0 %v5157_v9  ;;  %5034 = vmatpush1.bf16.msra.mxu1 %v5152_v62  ;;  %v2665_v52 = vld [vmem:[%s7426_s6 + $0x68] sm:$0xff]  ;;  %v5166_v62 = vld [vmem:[#allocation7 + $0x34] ss:$8 sps:$4 sm:$0xff]  }
 0x57c   : > { %v4306_v22 = vadd.f32 %v4259_v37, %v4178_v19  ;;  %v2664_v19 = vld [vmem:[%s7426_s6 + $0x60] sm:$0xff]  ;;  %5027 = vmatprep.subr.bf16.mxu1 %v5157_v9 }
 0x57d   : > { %5019 = vmatmul.mubr.msk.bf16.gmra.mxu0 %vm2475_vm1, %v2705_v34  ;;  %v5175_v9 = vld [vmem:[#allocation7 + $0x4] ss:$8 sps:$4 sm:$0xff]  }
 0x57e   : > { %v4322_v20 = vadd.f32 %v4306_v22, %v4226_v5  ;;  %2980 = vmatpush1.bf16.msra.mxu0 %v5155_v14 }
 0x57f   : > { %v2613_v56 = vpop.xlane.xlu0 %2612  ;;  %v4263_v45 = vpop.permute.xlu1 %4262  ;;  %2981 = vmatprep.subr.bf16.mxu0 %v5160_v15  ;;  %5035 = vmatpush1.bf16.msra.mxu1 %v5155_v14 }
 0x580   : > { %5428 = vrcp.f32 %v2613_v56  ;;  %v4308_v60 = vadd.f32 %v4263_v45, %v4180_v6  ;;  %4354 = vrot.lane.b32.xlu1 %v4322_v20, %s5878_s27  ;;  %v4184_v6 = vmul.f32 1.0050251, %v2289_v8  ;;  %5028 = vmatprep.subr.bf16.mxu1 %v5160_v15 }
 0x581   : > { %v5425_v51 = vpop.eup %5424 }
 0x582   : > { %v4324_v55 = vadd.f32 %v4308_v60, %v4228_v12  ;;  %v2648_v58 = vmul.f32 %v5425_v51, %v7358_v1  ;;  %v4230_v1 = vsub.f32 -0.005012542, %v7061_v54  ;;  %v5158_v12 = vld [vmem:[#allocation7 + $0x50] ss:$8 sps:$4 sm:$0xff]  }
 0x583   : > { %v2619_v28 = vpop.xlane.xlu0 %2618  ;;  %v4265_v47 = vpop.permute.xlu1 %4264  ;;  %v2666_v54 = vld [vmem:[%s7426_s6 + $0x70] sm:$0xff]  ;;  %2982 = vmatpush1.bf16.msra.mxu0 %v5158_v12  ;;  %5036 = vmatpush1.bf16.msra.mxu1 %v5158_v12 }
 0x584   : > { %5430 = vrcp.f32 %v2619_v28  ;;  %v4309_v63 = vadd.f32 %v4265_v47, %v4181_v41  ;;  %4358 = vrot.lane.b32.xlu1 %v4324_v55, %s5878_s27  ;;  %v2680_v56 = vmul.f32 %v2664_v19, %v2648_v58  ;;  %v2667_v47 = vld [vmem:[%s7426_s6 + $0x78] sm:$0xff]  ;;  %s4539_s6 = sshll.u32 %s8253_s17, 4  ;;  %s8431_s6 = int_to_ptr.vmem [resolvable:$true] %s4539_s6 }
 0x585   : > { %v5427_v39 = vpop.eup %5426  ;;  %s5800_s26 = scalar_lea.vmem %s8431_s6, 4096 }
 0x586   : > { %v4325_v11 = vadd.f32 %v4309_v63, %v4229_v44  ;;  %v2650_v45 = vmul.f32 %v5427_v39, %v7362_v42  ;;  %v2696_v23 = vmul.f32 1.25, %v2680_v56  ;;  %p5801_p10 = scmp.ne.s32.totalorder %s8431_s6, %s5800_s26 }
 0x587   : > { %v4261_v50 = vpop.permute.xlu0 %4260  ;;  %v4269_v32 = vpop.permute.xlu1 %4268 }
 0x588   : > { %v4307_v24 = vadd.f32 %v4261_v50, %v4179_v61  ;;  %v4311_v17 = vadd.f32 %v4269_v32, %v4183_v49  ;;  %4360 = vrot.lane.b32.xlu1 %v4325_v11, %s5878_s27  ;;  %v2682_v63 = vmul.f32 %v2666_v54, %v2650_v45  ;;  %v5161_v11 = vld [vmem:[#allocation7 + $0x40] ss:$8 sps:$4 sm:$0xff]   ;;  %v5163_v49 = vld [vmem:[#allocation7 + $0x44] ss:$8 sps:$4 sm:$0xff]   ;;  %v5170_v32 = vld [vmem:[#allocation7 + $0x10] ss:$8 sps:$4 sm:$0xff]   ;;  %p5802_p2 = pnand %p5801_p10, %p8676_p1 }
 0x589   : > { %2983 = vmatprep.subr.bf16.mxu0 %v5163_v49  ;;  %5029 = vmatprep.subr.bf16.mxu1 %v5163_v49 }
 0x58a   : > { %v4323_v16 = vadd.f32 %v4307_v24, %v4227_v57  ;;  %v4327_v37 = vadd.f32 %v4311_v17, %v4231_v33  ;;  %v2698_v59 = vmul.f32 1.25, %v2682_v63  ;;  %2984 = vmatpush1.bf16.msra.mxu0 %v5161_v11  ;;  %5037 = vmatpush1.bf16.msra.mxu1 %v5161_v11  ;;  %v5167_v57 = vld [vmem:[#allocation7 + $0x20] ss:$8 sps:$4 sm:$0xff]   ;;  %v5172_v24 = vld [vmem:[#allocation7 + $0x14] ss:$8 sps:$4 sm:$0xff]   ;;  %v5879_v33 = vmov 0   ;;  %p5803_p6 = pneg %p5802_p2 }
 0x58b   : > { %v4267_v34 = vpop.permute.xlu0 %4266  ;;  %2985 = vmatprep.subr.bf16.mxu0 %v5166_v62  ;;  %5030 = vmatprep.subr.bf16.mxu1 %v5166_v62  ;;  %v5173_v17 = vld [vmem:[#allocation7] ss:$8 sps:$4 sm:$0xff]   ;;  %v2887_v62 = vlaneseq }
 0x58c   : > { %v4310_v5 = vadd.f32 %v4267_v34, %v4182_v18  ;;  %4356 = vrot.lane.b32.xlu0 %v4323_v16, %s5878_s27  ;;  %4364 = vrot.lane.b32.xlu1 %v4327_v37, %s5878_s27 }
 0x58d   : > { %v5429_v22 = vpop.eup %5428  ;;  %3029 = vmatprep.mubr.bf16.mxu1 %v5879_v33 }
 0x58e   : > { %v4326_v20 = vadd.f32 %v4310_v5, %v4230_v1  ;;  %v2649_v40 = vmul.f32 %v5429_v22, %v7366_v46 }
 0x58f   : > { %v4271_v60 = vpop.permute.xlu0 %4270 }
 0x590   : > { %v4312_v28 = vadd.f32 %v4271_v60, %v4184_v6  ;;  %4362 = vrot.lane.b32.xlu0 %v4326_v20, %s5878_s27  ;;  %v2681_v55 = vmul.f32 %v2665_v52, %v2649_v40 }
 0x591   : > { %v5431_v41 = vpop.eup %5430 }
 0x592   : > { %v4328_v44 = vadd.f32 %v4312_v28, %v4232_v7  ;;  %v2697_v46 = vmul.f32 1.25, %v2681_v55  ;;  %v2651_v42 = vmul.f32 %v5431_v41, %v7370_v27  ;;  %v5164_v27 = vld [vmem:[#allocation7 + $0x30] ss:$8 sps:$4 sm:$0xff]  }
 0x593   : > { %2986 = vmatpush1.bf16.msra.mxu0 %v5164_v27  ;;  %5038 = vmatpush1.bf16.msra.mxu1 %v5164_v27 }
 0x594   : > { %4366 = vrot.lane.b32.xlu0 %v4328_v44, %s5878_s27  ;;  %v2706_v51 = vpack.c.bf16 %v2697_v46, %v2696_v23  ;;  %v2683_v61 = vmul.f32 %v2667_v47, %v2651_v42  ;;  %2987 = vmatprep.subr.bf16.mxu0 %v5169_v2 }
 0x595   : > { %5031 = vmatprep.subr.bf16.mxu1 %v5169_v2  ;;  %v2888_v2 = vshrl.u32 %v2887_v62, 7 }
 0x596   : > { %5022 = vmatprep.mubr.msk.bf16.mxu0 %vm2475_vm1, %v2706_v51  ;;  %v2699_v21 = vmul.f32 1.25, %v2683_v61 }
 0x597   : > { %2988 = vmatpush1.bf16.msra.mxu0 %v5167_v57  ;;  %5039 = vmatpush1.bf16.msra.mxu1 %v5167_v57  ;;  %v2889_v57 = vsub.s32 0, %v2888_v2 }
 0x598   : > { %v2707_v50 = vpack.c.bf16 %v2699_v21, %v2698_v59  ;;  %2989 = vmatprep.subr.bf16.mxu0 %v5172_v24  ;;  %5032 = vmatprep.subr.bf16.mxu1 %v5172_v24  ;;  %v2885_v24 = vld [vmem:[%s8515_s12] sm:$0x3] }
 0x59a   : > { %5023 = vmatmul.mubr.msk.bf16.gmra.mxu0 %vm2475_vm1, %v2707_v50 }
 0x59b   : > { %3009 = vmatprep.mubr.bf16.mxu0 %v5879_v33  ;;  %2990 = vmatpush1.bf16.msra.mxu0 %v5170_v32 }
 0x59c   : > { %5040 = vmatpush1.bf16.msra.mxu1 %v5170_v32  ;;  %2991 = vmatprep.subr.bf16.mxu0 %v5175_v9  ;;  %v2893_v32 = vsub.s32 1, %v2888_v2 }
 0x59d   : > { %5033 = vmatprep.subr.bf16.mxu1 %v5175_v9  ;;  %v7529_v9 = vrot.slane %v2885_v24, %v2889_v57 }
 0x59f   : > { %2992 = vmatpush1.bf16.msra.mxu0 %v5173_v17 }
 0x5a0   : > { %5041 = vmatpush1.bf16.msra.mxu1 %v5173_v17  ;;  %v7531_v17 = vrot.slane %v2885_v24, %v2893_v32 }
 0x618   : > { %v5012_v58 = vpop.f32.mrf.mxu0 }
 0x619   : > { %5432 = vtanh.f32 %v5012_v58 }
 0x61a   : > { %v2782_v16 = vpop.f32.mrf.mxu0 }
 0x61b   : > { %5434 = vtanh.f32 %v2782_v16 }
 0x61c   : > { %v5013_v18 = vpop.f32.mrf.mxu0 }
 0x61d   : > { %5436 = vtanh.f32 %v5013_v18 }
 0x61e   : > { %v2785_v8 = vpop.f32.mrf.mxu0 }
 0x61f   : > { %5438 = vtanh.f32 %v2785_v8 }
 0x621   : > { %v5016_v19 = vpop.f32.mrf.mxu0 }
 0x622   : > { %5440 = vtanh.f32 %v5016_v19 }
 0x623   : > { %v2798_v14 = vpop.f32.mrf.mxu0 }
 0x624   : > { %5442 = vtanh.f32 %v2798_v14 }
 0x625   : > { %v5017_v39 = vpop.f32.mrf.mxu0 }
 0x626   : > { %v5433_v34 = vpop.eup %5432  ;;  %5444 = vtanh.f32 %v5017_v39 }
 0x627   : > { %3972 = vst [vmem:[%s7502_s28 + $0x10] sm:$0xff] %v5433_v34  ;;  %v2801_v37 = vpop.f32.mrf.mxu0 }
 0x628   : > { %v5435_v15 = vpop.eup %5434  ;;  %5446 = vtanh.f32 %v2801_v37 }
 0x629   : > { %3970 = vst [vmem:[%s7502_s28] sm:$0xff] %v5435_v15 }
 0x62a   : > { %v5437_v1 = vpop.eup %5436 }
 0x62b   : > { %3973 = vst [vmem:[%s7502_s28 + $0x18] sm:$0xff] %v5437_v1  ;;  %v2862_v40 = vpack.c.bf16 %v5437_v1, %v5433_v34 }
 0x62c   : > { %v5439_v5 = vpop.eup %5438 }
 0x62d   : > { %3971 = vst [vmem:[%s7502_s28 + $0x8] sm:$0xff] %v5439_v5  ;;  %v2861_v22 = vpack.c.bf16 %v5439_v5, %v5435_v15 }
 0x62f   : > { %v5441_v52 = vpop.eup %5440  ;;  %3010 = vmatmul.mubr.bf16.vlgmr.msra.gmra.mxu0 %v2861_v22 }
 0x630   : > { %3976 = vst [vmem:[%s7502_s28 + $0x30] sm:$0xff] %v5441_v52  ;;  %3019 = vmatprep.mubr.bf16.mxu0 %v5879_v33 }
 0x631   : > { %v5443_v56 = vpop.eup %5442 }
 0x632   : > { %3974 = vst [vmem:[%s7502_s28 + $0x20] sm:$0xff] %v5443_v56 }
 0x633   : > { %v5445_v20 = vpop.eup %5444 }
 0x634   : > { %3977 = vst [vmem:[%s7502_s28 + $0x38] sm:$0xff] %v5445_v20  ;;  %v2864_v54 = vpack.c.bf16 %v5445_v20, %v5441_v52 }
 0x635   : > { %v5447_v6 = vpop.eup %5446 }
 0x636   : > { %3975 = vst [vmem:[%s7502_s28 + $0x28] sm:$0xff] %v5447_v6  ;;  %v2863_v45 = vpack.c.bf16 %v5447_v6, %v5443_v56 }
 0x637   : > { %3020 = vmatmul.mubr.bf16.gmra.mxu0 %v2862_v40 }
 0x638   : > { %3030 = vmatmul.mubr.bf16.vlgmr.msra.gmra.mxu1 %v2863_v45 }
 0x639   : > { %3039 = vmatprep.mubr.bf16.mxu1 %v5879_v33 }
 0x63d   : > { %v5020_v12 = vpop.f32.mrf.mxu0 }
 0x63e   : > { %5448 = vtanh.f32 %v5020_v12 }
 0x63f   : > { %v2814_v60 = vpop.f32.mrf.mxu0 }
 0x640   : > { %5450 = vtanh.f32 %v2814_v60  ;;  %3040 = vmatmul.mubr.bf16.gmra.mxu1 %v2864_v54 }
 0x641   : > { %v5021_v7 = vpop.f32.mrf.mxu0  ;;  %3049 = vmatprep.mubr.bf16.mxu1 %v5879_v33 }
 0x642   : > { %5452 = vtanh.f32 %v5021_v7 }
 0x643   : > { %v2817_v28 = vpop.f32.mrf.mxu0 }
 0x644   : > { %5454 = vtanh.f32 %v2817_v28 }
 0x64b   : > { %v5449_v55 = vpop.eup %5448 }
 0x64c   : > { %3980 = vst [vmem:[%s7502_s28 + $0x50] sm:$0xff] %v5449_v55 }
 0x64d   : > { %v5451_v41 = vpop.eup %5450 }
 0x64e   : > { %3978 = vst [vmem:[%s7502_s28 + $0x40] sm:$0xff] %v5451_v41 }
 0x64f   : > { %v5453_v23 = vpop.eup %5452 }
 0x650   : > { %3981 = vst [vmem:[%s7502_s28 + $0x58] sm:$0xff] %v5453_v23  ;;  %v2866_v42 = vpack.c.bf16 %v5453_v23, %v5449_v55 }
 0x651   : > { %v5455_v47 = vpop.eup %5454 }
 0x652   : > { %3979 = vst [vmem:[%s7502_s28 + $0x48] sm:$0xff] %v5455_v47  ;;  %v2865_v44 = vpack.c.bf16 %v5455_v47, %v5451_v41 }
 0x654   : > { %3050 = vmatmul.mubr.bf16.gmra.mxu1 %v2865_v44 }
 0x655   : > { %3059 = vmatprep.mubr.bf16.mxu1 %v5879_v33 }
 0x65a   : > { %v5024_v46 = vpop.f32.mrf.mxu0 }
 0x65b   : > { %5456 = vtanh.f32 %v5024_v46 }
 0x65c   : > { %v2830_v63 = vpop.f32.mrf.mxu0  ;;  %3060 = vmatmul.mubr.bf16.gmra.mxu1 %v2866_v42 }
 0x65d   : > { %5458 = vtanh.f32 %v2830_v63  ;;  %3069 = vmatprep.mubr.bf16.mxu1 %v5879_v33 }
 0x65e   : > { %v5025_v51 = vpop.f32.mrf.mxu0 }
 0x65f   : > { %5460 = vtanh.f32 %v5025_v51 }
 0x660   : > { %v2833_v61 = vpop.f32.mrf.mxu0 }
 0x661   : > { %5462 = vtanh.f32 %v2833_v61 }
 0x668   : > { %v5457_v59 = vpop.eup %5456 }
 0x669   : > { %3984 = vst [vmem:[%s7502_s28 + $0x70] sm:$0xff] %v5457_v59 }
 0x66a   : > { %v5459_v21 = vpop.eup %5458 }
 0x66b   : > { %3982 = vst [vmem:[%s7502_s28 + $0x60] sm:$0xff] %v5459_v21 }
 0x66c   : > { %v5461_v50 = vpop.eup %5460 }
 0x66d   : > { %3985 = vst [vmem:[%s7502_s28 + $0x78] sm:$0xff] %v5461_v50  ;;  %v2868_v27 = vpack.c.bf16 %v5461_v50, %v5457_v59 }
 0x66e   : > { %v5463_v11 = vpop.eup %5462 }
 0x66f   : > { %3983 = vst [vmem:[%s7502_s28 + $0x68] sm:$0xff] %v5463_v11  ;;  %v2867_v49 = vpack.c.bf16 %v5463_v11, %v5459_v21 }
 0x671   : > { %3070 = vmatmul.mubr.bf16.gmra.mxu1 %v2867_v49 }
 0x672   : > { %3079 = vmatprep.mubr.bf16.mxu1 %v5879_v33 }
 0x679   : > { %3080 = vmatmul.mubr.bf16.gmra.mxu1 %v2868_v27 }
 0x6ef   : > { %v3011_v58 = vpop.f32.mrf.mxu0 }
 0x6f0   : > { %v3012_v16 = vadd.f32 %v3011_v58, %v7529_v9 }
 0x6f1   : > { %v3013_v18 = vpop.f32.mrf.mxu0 }
 0x6f2   : > { %v3090_v8 = vrot.slane %v3012_v16, 4  ;;  %v3014_v33 = vadd.f32 %v3013_v18, %v7531_v17 }
 0x6f3   : > { %v3015_v19 = vpop.f32.mrf.mxu0 }
 0x6f4   : > { %v3091_v14 = vadd.f32 %v3090_v8, %v3012_v16  ;;  %v3096_v39 = vrot.slane %v3014_v33, 4  ;;  %v3016_v34 = vadd.f32 %v3015_v19, %v7529_v9 }
 0x6f5   : > { %v3017_v37 = vpop.f32.mrf.mxu0 }
 0x6f6   : > { %v3092_v15 = vrot.slane %v3091_v14, 2  ;;  %v3097_v1 = vadd.f32 %v3096_v39, %v3014_v33  ;;  %v3102_v5 = vrot.slane %v3016_v34, 4  ;;  %v3018_v22 = vadd.f32 %v3017_v37, %v7531_v17 }
 0x6f7   : > { %v3021_v52 = vpop.f32.mrf.mxu0 }
 0x6f8   : > { %v3093_v56 = vadd.f32 %v3092_v15, %v3091_v14  ;;  %v3098_v20 = vrot.slane %v3097_v1, 2  ;;  %v3103_v6 = vadd.f32 %v3102_v5, %v3016_v34  ;;  %v3108_v40 = vrot.slane %v3018_v22, 4  ;;  %v3031_v45 = vpop.f32.mrf.mxu1 }
 0x6f9   : > { %v7538_v12 = vadd.f32 %v3021_v52, %v7529_v9  ;;  %v3023_v60 = vpop.f32.mrf.mxu0  ;;  %v7541_v54 = vadd.f32 %v3031_v45, %v7529_v9 }
 0x6fa   : > { %v3094_v7 = vrot.slane %v3093_v56, 1  ;;  %v3099_v28 = vadd.f32 %v3098_v20, %v3097_v1  ;;  %v3104_v55 = vrot.slane %v3103_v6, 2  ;;  %v3109_v41 = vadd.f32 %v3108_v40, %v3018_v22 }
 0x6fb   : > { %v3114_v23 = vrot.slane %v7538_v12, 4  ;;  %v7545_v47 = vadd.f32 %v3023_v60, %v7531_v17  ;;  %v3025_v44 = vpop.f32.mrf.mxu0  ;;  %v3138_v11 = vrot.slane %v7541_v54, 4 }
 0x6fc   : > { %v3095_v46 = vadd.f32 %v3094_v7, %v3093_v56  ;;  %v3100_v42 = vrot.slane %v3099_v28, 1  ;;  %v3105_v63 = vadd.f32 %v3104_v55, %v3103_v6  ;;  %v3110_v51 = vrot.slane %v3109_v41, 2 }
 0x6fd   : > { %v3115_v61 = vadd.f32 %v3114_v23, %v7538_v12  ;;  %v3120_v59 = vrot.slane %v7545_v47, 4  ;;  %v7550_v21 = vadd.f32 %v3025_v44, %v7529_v9  ;;  %v3027_v50 = vpop.f32.mrf.mxu0 }
 0x6fe   : > { %v3282_v49 = vmul.f32 0.125, %v3095_v46  ;;  %v3101_v27 = vadd.f32 %v3100_v42, %v3099_v28  ;;  %v3106_v62 = vrot.slane %v3105_v63, 1  ;;  %v3111_v2 = vadd.f32 %v3110_v51, %v3109_v41 }
 0x6ff   : > { %v3116_v57 = vrot.slane %v3115_v61, 2  ;;  %v3121_v24 = vadd.f32 %v3120_v59, %v7545_v47  ;;  %v3126_v32 = vrot.slane %v7550_v21, 4  ;;  %v7556_v58 = vadd.f32 %v3027_v50, %v7531_v17 }
 0x700   : > { %v7558_v18 = vsub.f32 %v3012_v16, %v3282_v49  ;;  %v3283_v8 = vmul.f32 0.125, %v3101_v27  ;;  %v3107_v19 = vadd.f32 %v3106_v62, %v3105_v63  ;;  %v3112_v14 = vrot.slane %v3111_v2, 1 }
 0x701   : > { %v3117_v39 = vadd.f32 %v3116_v57, %v3115_v61  ;;  %v3122_v37 = vrot.slane %v3121_v24, 2  ;;  %v3127_v15 = vadd.f32 %v3126_v32, %v7550_v21  ;;  %v3132_v1 = vrot.slane %v7556_v58, 4 }
 0x702   : > { %v3346_v5 = vmul.f32 %v7558_v18, %v7558_v18  ;;  %v7564_v52 = vsub.f32 %v3014_v33, %v3283_v8  ;;  %v3284_v56 = vmul.f32 0.125, %v3107_v19  ;;  %v3113_v20 = vadd.f32 %v3112_v14, %v3111_v2 }
 0x703   : > { %v3118_v6 = vrot.slane %v3117_v39, 1  ;;  %v3123_v40 = vadd.f32 %v3122_v37, %v3121_v24  ;;  %v3128_v16 = vrot.slane %v3127_v15, 2  ;;  %v3133_v45 = vadd.f32 %v3132_v1, %v7556_v58  ;;  %v3033_v37 = vpop.f32.mrf.mxu1 }
 0x704   : > { %v3378_v60 = vrot.slane %v3346_v5, 4  ;;  %v3347_v7 = vmul.f32 %v7564_v52, %v7564_v52  ;;  %v7569_v28 = vsub.f32 %v3016_v34, %v3284_v56  ;;  %v3285_v55 = vmul.f32 0.125, %v3113_v20 }
 0x705   : > { %v3119_v41 = vadd.f32 %v3118_v6, %v3117_v39  ;;  %v3124_v23 = vrot.slane %v3123_v40, 1  ;;  %v3129_v44 = vadd.f32 %v3128_v16, %v3127_v15  ;;  %v3134_v46 = vrot.slane %v3133_v45, 2 }
 0x706   : > { %v3379_v33 = vadd.f32 %v3378_v60, %v3346_v5  ;;  %v3384_v42 = vrot.slane %v3347_v7, 4  ;;  %v3348_v63 = vmul.f32 %v7569_v28, %v7569_v28  ;;  %v7573_v51 = vsub.f32 %v3018_v22, %v3285_v55 }
 0x707   : > { %v3286_v61 = vmul.f32 0.125, %v3119_v41  ;;  %v3125_v59 = vadd.f32 %v3124_v23, %v3123_v40  ;;  %v3130_v50 = vrot.slane %v3129_v44, 1  ;;  %v3135_v49 = vadd.f32 %v3134_v46, %v3133_v45 }
 0x708   : > { %v3380_v27 = vrot.slane %v3379_v33, 2  ;;  %v3385_v62 = vadd.f32 %v3384_v42, %v3347_v7  ;;  %v3390_v34 = vrot.slane %v3348_v63, 4  ;;  %v3349_v2 = vmul.f32 %v7573_v51, %v7573_v51 }
 0x709   : > { %v7578_v57 = vsub.f32 %v7538_v12, %v3286_v61  ;;  %v3287_v24 = vmul.f32 0.125, %v3125_v59  ;;  %v3131_v32 = vadd.f32 %v3130_v50, %v3129_v44  ;;  %v3136_v8 = vrot.slane %v3135_v49, 1 }
 0x70a   : > { %v3381_v19 = vadd.f32 %v3380_v27, %v3379_v33  ;;  %v3386_v14 = vrot.slane %v3385_v62, 2  ;;  %v3391_v22 = vadd.f32 %v3390_v34, %v3348_v63  ;;  %v3396_v39 = vrot.slane %v3349_v2, 4 }
 0x70b   : > { %v3350_v15 = vmul.f32 %v7578_v57, %v7578_v57  ;;  %v7583_v1 = vsub.f32 %v7545_v47, %v3287_v24  ;;  %v3288_v5 = vmul.f32 0.125, %v3131_v32  ;;  %v3137_v56 = vadd.f32 %v3136_v8, %v3135_v49  ;;  %v3035_v47 = vpop.f32.mrf.mxu1 }
 0x70c   : > { %v3382_v20 = vrot.slane %v3381_v19, 1  ;;  %v3387_v6 = vadd.f32 %v3386_v14, %v3385_v62  ;;  %v3392_v12 = vrot.slane %v3391_v22, 2  ;;  %v3397_v40 = vadd.f32 %v3396_v39, %v3349_v2 }
 0x70d   : > { %v3402_v16 = vrot.slane %v3350_v15, 4  ;;  %v3351_v45 = vmul.f32 %v7583_v1, %v7583_v1  ;;  %v7588_v60 = vsub.f32 %v7550_v21, %v3288_v5  ;;  %v3289_v7 = vmul.f32 0.125, %v3137_v56 }
 0x70e   : > { %v3383_v55 = vadd.f32 %v3382_v20, %v3381_v19  ;;  %v3388_v41 = vrot.slane %v3387_v6, 1  ;;  %v3393_v23 = vadd.f32 %v3392_v12, %v3391_v22  ;;  %v3398_v44 = vrot.slane %v3397_v40, 2  ;;  %v3037_v19 = vpop.f32.mrf.mxu1 }
 0x70f   : > { %v3403_v46 = vadd.f32 %v3402_v16, %v3350_v15  ;;  %v3408_v33 = vrot.slane %v3351_v45, 4  ;;  %v3352_v42 = vmul.f32 %v7588_v60, %v7588_v60  ;;  %v7593_v63 = vsub.f32 %v7556_v58, %v3289_v7 }
 0x710   : > { %v3389_v61 = vadd.f32 %v3388_v41, %v3387_v6  ;;  %v3394_v59 = vrot.slane %v3393_v23, 1  ;;  %v3399_v50 = vadd.f32 %v3398_v44, %v3397_v40  ;;  %v3139_v21 = vadd.f32 %v3138_v11, %v7541_v54 }
 0x711   : > { %v3404_v49 = vrot.slane %v3403_v46, 2  ;;  %v3409_v27 = vadd.f32 %v3408_v33, %v3351_v45  ;;  %v3414_v62 = vrot.slane %v3352_v42, 4  ;;  %v3353_v34 = vmul.f32 %v7593_v63, %v7593_v63  ;;  %v3041_v45 = vpop.f32.mrf.mxu1 }
 0x712   : > { %v3570_v2 = vmul.f32 0.125, %v3383_v55  ;;  %v3571_v24 = vmul.f32 0.125, %v3389_v61  ;;  %v3395_v32 = vadd.f32 %v3394_v59, %v3393_v23  ;;  %v3400_v8 = vrot.slane %v3399_v50, 1 }
 0x713   : > { %v3405_v58 = vadd.f32 %v3404_v49, %v3403_v46  ;;  %v3410_v14 = vrot.slane %v3409_v27, 2  ;;  %v3415_v22 = vadd.f32 %v3414_v62, %v3352_v42  ;;  %v3420_v39 = vrot.slane %v3353_v34, 4  ;;  %v3043_v49 = vpop.f32.mrf.mxu1 }
 0x714   : > { %v3572_v15 = vmul.f32 0.125, %v3395_v32  ;;  %v3401_v5 = vadd.f32 %v3400_v8, %v3399_v50  ;;  %v7601_v56 = vadd.f32 %v3033_v37, %v7531_v17  ;;  %v3602_v40 = vadd.f32 1e-05, %v3570_v2 }
 0x715   : > { %v3406_v11 = vrot.slane %v3405_v58, 1  ;;  %v3411_v20 = vadd.f32 %v3410_v14, %v3409_v27  ;;  %v3416_v6 = vrot.slane %v3415_v22, 2  ;;  %v3421_v12 = vadd.f32 %v3420_v39, %v3353_v34 }
 0x716   : > { %v3140_v16 = vrot.slane %v3139_v21, 2  ;;  %v3603_v7 = vadd.f32 1e-05, %v3571_v24  ;;  %v3573_v55 = vmul.f32 0.125, %v3401_v5  ;;  %v3144_v46 = vrot.slane %v7601_v56, 4 }
 0x717   : > { %v3407_v41 = vadd.f32 %v3406_v11, %v3405_v58  ;;  %v3412_v23 = vrot.slane %v3411_v20, 1  ;;  %v3604_v33 = vadd.f32 1e-05, %v3572_v15  ;;  %v3417_v42 = vadd.f32 %v3416_v6, %v3415_v22  ;;  %v3045_v15 = vpop.f32.mrf.mxu1 }
 0x718   : > { %v3141_v44 = vadd.f32 %v3140_v16, %v3139_v21  ;;  %v3422_v61 = vrot.slane %v3421_v12, 2  ;;  %5464 = vrsqrt.f32 %v3602_v40  ;;  %v3145_v59 = vadd.f32 %v3144_v46, %v7601_v56 }
 0x719   : > { %v7606_v50 = vadd.f32 %v3035_v47, %v7529_v9  ;;  %5466 = vrsqrt.f32 %v3603_v7  ;;  %v3605_v27 = vadd.f32 1e-05, %v3573_v55  ;;  %v3574_v62 = vmul.f32 0.125, %v3407_v41 }
 0x71a   : > { %v3142_v37 = vrot.slane %v3141_v44, 1  ;;  %v3413_v34 = vadd.f32 %v3412_v23, %v3411_v20  ;;  %v3146_v24 = vrot.slane %v3145_v59, 2  ;;  %v7610_v32 = vadd.f32 %v3037_v19, %v7531_v17 }
 0x71b   : > { %v3150_v21 = vrot.slane %v7606_v50, 4  ;;  %5468 = vrsqrt.f32 %v3604_v33  ;;  %v3418_v8 = vrot.slane %v3417_v42, 1  ;;  %v7612_v58 = vadd.f32 %v3422_v61, %v3421_v12 }
 0x71c   : > { %v3143_v2 = vadd.f32 %v3142_v37, %v3141_v44  ;;  %v3147_v22 = vadd.f32 %v3146_v24, %v3145_v59  ;;  %v3156_v39 = vrot.slane %v7610_v32, 4  ;;  %5470 = vrsqrt.f32 %v3605_v27 }
 0x71d   : > { %v3151_v47 = vadd.f32 %v3150_v21, %v7606_v50  ;;  %v7616_v5 = vadd.f32 1e-05, %v3574_v62  ;;  %v3575_v11 = vmul.f32 0.125, %v3413_v34  ;;  %v7619_v20 = vadd.f32 %v3041_v45, %v7529_v9 }
 0x71e   : > { %v3290_v14 = vmul.f32 0.125, %v3143_v2  ;;  %v3148_v6 = vrot.slane %v3147_v22, 1  ;;  %v3157_v40 = vadd.f32 %v3156_v39, %v7610_v32  ;;  %v3419_v16 = vadd.f32 %v3418_v8, %v3417_v42 }
 0x71f   : > { %v3152_v12 = vrot.slane %v3151_v47, 2  ;;  %v3162_v55 = vrot.slane %v7619_v20, 4  ;;  %v7628_v41 = vadd.f32 %v3043_v49, %v7531_v17  ;;  %v7632_v33 = vadd.f32 1e-05, %v3575_v11 }
 0x720   : > { %v7622_v19 = vsub.f32 %v7541_v54, %v3290_v14  ;;  %v3149_v45 = vadd.f32 %v3148_v6, %v3147_v22  ;;  %v3158_v46 = vrot.slane %v3157_v40, 2  ;;  %v3047_v54 = vpop.f32.mrf.mxu1  ;;  %v7637_v37 = vadd.f32 %v3045_v15, %v7529_v9 }
 0x721   : > { %v3153_v44 = vadd.f32 %v3152_v12, %v3151_v47  ;;  %v3163_v61 = vadd.f32 %v3162_v55, %v7619_v20  ;;  %v3168_v42 = vrot.slane %v7628_v41, 4  ;;  %v7642_v21 = vadd.f32 %v3047_v54, %v7531_v17 }
 0x722   : > { %v3354_v23 = vmul.f32 %v7622_v19, %v7622_v19  ;;  %v3291_v27 = vmul.f32 0.125, %v3149_v45  ;;  %v3159_v62 = vadd.f32 %v3158_v46, %v3157_v40  ;;  %v3174_v24 = vrot.slane %v7637_v37, 4 }
 0x723   : > { %v3154_v49 = vrot.slane %v3153_v44, 1  ;;  %v3164_v34 = vrot.slane %v3163_v61, 2  ;;  %v3169_v2 = vadd.f32 %v3168_v42, %v7628_v41  ;;  %v3180_v12 = vrot.slane %v7642_v21, 4 }
 0x724   : > { %v3426_v59 = vrot.slane %v3354_v23, 4  ;;  %v7645_v14 = vsub.f32 %v7601_v56, %v3291_v27  ;;  %v3160_v47 = vrot.slane %v3159_v62, 1  ;;  %v3175_v6 = vadd.f32 %v3174_v24, %v7637_v37 }
 0x725   : > { %v3155_v22 = vadd.f32 %v3154_v49, %v3153_v44  ;;  %v7647_v39 = vpop.eup %5464  ;;  %v3165_v15 = vadd.f32 %v3164_v34, %v3163_v61  ;;  %v3170_v11 = vrot.slane %v3169_v2, 2  ;;  %v3181_v42 = vadd.f32 %v3180_v12, %v7642_v21 }
 0x726   : > { %v3427_v8 = vadd.f32 %v3426_v59, %v3354_v23  ;;  %v7651_v40 = vpop.eup %5466  ;;  %v3355_v45 = vmul.f32 %v7645_v14, %v7645_v14  ;;  %v3161_v46 = vadd.f32 %v3160_v47, %v3159_v62  ;;  %v3176_v44 = vrot.slane %v3175_v6, 2 }
 0x727   : > { %v3292_v23 = vmul.f32 0.125, %v3155_v22  ;;  %v3166_v56 = vrot.slane %v3165_v15, 1  ;;  %v3171_v54 = vadd.f32 %v3170_v11, %v3169_v2  ;;  %v3182_v53 = vrot.slane %v3181_v42, 2 }
 0x728   : > { %v3428_v55 = vrot.slane %v3427_v8, 2  ;;  %v7656_v59 = vpop.eup %5468  ;;  %v3432_v27 = vrot.slane %v3355_v45, 4  ;;  %v3293_v34 = vmul.f32 0.125, %v3161_v46  ;;  %v3177_v43 = vadd.f32 %v3176_v44, %v3175_v6 }
 0x729   : > { %v7659_v49 = vsub.f32 %v7606_v50, %v3292_v23  ;;  %v3167_v24 = vadd.f32 %v3166_v56, %v3165_v15  ;;  %v3172_v7 = vrot.slane %v3171_v54, 1  ;;  %v7661_v36 = vpop.eup %5470  ;;  %v3576_v62 = vmul.f32 0.125, %v3419_v16 }
 0x72a   : > { %v3429_v61 = vadd.f32 %v3428_v55, %v3427_v8  ;;  %v3433_v22 = vadd.f32 %v3432_v27, %v3355_v45  ;;  %v7666_v47 = vsub.f32 %v7610_v32, %v3293_v34  ;;  %v3051_v8 = vpop.f32.mrf.mxu1  ;;  %v3178_v50 = vrot.slane %v3177_v43, 1 }
 0x72b   : > { %v3356_v2 = vmul.f32 %v7659_v49, %v7659_v49  ;;  %v3294_v11 = vmul.f32 0.125, %v3167_v24  ;;  %v3173_v12 = vadd.f32 %v3172_v7, %v3171_v54  ;;  %v3183_v55 = vadd.f32 %v3182_v53, %v3181_v42 }
 0x72c   : > { %v3430_v23 = vrot.slane %v3429_v61, 1  ;;  %v3434_v15 = vrot.slane %v3433_v22, 2  ;;  %v3357_v6 = vmul.f32 %v7666_v47, %v7666_v47  ;;  %v3179_v56 = vadd.f32 %v3178_v50, %v3177_v43  ;;  %v3053_v53 = vpop.f32.mrf.mxu1 }
 0x72d   : > { %v3438_v46 = vrot.slane %v3356_v2, 4  ;;  %v7671_v16 = vsub.f32 %v7619_v20, %v3294_v11  ;;  %v3295_v45 = vmul.f32 0.125, %v3173_v12  ;;  %v3184_v44 = vrot.slane %v3183_v55, 1 }
 0x72e   : > { %v8637_v32 = vrot.slane %v7612_v58, 1  ;;  %v3435_v34 = vadd.f32 %v3434_v15, %v3433_v22  ;;  %v3444_v54 = vrot.slane %v3357_v6, 4  ;;  %v3296_v0 = vmul.f32 0.125, %v3179_v56 }
 0x72f   : > { %v3439_v7 = vadd.f32 %v3438_v46, %v3356_v2  ;;  %v3358_v42 = vmul.f32 %v7671_v16, %v7671_v16  ;;  %v7679_v24 = vsub.f32 %v7628_v41, %v3295_v45  ;;  %v3185_v20 = vadd.f32 %v3184_v44, %v3183_v55  ;;  %v3055_v41 = vpop.f32.mrf.mxu1 }
 0x730   : > { %v3425_v27 = vadd.f32 %v8637_v32, %v7612_v58  ;;  %v3431_v11 = vadd.f32 %v3430_v23, %v3429_v61  ;;  %v3436_v12 = vrot.slane %v3435_v34, 1  ;;  %v3445_v50 = vadd.f32 %v3444_v54, %v3357_v6 }
 0x731   : > { %v3440_v43 = vrot.slane %v3439_v7, 2  ;;  %v3450_v35 = vrot.slane %v3358_v42, 4  ;;  %v3359_v58 = vmul.f32 %v7679_v24, %v7679_v24  ;;  %v7684_v22 = vsub.f32 %v7637_v37, %v3296_v0 }
 0x732   : > { %v3297_v2 = vmul.f32 0.125, %v3185_v20  ;;  %v3577_v15 = vmul.f32 0.125, %v3425_v27  ;;  %v3437_v46 = vadd.f32 %v3436_v12, %v3435_v34  ;;  %v3446_v48 = vrot.slane %v3445_v50, 2  ;;  %v3057_v12 = vpop.f32.mrf.mxu1 }
 0x733   : > { %8638 = vst [vmem:[#allocation36_spill] sm:$0xff] %v7684_v22  ;;  %v3441_v32 = vadd.f32 %v3440_v43, %v3439_v7  ;;  %v3451_v45 = vadd.f32 %v3450_v35, %v3358_v42  ;;  %v3456_v56 = vrot.slane %v3359_v58, 4  ;;  %v3360_v61 = vmul.f32 %v7684_v22, %v7684_v22 }
 0x734   : > { %v7689_v55 = vsub.f32 %v7642_v21, %v3297_v2  ;;  %v3578_v23 = vmul.f32 0.125, %v3431_v11  ;;  %v3447_v44 = vadd.f32 %v3446_v48, %v3445_v50  ;;  %v3052_v0 = vadd.f32 %v3051_v8, %v7529_v9 }
 0x735   : > { %v3442_v6 = vrot.slane %v3441_v32, 1  ;;  %v3452_v37 = vrot.slane %v3451_v45, 2  ;;  %v3457_v54 = vadd.f32 %v3456_v56, %v3359_v58  ;;  %v3462_v27 = vrot.slane %v3360_v61, 4 }
 0x736   : > { %8639 = vst [vmem:[#allocation37_spill] sm:$0xff] %v7689_v55  ;;  %v3361_v34 = vmul.f32 %v7689_v55, %v7689_v55  ;;  %v3579_v7 = vmul.f32 0.125, %v3437_v46  ;;  %v3448_v42 = vrot.slane %v3447_v44, 1  ;;  %v3186_v20 = vrot.slane %v3052_v0, 4 }
 0x737   : > { %v3443_v35 = vadd.f32 %v3442_v6, %v3441_v32  ;;  %v3453_v43 = vadd.f32 %v3452_v37, %v3451_v45  ;;  %v3458_v4 = vrot.slane %v3457_v54, 2  ;;  %v3463_v21 = vadd.f32 %v3462_v27, %v3360_v61  ;;  %v3061_v6 = vpop.f32.mrf.mxu1 }
 0x738   : > { %v3468_v2 = vrot.slane %v3361_v34, 4  ;;  %5472 = vrsqrt.f32 %v7616_v5  ;;  %v3608_v48 = vadd.f32 1e-05, %v3576_v62  ;;  %v3187_v11 = vadd.f32 %v3186_v20, %v3052_v0 }
 0x739   : > { %v3609_v8 = vadd.f32 1e-05, %v3577_v15  ;;  %v3580_v50 = vmul.f32 0.125, %v3443_v35  ;;  %v3449_v58 = vadd.f32 %v3448_v42, %v3447_v44  ;;  %v3454_v56 = vrot.slane %v3453_v43, 1  ;;  %v3063_v42 = vpop.f32.mrf.mxu1 }
 0x73a   : > { %5474 = vrsqrt.f32 %v7632_v33  ;;  %v3610_v30 = vadd.f32 1e-05, %v3578_v23  ;;  %v3188_v46 = vrot.slane %v3187_v11, 2  ;;  %v7697_v32 = vadd.f32 %v3053_v53, %v7531_v17 }
 0x73b   : > { %v3611_v45 = vadd.f32 1e-05, %v3579_v7  ;;  %v3459_v37 = vadd.f32 %v3458_v4, %v3457_v54  ;;  %v3464_v61 = vrot.slane %v3463_v21, 2  ;;  %v3469_v27 = vadd.f32 %v3468_v2, %v3361_v34 }
 0x73c   : > { %5476 = vrsqrt.f32 %v3608_v48  ;;  %v3189_v5 = vadd.f32 %v3188_v46, %v3187_v11  ;;  %v3192_v62 = vrot.slane %v7697_v32, 4  ;;  %v3612_v15 = vadd.f32 1e-05, %v3580_v50 }
 0x73d   : > { %5478 = vrsqrt.f32 %v3609_v8  ;;  %v3581_v44 = vmul.f32 0.125, %v3449_v58  ;;  %v3455_v35 = vadd.f32 %v3454_v56, %v3453_v43  ;;  %v7702_v53 = vadd.f32 %v3055_v41, %v7529_v9  ;;  %v3065_v58 = vpop.f32.mrf.mxu1 }
 0x73e   : > { %5480 = vrsqrt.f32 %v3610_v30  ;;  %v3190_v33 = vrot.slane %v3189_v5, 1  ;;  %v3193_v23 = vadd.f32 %v3192_v62, %v7697_v32  ;;  %v3460_v4 = vrot.slane %v3459_v37, 1 }
 0x73f   : > { %5482 = vrsqrt.f32 %v3611_v45  ;;  %v7704_v54 = vadd.f32 %v3464_v61, %v3463_v21  ;;  %v3470_v34 = vrot.slane %v3469_v27, 2  ;;  %v3198_v2 = vrot.slane %v7702_v53, 4 }
 0x740   : > { %v3191_v7 = vadd.f32 %v3190_v33, %v3189_v5  ;;  %v3194_v20 = vrot.slane %v3193_v23, 2  ;;  %v7708_v48 = vadd.f32 %v3057_v12, %v7531_v17  ;;  %5484 = vrsqrt.f32 %v3612_v15 }
 0x741   : > { %v3613_v30 = vadd.f32 1e-05, %v3581_v44  ;;  %v3582_v43 = vmul.f32 0.125, %v3455_v35  ;;  %v3199_v41 = vadd.f32 %v3198_v2, %v7702_v53  ;;  %v3461_v21 = vadd.f32 %v3460_v4, %v3459_v37 }
 0x742   : > { %v3298_v11 = vmul.f32 0.125, %v3191_v7  ;;  %v3195_v8 = vadd.f32 %v3194_v20, %v3193_v23  ;;  %v3204_v50 = vrot.slane %v7708_v48, 4  ;;  %v3466_v56 = vrot.slane %v7704_v54, 1  ;;  %v3067_v23 = vpop.f32.mrf.mxu1 }
 0x743   : > { %v7713_v46 = vadd.f32 %v3470_v34, %v3469_v27  ;;  %v7716_v45 = vadd.f32 %v3061_v6, %v7529_v9  ;;  %v3200_v5 = vrot.slane %v3199_v41, 2  ;;  %5486 = vrsqrt.f32 %v3613_v30 }
 0x744   : > { %v7718_v12 = vsub.f32 %v3052_v0, %v3298_v11  ;;  %v3196_v61 = vrot.slane %v3195_v8, 1  ;;  %v3205_v62 = vadd.f32 %v3204_v50, %v7708_v48  ;;  %v7723_v44 = vadd.f32 1e-05, %v3582_v43 }
 0x745   : > { %v7721_v15 = vpop.eup %5472  ;;  %v3210_v37 = vrot.slane %v7716_v45, 4  ;;  %v7727_v35 = vadd.f32 %v3063_v42, %v7531_v17  ;;  %v3201_v0 = vadd.f32 %v3200_v5, %v3199_v41  ;;  %v7733_v34 = vmul.f32 0.125, %v3461_v21 }
 0x746   : > { %8640 = vst [vmem:[#allocation38_spill] sm:$0xff] %v7718_v12  ;;  %v3362_v6 = vmul.f32 %v7718_v12, %v7718_v12  ;;  %v3197_v27 = vadd.f32 %v3196_v61, %v3195_v8  ;;  %v3206_v33 = vrot.slane %v3205_v62, 2  ;;  %v7738_v2 = vadd.f32 %v3065_v58, %v7529_v9 }
 0x747   : > { %v7731_v4 = vpop.eup %5474  ;;  %v3211_v7 = vadd.f32 %v3210_v37, %v7716_v45  ;;  %v3216_v20 = vrot.slane %v7727_v35, 4  ;;  %v3202_v43 = vrot.slane %v3201_v0, 1  ;;  %v7745_v21 = vadd.f32 %v3067_v23, %v7531_v17 }
 0x748   : > { %v3474_v42 = vrot.slane %v3362_v6, 4  ;;  %v3299_v30 = vmul.f32 0.125, %v3197_v27  ;;  %v3207_v11 = vadd.f32 %v3206_v33, %v3205_v62  ;;  %v3222_v61 = vrot.slane %v7738_v2, 4 }
 0x749   : > { %v7740_v50 = vpop.eup %5476  ;;  %v3212_v8 = vrot.slane %v3211_v7, 2  ;;  %v3217_v41 = vadd.f32 %v3216_v20, %v7727_v35  ;;  %v3203_v29 = vadd.f32 %v3202_v43, %v3201_v0  ;;  %v3228_v20 = vrot.slane %v7745_v21, 4 }
 0x74a   : > { %v7747_v5 = vpop.eup %5478  ;;  %v3475_v37 = vadd.f32 %v3474_v42, %v3362_v6  ;;  %v7750_v58 = vsub.f32 %v7697_v32, %v3299_v30  ;;  %v3208_v27 = vrot.slane %v3207_v11, 1  ;;  %v3223_v31 = vadd.f32 %v3222_v61, %v7738_v2 }
 0x74b   : > { %v7752_v26 = vpop.eup %5480  ;;  %v3213_v62 = vadd.f32 %v3212_v8, %v3211_v7  ;;  %v3218_v33 = vrot.slane %v3217_v41, 2  ;;  %v3300_v6 = vmul.f32 0.125, %v3203_v29  ;;  %v3229_v43 = vadd.f32 %v3228_v20, %v7745_v21 }
 0x74c   : > { %8641 = vst [vmem:[#allocation39_spill] sm:$0xff] %v7750_v58  ;;  %v7756_v13 = vpop.eup %5482  ;;  %v3476_v23 = vrot.slane %v3475_v37, 2  ;;  %v3363_v25 = vmul.f32 %v7750_v58, %v7750_v58  ;;  %v3209_v42 = vadd.f32 %v3208_v27, %v3207_v11  ;;  %v3224_v0 = vrot.slane %v3223_v31, 2 }
 0x74d   : > { %v3214_v32 = vrot.slane %v3213_v62, 1  ;;  %v3219_v30 = vadd.f32 %v3218_v33, %v3217_v41  ;;  %v7761_v38 = vpop.eup %5484  ;;  %v3467_v7 = vadd.f32 %v3466_v56, %v7704_v54  ;;  %v7765_v61 = vsub.f32 %v7702_v53, %v3300_v6 }
 0x74e   : > { %v3480_v8 = vrot.slane %v3363_v25, 4  ;;  %v3301_v10 = vmul.f32 0.125, %v3209_v42  ;;  %v3225_v55 = vadd.f32 %v3224_v0, %v3223_v31  ;;  %v3230_v58 = vrot.slane %v3229_v43, 2 }
 0x74f   : > { %v3215_v3 = vadd.f32 %v3214_v32, %v3213_v62  ;;  %v3220_v12 = vrot.slane %v3219_v30, 1  ;;  %v3477_v29 = vadd.f32 %v3476_v23, %v3475_v37  ;;  %v3364_v41 = vmul.f32 %v7765_v61, %v7765_v61 }
 0x750   : > { %v3481_v11 = vadd.f32 %v3480_v8, %v3363_v25  ;;  %v7770_v27 = vsub.f32 %v7708_v48, %v3301_v10  ;;  %v3226_v54 = vrot.slane %v3225_v55, 1  ;;  %v3231_v56 = vadd.f32 %v3230_v58, %v3229_v43  ;;  %v7772_v22 = vpop.eup %5486 }
 0x751   : > { %v3302_v33 = vmul.f32 0.125, %v3215_v3  ;;  %v3221_v20 = vadd.f32 %v3220_v12, %v3219_v30  ;;  %v3472_v53 = vrot.slane %v7713_v46, 1  ;;  %v3486_v6 = vrot.slane %v3364_v41, 4 }
 0x752   : > { %8642 = vst [vmem:[#allocation40_spill] sm:$0xff] %v7770_v27  ;;  %v3482_v62 = vrot.slane %v3481_v11, 2  ;;  %v3365_v31 = vmul.f32 %v7770_v27, %v7770_v27  ;;  %v3227_v23 = vadd.f32 %v3226_v54, %v3225_v55  ;;  %v3232_v10 = vrot.slane %v3231_v56, 1 }
 0x753   : > { %v7778_v25 = vsub.f32 %v7716_v45, %v3302_v33  ;;  %v3303_v37 = vmul.f32 0.125, %v3221_v20  ;;  %v3478_v48 = vrot.slane %v3477_v29, 1  ;;  %v3487_v12 = vadd.f32 %v3486_v6, %v3364_v41  ;;  %v3071_v33 = vpop.f32.mrf.mxu1 }
 0x754   : > { %v3483_v3 = vadd.f32 %v3482_v62, %v3481_v11  ;;  %v3492_v42 = vrot.slane %v3365_v31, 4  ;;  %v3304_v30 = vmul.f32 0.125, %v3227_v23  ;;  %v3233_v0 = vadd.f32 %v3232_v10, %v3231_v56 }
 0x755   : > { %8643 = vst [vmem:[#allocation41_spill] sm:$0xff] %v7778_v25  ;;  %v3366_v58 = vmul.f32 %v7778_v25, %v7778_v25  ;;  %v7783_v32 = vsub.f32 %v7727_v35, %v3303_v37  ;;  %v3584_v43 = vmul.f32 0.125, %v3467_v7  ;;  %v3488_v27 = vrot.slane %v3487_v12, 2 }
 0x756   : > { %v3484_v8 = vrot.slane %v3483_v3, 1  ;;  %v3493_v45 = vadd.f32 %v3492_v42, %v3365_v31  ;;  %v7788_v11 = vsub.f32 %v7738_v2, %v3304_v30  ;;  %v3305_v41 = vmul.f32 0.125, %v3233_v0  ;;  %v3073_v30 = vpop.f32.mrf.mxu1 }
 0x757   : > { %v3498_v20 = vrot.slane %v3366_v58, 4  ;;  %v3367_v55 = vmul.f32 %v7783_v32, %v7783_v32  ;;  %v3473_v54 = vadd.f32 %v3472_v53, %v7713_v46  ;;  %v3479_v62 = vadd.f32 %v3478_v48, %v3477_v29 }
 0x758   : > { %8644 = vst [vmem:[#allocation42_spill] sm:$0xff] %v7788_v11  ;;  %v3489_v35 = vadd.f32 %v3488_v27, %v3487_v12  ;;  %v3494_v6 = vrot.slane %v3493_v45, 2  ;;  %v3368_v7 = vmul.f32 %v7788_v11, %v7788_v11  ;;  %v7794_v31 = vsub.f32 %v7745_v21, %v3305_v41 }
 0x759   : > { %v3499_v37 = vadd.f32 %v3498_v20, %v3366_v58  ;;  %v3504_v56 = vrot.slane %v3367_v55, 4  ;;  %v3485_v23 = vadd.f32 %v3484_v8, %v3483_v3  ;;  %v7797_v2 = vadd.f32 %v3071_v33, %v7529_v9 }
 0x75a   : > { %8645 = vst [vmem:[#allocation43_spill] sm:$0xff] %v7794_v31  ;;  %v3490_v10 = vrot.slane %v3489_v35, 1  ;;  %v3495_v42 = vadd.f32 %v3494_v6, %v3493_v45  ;;  %v3510_v29 = vrot.slane %v3368_v7, 4  ;;  %v3369_v27 = vmul.f32 %v7794_v31, %v7794_v31 }
 0x75b   : > { %v3500_v0 = vrot.slane %v3499_v37, 2  ;;  %v3505_v46 = vadd.f32 %v3504_v56, %v3367_v55  ;;  %v3615_v53 = vadd.f32 1e-05, %v7733_v34  ;;  %v3585_v48 = vmul.f32 0.125, %v3473_v54  ;;  %v3075_v55 = vpop.f32.mrf.mxu1 }
 0x75c   : > { %v3586_v12 = vmul.f32 0.125, %v3479_v62  ;;  %v3234_v21 = vrot.slane %v7797_v2, 4  ;;  %v3491_v58 = vadd.f32 %v3490_v10, %v3489_v35  ;;  %v3496_v3 = vrot.slane %v3495_v42, 1 }
 0x75d   : > { %v3501_v8 = vadd.f32 %v3500_v0, %v3499_v37  ;;  %v3516_v45 = vrot.slane %v3369_v27, 4  ;;  %5488 = vrsqrt.f32 %v7723_v44  ;;  %v3616_v33 = vadd.f32 1e-05, %v3584_v43 }
 0x75e   : > { %v3235_v20 = vadd.f32 %v3234_v21, %v7797_v2  ;;  %v3587_v41 = vmul.f32 0.125, %v3485_v23  ;;  %v3506_v6 = vrot.slane %v3505_v46, 2  ;;  %v3511_v56 = vadd.f32 %v3510_v29, %v3368_v7  ;;  %v3077_v21 = vpop.f32.mrf.mxu1 }
 0x75f   : > { %v3517_v11 = vadd.f32 %v3516_v45, %v3369_v27  ;;  %5490 = vrsqrt.f32 %v3615_v53  ;;  %v3617_v34 = vadd.f32 1e-05, %v3585_v48  ;;  %v7806_v62 = vadd.f32 %v3073_v30, %v7531_v17 }
 0x760   : > { %v3236_v54 = vrot.slane %v3235_v20, 2  ;;  %v3618_v35 = vadd.f32 1e-05, %v3586_v12  ;;  %v3588_v10 = vmul.f32 0.125, %v3491_v58  ;;  %v3497_v37 = vadd.f32 %v3496_v3, %v3495_v42 }
 0x761   : > { %v3502_v0 = vrot.slane %v3501_v8, 1  ;;  %5492 = vrsqrt.f32 %v3616_v33  ;;  %v3240_v43 = vrot.slane %v7806_v62, 4  ;;  %v3619_v25 = vadd.f32 1e-05, %v3587_v41 }
 0x762   : > { %v3237_v44 = vadd.f32 %v3236_v54, %v3235_v20  ;;  %v3507_v23 = vadd.f32 %v3506_v6, %v3505_v46  ;;  %v3512_v31 = vrot.slane %v3511_v56, 2  ;;  %v3518_v7 = vrot.slane %v3517_v11, 2  ;;  %v3081_v46 = vpop.f32.mrf.mxu1 }
 0x763   : > { %5494 = vrsqrt.f32 %v3617_v34  ;;  %v3241_v27 = vadd.f32 %v3240_v43, %v7806_v62  ;;  %v7811_v30 = vadd.f32 %v3075_v55, %v7529_v9  ;;  %v3620_v53 = vadd.f32 1e-05, %v3588_v10 }
 0x764   : > { %v3238_v29 = vrot.slane %v3237_v44, 1  ;;  %5496 = vrsqrt.f32 %v3618_v35  ;;  %v3589_v42 = vmul.f32 0.125, %v3497_v37  ;;  %v3503_v48 = vadd.f32 %v3502_v0, %v3501_v8 }
 0x765   : > { %v3242_v58 = vrot.slane %v3241_v27, 2  ;;  %v3246_v3 = vrot.slane %v7811_v30, 4  ;;  %v7815_v45 = vadd.f32 %v3077_v21, %v7531_v17  ;;  %5498 = vrsqrt.f32 %v3619_v25 }
 0x766   : > { %v3239_v12 = vadd.f32 %v3238_v29, %v3237_v44  ;;  %v3508_v33 = vrot.slane %v3507_v23, 1  ;;  %v7817_v20 = vadd.f32 %v3512_v31, %v3511_v56  ;;  %v3519_v41 = vadd.f32 %v3518_v7, %v3517_v11  ;;  %v3083_v11 = vpop.f32.mrf.mxu1 }
 0x767   : > { %v3243_v55 = vadd.f32 %v3242_v58, %v3241_v27  ;;  %v3247_v34 = vadd.f32 %v3246_v3, %v7811_v30  ;;  %v3252_v54 = vrot.slane %v7815_v45, 4  ;;  %5500 = vrsqrt.f32 %v3620_v53 }
 0x768   : > { %v3306_v6 = vmul.f32 0.125, %v3239_v12  ;;  %v3621_v8 = vadd.f32 1e-05, %v3589_v42  ;;  %v3590_v35 = vmul.f32 0.125, %v3503_v48  ;;  %v7822_v10 = vadd.f32 %v3081_v46, %v7529_v9 }
 0x769   : > { %v3244_v25 = vrot.slane %v3243_v55, 1  ;;  %v3248_v0 = vrot.slane %v3247_v34, 2  ;;  %v3253_v31 = vadd.f32 %v3252_v54, %v7815_v45  ;;  %v3509_v44 = vadd.f32 %v3508_v33, %v3507_v23 }
 0x76a   : > { %v7825_v37 = vsub.f32 %v7797_v2, %v3306_v6  ;;  %v7828_v56 = vpop.eup %5488  ;;  %v3514_v43 = vrot.slane %v7817_v20, 1  ;;  %v3520_v21 = vrot.slane %v3519_v41, 1  ;;  %v3258_v7 = vrot.slane %v7822_v10, 4 }
 0x76b   : > { %v3245_v27 = vadd.f32 %v3244_v25, %v3243_v55  ;;  %v3249_v53 = vadd.f32 %v3248_v0, %v3247_v34  ;;  %v3254_v2 = vrot.slane %v3253_v31, 2  ;;  %v7839_v12 = vmul.f32 %v7647_v39, %v7558_v18 }
 0x76c   : > { %v3370_v29 = vmul.f32 %v7825_v37, %v7825_v37  ;;  %v7834_v42 = vpop.eup %5490  ;;  %v3259_v48 = vadd.f32 %v3258_v7, %v7822_v10  ;;  %v7843_v23 = vmul.f32 %v7651_v40, %v7564_v52  ;;  %v7846_v58 = vadd.f32 %v3083_v11, %v7531_v17 }
 0x76d   : > { %v3307_v46 = vmul.f32 0.125, %v3245_v27  ;;  %v3250_v33 = vrot.slane %v3249_v53, 1  ;;  %v3255_v6 = vadd.f32 %v3254_v2, %v3253_v31  ;;  %5502 = vrsqrt.f32 %v3621_v8 }
 0x76e   : > { %8646 = vst [vmem:[#allocation44_spill] sm:$0xff] %v7843_v23  ;;  %v3522_v3 = vrot.slane %v3370_v29, 4  ;;  %v7848_v55 = vpop.eup %5492  ;;  %v3260_v34 = vrot.slane %v3259_v48, 2  ;;  %v3698_v54 = vmax.f32 %v7839_v12, %v7843_v23  ;;  %v3264_v18 = vrot.slane %v7846_v58, 4 }
 0x76f   : > { %v7854_v52 = vsub.f32 %v7806_v62, %v3307_v46  ;;  %v3251_v40 = vadd.f32 %v3250_v33, %v3249_v53  ;;  %v3256_v25 = vrot.slane %v3255_v6, 1  ;;  %v3622_v11 = vadd.f32 1e-05, %v3590_v35  ;;  %v3085_v62 = vpop.f32.mrf.mxu1 }
 0x770   : > { %v3523_v39 = vadd.f32 %v3522_v3, %v3370_v29  ;;  %v7856_v0 = vpop.eup %5494  ;;  %v3521_v7 = vadd.f32 %v3520_v21, %v3519_v41  ;;  %v3261_v31 = vadd.f32 %v3260_v34, %v3259_v48  ;;  %3699 = vmax.xlane.f32.xlu1 %v3698_v54  ;;  %v3265_v8 = vadd.f32 %v3264_v18, %v7846_v58 }
 0x771   : > { %v7859_v27 = vpop.eup %5496  ;;  %v3371_v23 = vmul.f32 %v7854_v52, %v7854_v52  ;;  %v3308_v29 = vmul.f32 0.125, %v3251_v40  ;;  %v3257_v3 = vadd.f32 %v3256_v25, %v3255_v6  ;;  %v7865_v33 = vmul.f32 %v7656_v59, %v7569_v28 }
 0x772   : > { %v3524_v2 = vrot.slane %v3523_v39, 2  ;;  %v3262_v46 = vrot.slane %v3261_v31, 1  ;;  %v3266_v53 = vrot.slane %v3265_v8, 2  ;;  %v7869_v41 = vmul.f32 %v7661_v36, %v7573_v51  ;;  %v7871_v35 = vpop.eup %5498 }
 0x773   : > { %v3528_v48 = vrot.slane %v3371_v23, 4  ;;  %v7874_v34 = vsub.f32 %v7811_v30, %v3308_v29  ;;  %v3309_v54 = vmul.f32 0.125, %v3257_v3  ;;  %v3591_v6 = vmul.f32 0.125, %v3509_v44  ;;  %v3087_v30 = vpop.f32.mrf.mxu1 }
 0x774   : > { %8647 = vst [vmem:[#allocation45_spill] sm:$0xff] %v7869_v41  ;;  %v3525_v21 = vadd.f32 %v3524_v2, %v3523_v39  ;;  %v3263_v18 = vadd.f32 %v3262_v46, %v3261_v31  ;;  %v3267_v40 = vadd.f32 %v3266_v53, %v3265_v8  ;;  %v3701_v25 = vmax.f32 %v7865_v33, %v7869_v41  ;;  %v7878_v28 = vpop.eup %5500 }
 0x775   : > { %v3515_v59 = vadd.f32 %v3514_v43, %v7817_v20  ;;  %v3529_v36 = vadd.f32 %v3528_v48, %v3371_v23  ;;  %v3372_v51 = vmul.f32 %v7874_v34, %v7874_v34  ;;  %v7884_v39 = vsub.f32 %v7815_v45, %v3309_v54 }
 0x776   : > { %5504 = vrsqrt.f32 %v3622_v11  ;;  %v3526_v2 = vrot.slane %v3525_v21, 1  ;;  %v3310_v44 = vmul.f32 0.125, %v3263_v18  ;;  %v3268_v31 = vrot.slane %v3267_v40, 1  ;;  %3702 = vmax.xlane.f32.xlu0 %v3701_v25 }
 0x777   : > { %v3593_v8 = vmul.f32 0.125, %v3521_v7  ;;  %v3530_v29 = vrot.slane %v3529_v36, 2  ;;  %v3534_v3 = vrot.slane %v3372_v51, 4  ;;  %v3373_v46 = vmul.f32 %v7884_v39, %v7884_v39 }
 0x778   : > { %v3623_v20 = vadd.f32 1e-05, %v3591_v6  ;;  %v7889_v43 = vsub.f32 %v7822_v10, %v3310_v44  ;;  %v3269_v23 = vadd.f32 %v3268_v31, %v3267_v40  ;;  %v7892_v45 = vadd.f32 %v3087_v30, %v7531_v17 }
 0x779   : > { %v3592_v53 = vmul.f32 0.125, %v3515_v59  ;;  %v3531_v11 = vadd.f32 %v3530_v29, %v3529_v36  ;;  %v3535_v48 = vadd.f32 %v3534_v3, %v3372_v51  ;;  %v3540_v54 = vrot.slane %v3373_v46, 4 }
 0x77a   : > { %v3527_v18 = vadd.f32 %v3526_v2, %v3525_v21  ;;  %v3374_v7 = vmul.f32 %v7889_v43, %v7889_v43  ;;  %v3311_v25 = vmul.f32 0.125, %v3269_v23  ;;  %v7897_v41 = vadd.f32 %v3085_v62, %v7529_v9  ;;  %v7899_v6 = vpop.eup %5502 }
 0x77b   : > { %v3625_v10 = vadd.f32 1e-05, %v3593_v8  ;;  %v3532_v44 = vrot.slane %v3531_v11, 1  ;;  %v3536_v40 = vrot.slane %v3535_v48, 2  ;;  %v3541_v31 = vadd.f32 %v3540_v54, %v3373_v46 }
 0x77c   : > { %5506 = vrsqrt.f32 %v3623_v20  ;;  %v3546_v17 = vrot.slane %v3374_v7, 4  ;;  %v7902_v59 = vsub.f32 %v7846_v58, %v3311_v25  ;;  %v3276_v21 = vrot.slane %v7892_v45, 4 }
 0x77d   : > { %v3624_v36 = vadd.f32 1e-05, %v3592_v53  ;;  %v3533_v51 = vadd.f32 %v3532_v44, %v3531_v11  ;;  %v3537_v30 = vadd.f32 %v3536_v40, %v3535_v48  ;;  %v3542_v2 = vrot.slane %v3541_v31, 2 }
 0x77e   : > { %v3594_v29 = vmul.f32 0.125, %v3527_v18  ;;  %v3547_v9 = vadd.f32 %v3546_v17, %v3374_v7  ;;  %v3375_v62 = vmul.f32 %v7902_v59, %v7902_v59  ;;  %v3270_v8 = vrot.slane %v7897_v41, 4 }
 0x77f   : > { %5508 = vrsqrt.f32 %v3625_v10  ;;  %v3595_v3 = vmul.f32 0.125, %v3533_v51  ;;  %v3538_v46 = vrot.slane %v3537_v30, 1  ;;  %v3543_v20 = vadd.f32 %v3542_v2, %v3541_v31 }
 0x780   : > { %v3548_v23 = vrot.slane %v3547_v9, 2  ;;  %v3552_v58 = vrot.slane %v3375_v62, 4  ;;  %v3277_v54 = vadd.f32 %v3276_v21, %v7892_v45  ;;  %v7911_v53 = vmul.f32 %v7721_v15, %v7578_v57 }
 0x781   : > { %v3627_v11 = vadd.f32 1e-05, %v3595_v3  ;;  %v3539_v48 = vadd.f32 %v3538_v46, %v3537_v30  ;;  %v3544_v18 = vrot.slane %v3543_v20, 1  ;;  %v7915_v7 = vmul.f32 %v7731_v4, %v7583_v1 }
 0x782   : > { %v3626_v25 = vadd.f32 1e-05, %v3594_v29  ;;  %v3549_v10 = vadd.f32 %v3548_v23, %v3547_v9  ;;  %v3553_v44 = vadd.f32 %v3552_v58, %v3375_v62  ;;  %v3271_v40 = vadd.f32 %v3270_v8, %v7897_v41 }
 0x783   : > { %v7918_v31 = vpop.eup %5504  ;;  %5510 = vrsqrt.f32 %v3624_v36  ;;  %v3596_v17 = vmul.f32 0.125, %v3539_v48  ;;  %v3545_v21 = vadd.f32 %v3544_v18, %v3543_v20  ;;  %v3704_v57 = vmax.f32 %v7911_v53, %v7915_v7  ;;  %v8648_v18 = vld [vmem:[#allocation36_spill] sm:$0xff] }
 0x784   : > { %5512 = vrsqrt.f32 %v3627_v11  ;;  %v3550_v15 = vrot.slane %v3549_v10, 1  ;;  %v3554_v51 = vrot.slane %v3553_v44, 2  ;;  %v3278_v30 = vrot.slane %v3277_v54, 2 }
 0x785   : > { %v3628_v2 = vadd.f32 1e-05, %v3596_v17  ;;  %v3597_v1 = vmul.f32 0.125, %v3545_v21  ;;  %3705 = vmax.xlane.f32.xlu1 %v3704_v57  ;;  %v7924_v4 = vmul.f32 %v7740_v50, %v7588_v60  ;;  %v7928_v29 = vmul.f32 %v7747_v5, %v7593_v63  ;;  %v8651_v17 = vld [vmem:[#allocation39_spill] sm:$0xff] }
 0x786   : > { %5514 = vrsqrt.f32 %v3626_v25  ;;  %v3551_v36 = vadd.f32 %v3550_v15, %v3549_v10  ;;  %v3555_v9 = vadd.f32 %v3554_v51, %v3553_v44  ;;  %v3272_v62 = vrot.slane %v3271_v40, 2  ;;  %v8649_v10 = vld [vmem:[#allocation37_spill] sm:$0xff] }
 0x787   : > { %5516 = vrsqrt.f32 %v3628_v2  ;;  %v3629_v8 = vadd.f32 1e-05, %v3597_v1  ;;  %v3707_v3 = vmax.f32 %v7924_v4, %v7928_v29  ;;  %v3279_v23 = vadd.f32 %v3278_v30, %v3277_v54 }
 0x788   : > { %v3598_v46 = vmul.f32 0.125, %v3551_v36  ;;  %v3556_v20 = vrot.slane %v3555_v9, 1  ;;  %v7934_v60 = vmul.f32 %v7752_v26, %v7622_v19  ;;  %v7938_v63 = vmul.f32 %v7756_v13, %v7645_v14  ;;  %v8654_v36 = vld [vmem:[#allocation41_spill] sm:$0xff] }
 0x789   : > { %v5507_v50 = vpop.eup %5506  ;;  %5518 = vrsqrt.f32 %v3629_v8  ;;  %3708 = vmax.xlane.f32.xlu0 %v3707_v3  ;;  %v7942_v5 = vmul.f32 %v7761_v38, %v7659_v49  ;;  %v7946_v58 = vmul.f32 %v7772_v22, %v7666_v47  ;;  %v3273_v48 = vadd.f32 %v3272_v62, %v3271_v40  ;;  %v8655_v62 = vld [vmem:[#allocation42_spill] sm:$0xff] }
 0x78a   : > { %v3630_v54 = vadd.f32 1e-05, %v3598_v46  ;;  %v3557_v11 = vadd.f32 %v3556_v20, %v3555_v9  ;;  %v3710_v26 = vmax.f32 %v7934_v60, %v7938_v63  ;;  %v7954_v13 = vmul.f32 %v7828_v56, %v7671_v16 }
 0x78b   : > { %v3713_v19 = vmax.f32 %v7942_v5, %v7946_v58  ;;  %v7958_v38 = vmul.f32 %v7834_v42, %v7679_v24  ;;  %v3280_v47 = vrot.slane %v3279_v23, 1  ;;  %v7964_v25 = vmul.f32 %v7848_v55, %v8648_v18  ;;  %v8650_v42 = vld [vmem:[#allocation38_spill] sm:$0xff] }
 0x78c   : > { %v5509_v14 = vpop.eup %5508  ;;  %v3599_v49 = vmul.f32 0.125, %v3557_v11  ;;  %3711 = vmax.xlane.f32.xlu1 %v3710_v26  ;;  %v7968_v16 = vmul.f32 %v7856_v0, %v8649_v10  ;;  %5520 = vrsqrt.f32 %v3630_v54  ;;  %v3274_v24 = vrot.slane %v3273_v48, 1  ;;  %v8652_v0 = vld [vmem:[#allocation40_spill] sm:$0xff]  ;;  %v4273_v10 = vpop.permute.xlu1 %4272 }
 0x78d   : > { %3714 = vmax.xlane.f32.xlu0 %v3713_v19  ;;  %v3716_v22 = vmax.f32 %v7954_v13, %v7958_v38  ;;  %v7972_v44 = vmul.f32 %v7859_v27, %v8650_v42  ;;  %v7978_v21 = vmul.f32 %v7871_v35, %v8651_v17  ;;  %v7982_v55 = vmul.f32 %v7878_v28, %v7765_v61  ;;  %v8653_v28 = vld [vmem:[#allocation43_spill] sm:$0xff]  ;;  %v8656_v42 = vld [vmem:[#allocation25_spill] sm:$0xff] }
 0x78e   : > { %v3631_v56 = vadd.f32 1e-05, %v3599_v49  ;;  %v3719_v40 = vmax.f32 %v7964_v25, %v7968_v16  ;;  %v7986_v57 = vmul.f32 %v7899_v6, %v8652_v0  ;;  %v3281_v51 = vadd.f32 %v3280_v47, %v3279_v23  ;;  %v8657_v17 = vld [vmem:[#allocation19_spill] sm:$0xff] }
 0x78f   : > { %v3722_v30 = vmax.f32 %v7972_v44, %v7978_v21  ;;  %v7993_v2 = vmul.f32 %v5507_v50, %v7783_v32  ;;  %v3275_v61 = vadd.f32 %v3274_v24, %v3273_v48  ;;  %v7996_v1 = vmul.f32 %v5509_v14, %v8653_v28  ;;  %v8659_v28 = vld [vmem:[#allocation28_spill] sm:$0xff] }
 0x790   : > { %v5511_v15 = vpop.eup %5510  ;;  %5522 = vrsqrt.f32 %v3631_v56  ;;  %3717 = vmax.xlane.f32.xlu1 %v3716_v22  ;;  %v3725_v35 = vmax.f32 %v7982_v55, %v7986_v57  ;;  %v8000_v9 = vmul.f32 %v7918_v31, %v8654_v36  ;;  %v3313_v46 = vmul.f32 0.125, %v3281_v51  ;;  %v4277_v51 = vpop.permute.xlu1 %4276 }
 0x791   : > { %v5513_v27 = vpop.eup %5512  ;;  %3720 = vmax.xlane.f32.xlu0 %v3719_v40  ;;  %v8003_v8 = vmul.f32 %v5511_v15, %v8655_v62  ;;  %v3312_v54 = vmul.f32 0.125, %v3275_v61  ;;  %v2291_v40 = vmul.f32 %v8656_v42, %v8656_v42  ;;  %v2290_v0 = vmul.f32 %v8657_v17, %v8657_v17  ;;  %v8663_v17 = vld [vmem:[#allocation20_spill] sm:$0xff] }
 0x792   : > { %v3728_v32 = vmax.f32 %v8000_v9, %v7993_v2  ;;  %v8010_v23 = vmul.f32 %v5513_v27, %v7854_v52  ;;  %v8022_v26 = vsub.f32 %v7892_v45, %v3313_v46  ;;  %v8660_v46 = vld [vmem:[#allocation21_spill] sm:$0xff] }
 0x793   : > { %v5515_v6 = vpop.eup %5514  ;;  %v3731_v20 = vmax.f32 %v8003_v8, %v7996_v1  ;;  %v4186_v27 = vmul.f32 1.0050251, %v2291_v40 }
 0x794   : > { %v5517_v3 = vpop.eup %5516  ;;  %3723 = vmax.xlane.f32.xlu1 %v3722_v30  ;;  %v8013_v31 = vmul.f32 %v5515_v6, %v7825_v37  ;;  %v8029_v37 = vsub.f32 %v7897_v41, %v3312_v54  ;;  %v4185_v30 = vmul.f32 1.0050251, %v2290_v0  ;;  %v2292_v6 = vmul.f32 %v8659_v28, %v8659_v28  ;;  %v8661_v54 = vld [vmem:[#allocation18_spill] sm:$0xff]  ;;  %v8664_v0 = vld [vmem:[#allocation23_spill] sm:$0xff] }
 0x795   : > { %3726 = vmax.xlane.f32.xlu0 %v3725_v35  ;;  %v8016_v11 = vmul.f32 %v5517_v3, %v7874_v34  ;;  %v3377_v34 = vmul.f32 %v8022_v26, %v8022_v26  ;;  %v8658_v35 = vld [vmem:[#allocation24_spill] sm:$0xff] }
 0x796   : > { %v5519_v50 = vpop.eup %5518  ;;  %v3734_v52 = vmax.f32 %v8013_v31, %v8010_v23  ;;  %v3376_v45 = vmul.f32 %v8029_v37, %v8029_v37  ;;  %v2293_v61 = vmul.f32 %v8658_v35, %v8658_v35  ;;  %v4313_v3 = vadd.f32 %v4273_v10, %v4185_v30 }
 0x797   : > { %v8019_v48 = vmul.f32 %v5519_v50, %v7884_v39  ;;  %v3564_v22 = vrot.slane %v3377_v34, 4  ;;  %v4236_v10 = vsub.f32 -0.005012542, %v8663_v17 }
 0x798   : > { %3729 = vmax.xlane.f32.xlu1 %v3728_v32  ;;  %v3558_v18 = vrot.slane %v3376_v45, 4  ;;  %v4234_v32 = vsub.f32 -0.005012542, %v8660_v46 }
 0x799   : > { %3732 = vmax.xlane.f32.xlu0 %v3731_v20  ;;  %v3737_v19 = vmax.f32 %v8016_v11, %v8019_v48  ;;  %v5521_v14 = vpop.eup %5520  ;;  %v3565_v56 = vadd.f32 %v3564_v22, %v3377_v34  ;;  %v8662_v34 = vld [vmem:[#allocation29_spill] sm:$0xff] }
 0x79a   : > { %v8036_v49 = vmul.f32 %v5521_v14, %v7889_v43  ;;  %v3559_v24 = vadd.f32 %v3558_v18, %v3376_v45  ;;  %v4275_v43 = vpop.permute.xlu0 %4274  ;;  %v4187_v14 = vmul.f32 1.0050251, %v2292_v6  ;;  %v4281_v45 = vpop.permute.xlu1 %4280 }
 0x79b   : > { %v3566_v15 = vrot.slane %v3565_v56, 2  ;;  %v4314_v62 = vadd.f32 %v4275_v43, %v4186_v27  ;;  %v4235_v43 = vsub.f32 -0.005012542, %v8664_v0 }
 0x79c   : > { %3735 = vmax.xlane.f32.xlu1 %v3734_v52  ;;  %v4233_v52 = vsub.f32 -0.005012542, %v8661_v54  ;;  %v4315_v40 = vadd.f32 %v4277_v51, %v4187_v14  ;;  %v8666_v51 = vld [vmem:[#allocation22_spill] sm:$0xff] }
 0x79d   : > { %v5523_v39 = vpop.eup %5522  ;;  %3738 = vmax.xlane.f32.xlu0 %v3737_v19  ;;  %v3567_v36 = vadd.f32 %v3566_v15, %v3565_v56  ;;  %v4188_v19 = vmul.f32 1.0050251, %v2293_v61 }
 0x79e   : > { %v8039_v47 = vmul.f32 %v5523_v39, %v7902_v59  ;;  %v3560_v59 = vrot.slane %v3559_v24, 2  ;;  %v4279_v20 = vpop.permute.xlu0 %4278  ;;  %v2294_v39 = vmul.f32 %v8662_v34, %v8662_v34  ;;  %v4329_v18 = vadd.f32 %v4313_v3, %v4233_v52  ;;  %v4285_v28 = vpop.permute.xlu1 %4284  ;;  %v8667_v52 = vld [vmem:[#allocation31_spill] sm:$0xff] }
 0x79f   : > { %v3568_v22 = vrot.slane %v3567_v36, 1  ;;  %v4316_v42 = vadd.f32 %v4279_v20, %v4188_v19  ;;  %v4331_v35 = vadd.f32 %v4315_v40, %v4235_v43  ;;  %v4239_v19 = vsub.f32 -0.005012542, %v8667_v52  ;;  %v8669_v43 = vld [vmem:[#allocation27_spill] sm:$0xff] }
 0x7a0   : > { %v3740_v41 = vmax.f32 %v8036_v49, %v8039_v47  ;;  %v3561_v50 = vadd.f32 %v3560_v59, %v3559_v24  ;;  %v4189_v15 = vmul.f32 1.0050251, %v2294_v39  ;;  %v8665_v24 = vld [vmem:[#allocation34_spill] sm:$0xff] }
 0x7a1   : > { %v2296_v59 = vmul.f32 %v8665_v24, %v8665_v24  ;;  %v3569_v27 = vadd.f32 %v3568_v22, %v3567_v36  ;;  %v4332_v30 = vadd.f32 %v4316_v42, %v4236_v10  ;;  %v8668_v42 = vld [vmem:[#allocation33_spill] sm:$0xff] }
 0x7a2   : > { %3741 = vmax.xlane.f32.xlu1 %v3740_v41  ;;  %v4330_v41 = vadd.f32 %v4314_v62, %v4234_v32  ;;  %v3562_v56 = vrot.slane %v3561_v50, 1  ;;  %v4317_v61 = vadd.f32 %v4281_v45, %v4189_v15  ;;  %v4237_v62 = vsub.f32 -0.005012542, %v8666_v51 }
 0x7a3   : > { %v4191_v3 = vmul.f32 1.0050251, %v2296_v59  ;;  %v3601_v46 = vmul.f32 0.125, %v3569_v27  ;;  %v2295_v40 = vmul.f32 %v8668_v42, %v8668_v42 }
 0x7a4   : > { %v3563_v6 = vadd.f32 %v3562_v56, %v3561_v50  ;;  %v4333_v32 = vadd.f32 %v4317_v61, %v4237_v62  ;;  %v4283_v56 = vpop.permute.xlu0 %4282 }
 0x7a5   : > { %v4319_v20 = vadd.f32 %v4285_v28, %v4191_v3  ;;  %v3633_v36 = vadd.f32 1e-05, %v3601_v46  ;;  %v4190_v10 = vmul.f32 1.0050251, %v2295_v40 }
 0x7a6   : > { %v3600_v54 = vmul.f32 0.125, %v3563_v6  ;;  %v8670_v6 = vld [vmem:[#allocation44_spill] sm:$0xff] }
 0x7a7   : > { %v4335_v14 = vadd.f32 %v4319_v20, %v4239_v19  ;;  %5524 = vrsqrt.f32 %v3633_v36  ;;  %v4318_v0 = vadd.f32 %v4283_v56, %v4190_v10 }
 0x7a8   : > { %v3632_v34 = vadd.f32 1e-05, %v3600_v54  ;;  %v8084_v24 = vpop.permute.xlu0 %4286  ;;  %v8671_v54 = vld [vmem:[#allocation45_spill] sm:$0xff] }
 0x7aa   : > { %5526 = vrsqrt.f32 %v3632_v34 }
 0x7ac   : > { %v8087_v59 = vpop.permute.xlu0 %4356 }
 0x7b3   : > { %4368 = vrot.lane.b32.xlu1 %v4329_v18, %s5878_s27  ;;  %4370 = vrot.lane.b32.xlu0 %v4330_v41, %s5878_s27  ;;  %v8075_v18 = vpop.permute.xlu1 %4288 }
 0x7b4   : > { %v5525_v50 = vpop.eup %5524 }
 0x7b5   : > { %v8068_v45 = vmul.f32 %v5525_v50, %v8022_v26  ;;  %v4238_v26 = vsub.f32 -0.005012542, %v8669_v43 }
 0x7b7   : > { %4372 = vrot.lane.b32.xlu1 %v4331_v35, %s5878_s27  ;;  %4374 = vrot.lane.b32.xlu0 %v4332_v30, %s5878_s27  ;;  %v5527_v39 = vpop.eup %5526  ;;  %v8079_v17 = vpop.permute.xlu1 %4354 }
 0x7b8   : > { %v8071_v22 = vmul.f32 %v5527_v39, %v8029_v37  ;;  %v4334_v37 = vadd.f32 %v4318_v0, %v4238_v26  ;;  %v8091_v30 = vpop.permute.xlu0 %4362 }
 0x7ba   : > { %v3743_v41 = vmax.f32 %v8071_v22, %v8068_v45 }
 0x7bb   : > { %4376 = vrot.lane.b32.xlu1 %v4333_v32, %s5878_s27  ;;  %v8082_v15 = vpop.permute.xlu1 %4358 }
 0x7bc   : > { %v8097_v62 = vpop.permute.xlu0 %4366 }
 0x7bf   : > { %4380 = vrot.lane.b32.xlu1 %v4335_v14, %s5878_s27  ;;  %v8089_v27 = vpop.permute.xlu1 %4360 }
 0x7c3   : > { %v8093_v35 = vpop.permute.xlu1 %4364 }
 0x7d6   : > { %3744 = vmax.xlane.f32.xlu0 %v3743_v41 }
 0x7ec   : > { %4378 = vrot.lane.b32.xlu0 %v4334_v37, %s5878_s27 }
 0x7f9   : > { %v3700_v61 = vpop.xlane.xlu1 %3699 }
 0x7fa   : > { %v3746_v28 = vsub.f32 %v7839_v12, %v3700_v61  ;;  %v3747_v51 = vsub.f32 %v8670_v6, %v3700_v61 }
 0x7fc   : > { %v3778_v3 = vmul.f32 1.442695, %v3746_v28  ;;  %v3780_v46 = vmul.f32 1.442695, %v3747_v51 }
 0x7fe   : > { %5528 = vpow2.f32 %v3778_v3 }
 0x7ff   : > { %5530 = vpow2.f32 %v3780_v46  ;;  %v3703_v32 = vpop.xlane.xlu0 %3702 }
 0x800   : > { %v3748_v20 = vsub.f32 %v7865_v33, %v3703_v32  ;;  %v3749_v52 = vsub.f32 %v8671_v54, %v3703_v32 }
 0x802   : > { %v3782_v19 = vmul.f32 1.442695, %v3748_v20  ;;  %v3784_v36 = vmul.f32 1.442695, %v3749_v52 }
 0x804   : > { %5532 = vpow2.f32 %v3782_v19 }
 0x805   : > { %5534 = vpow2.f32 %v3784_v36 }
 0x80b   : > { %v8101_v14 = vpop.eup %5528 }
 0x80c   : > { %v8103_v12 = vpop.eup %5530 }
 0x80d   : > { %v3842_v34 = vadd.f32 %v8103_v12, %v8101_v14 }
 0x80e   : > { %v3706_v50 = vpop.xlane.xlu1 %3705 }
 0x80f   : > { %v3750_v39 = vsub.f32 %v7911_v53, %v3706_v50  ;;  %v3751_v41 = vsub.f32 %v7915_v7, %v3706_v50  ;;  %3843 = vadd.xlane.f32.xlu0 %v3842_v34 }
 0x811   : > { %v8109_v33 = vpop.eup %5532  ;;  %v3786_v42 = vmul.f32 1.442695, %v3750_v39  ;;  %v3788_v40 = vmul.f32 1.442695, %v3751_v41 }
 0x812   : > { %v8111_v56 = vpop.eup %5534  ;;  %v3709_v10 = vpop.xlane.xlu0 %3708 }
 0x813   : > { %5536 = vpow2.f32 %v3786_v42  ;;  %v3752_v0 = vsub.f32 %v7924_v4, %v3709_v10  ;;  %v3753_v43 = vsub.f32 %v7928_v29, %v3709_v10  ;;  %v3845_v26 = vadd.f32 %v8111_v56, %v8109_v33 }
 0x814   : > { %5538 = vpow2.f32 %v3788_v40 }
 0x815   : > { %v3790_v53 = vmul.f32 1.442695, %v3752_v0  ;;  %v3792_v37 = vmul.f32 1.442695, %v3753_v43  ;;  %3846 = vadd.xlane.f32.xlu1 %v3845_v26  ;;  %v3712_v7 = vpop.xlane.xlu1 %3711 }
 0x816   : > { %v3715_v61 = vpop.xlane.xlu0 %3714  ;;  %v3754_v28 = vsub.f32 %v7934_v60, %v3712_v7  ;;  %v3755_v6 = vsub.f32 %v7938_v63, %v3712_v7 }
 0x817   : > { %5540 = vpow2.f32 %v3790_v53  ;;  %v3756_v51 = vsub.f32 %v7942_v5, %v3715_v61  ;;  %v3757_v4 = vsub.f32 %v7946_v58, %v3715_v61 }
 0x818   : > { %5542 = vpow2.f32 %v3792_v37  ;;  %v3794_v29 = vmul.f32 1.442695, %v3754_v28  ;;  %v3796_v3 = vmul.f32 1.442695, %v3755_v6 }
 0x819   : > { %v3798_v46 = vmul.f32 1.442695, %v3756_v51  ;;  %v3800_v32 = vmul.f32 1.442695, %v3757_v4  ;;  %v3718_v20 = vpop.xlane.xlu1 %3717 }
 0x81a   : > { %v3721_v54 = vpop.xlane.xlu0 %3720  ;;  %5544 = vpow2.f32 %v3794_v29  ;;  %v3758_v52 = vsub.f32 %v7954_v13, %v3718_v20  ;;  %v3759_v19 = vsub.f32 %v7958_v38, %v3718_v20 }
 0x81b   : > { %v3760_v60 = vsub.f32 %v7964_v25, %v3721_v54  ;;  %5546 = vpow2.f32 %v3796_v3  ;;  %v3761_v63 = vsub.f32 %v7968_v16, %v3721_v54 }
 0x81c   : > { %5548 = vpow2.f32 %v3798_v46  ;;  %v3802_v5 = vmul.f32 1.442695, %v3758_v52  ;;  %v3804_v36 = vmul.f32 1.442695, %v3759_v19 }
 0x81d   : > { %v3806_v58 = vmul.f32 1.442695, %v3760_v60  ;;  %5550 = vpow2.f32 %v3800_v32  ;;  %v3808_v34 = vmul.f32 1.442695, %v3761_v63  ;;  %v3724_v50 = vpop.xlane.xlu1 %3723 }
 0x81e   : > { %v3727_v39 = vpop.xlane.xlu0 %3726  ;;  %5552 = vpow2.f32 %v3802_v5  ;;  %v3762_v41 = vsub.f32 %v7972_v44, %v3724_v50  ;;  %v3763_v13 = vsub.f32 %v7978_v21, %v3724_v50 }
 0x81f   : > { %v3764_v38 = vsub.f32 %v7982_v55, %v3727_v39  ;;  %5554 = vpow2.f32 %v3804_v36  ;;  %v3765_v25 = vsub.f32 %v7986_v57, %v3727_v39 }
 0x820   : > { %v8128_v42 = vpop.eup %5536  ;;  %5556 = vpow2.f32 %v3806_v58  ;;  %v3810_v40 = vmul.f32 1.442695, %v3762_v41  ;;  %v3812_v10 = vmul.f32 1.442695, %v3763_v13 }
 0x821   : > { %v8131_v16 = vpop.eup %5538  ;;  %v3814_v0 = vmul.f32 1.442695, %v3764_v38  ;;  %5558 = vpow2.f32 %v3808_v34  ;;  %v3816_v44 = vmul.f32 1.442695, %v3765_v25  ;;  %v3730_v26 = vpop.xlane.xlu1 %3729 }
 0x822   : > { %v3848_v43 = vadd.f32 %v8131_v16, %v8128_v42  ;;  %v3733_v21 = vpop.xlane.xlu0 %3732  ;;  %5560 = vpow2.f32 %v3810_v40  ;;  %v3766_v55 = vsub.f32 %v8000_v9, %v3730_v26  ;;  %v3767_v53 = vsub.f32 %v7993_v2, %v3730_v26 }
 0x823   : > { %v3768_v57 = vsub.f32 %v8003_v8, %v3733_v21  ;;  %5562 = vpow2.f32 %v3812_v10  ;;  %v3769_v7 = vsub.f32 %v7996_v1, %v3733_v21 }
 0x824   : > { %v8138_v37 = vpop.eup %5540  ;;  %3849 = vadd.xlane.f32.xlu0 %v3848_v43  ;;  %5564 = vpow2.f32 %v3814_v0  ;;  %v3818_v28 = vmul.f32 1.442695, %v3766_v55  ;;  %v3820_v6 = vmul.f32 1.442695, %v3767_v53 }
 0x825   : > { %v8141_v61 = vpop.eup %5542  ;;  %v3822_v51 = vmul.f32 1.442695, %v3768_v57  ;;  %5566 = vpow2.f32 %v3816_v44  ;;  %v3824_v9 = vmul.f32 1.442695, %v3769_v7  ;;  %v3736_v2 = vpop.xlane.xlu1 %3735 }
 0x826   : > { %v3851_v4 = vadd.f32 %v8141_v61, %v8138_v37  ;;  %v3739_v29 = vpop.xlane.xlu0 %3738  ;;  %5568 = vpow2.f32 %v3818_v28  ;;  %v3770_v8 = vsub.f32 %v8013_v31, %v3736_v2  ;;  %v3771_v3 = vsub.f32 %v8010_v23, %v3736_v2 }
 0x827   : > { %v3772_v1 = vsub.f32 %v8016_v11, %v3739_v29  ;;  %v8148_v46 = vpop.eup %5544  ;;  %5570 = vpow2.f32 %v3820_v6  ;;  %v3773_v32 = vsub.f32 %v8019_v48, %v3739_v29 }
 0x828   : > { %3852 = vadd.xlane.f32.xlu0 %v3851_v4  ;;  %v8151_v20 = vpop.eup %5546  ;;  %5572 = vpow2.f32 %v3822_v51  ;;  %v3826_v54 = vmul.f32 1.442695, %v3770_v8  ;;  %v3828_v52 = vmul.f32 1.442695, %v3771_v3  ;;  %v8672_v3 = vld [vmem:[#allocation35_spill] sm:$0xff] }
 0x829   : > { %v3830_v19 = vmul.f32 1.442695, %v3772_v1  ;;  %v8153_v60 = vpop.eup %5548  ;;  %v3854_v31 = vadd.f32 %v8151_v20, %v8148_v46  ;;  %5574 = vpow2.f32 %v3824_v9  ;;  %v3832_v23 = vmul.f32 1.442695, %v3773_v32 }
 0x82a   : > { %v8157_v11 = vpop.eup %5550  ;;  %5576 = vpow2.f32 %v3826_v54  ;;  %v2298_v1 = vmul.f32 %v8672_v3, %v8672_v3 }
 0x82b   : > { %v3742_v63 = vpop.xlane.xlu1 %3741  ;;  %v8159_v5 = vpop.eup %5552  ;;  %3855 = vadd.xlane.f32.xlu1 %v3854_v31  ;;  %v3857_v48 = vadd.f32 %v8157_v11, %v8153_v60  ;;  %5578 = vpow2.f32 %v3828_v52  ;;  %v8673_v52 = vld [vmem:[#allocation30_spill] sm:$0xff] }
 0x82c   : > { %v3774_v36 = vsub.f32 %v8036_v49, %v3742_v63  ;;  %v3775_v58 = vsub.f32 %v8039_v47, %v3742_v63  ;;  %v8165_v34 = vpop.eup %5554  ;;  %5580 = vpow2.f32 %v3830_v19  ;;  %v4193_v32 = vmul.f32 1.0050251, %v2298_v1 }
 0x82d   : > { %v8167_v50 = vpop.eup %5556  ;;  %3858 = vadd.xlane.f32.xlu0 %v3857_v48  ;;  %v3860_v39 = vadd.f32 %v8165_v34, %v8159_v5  ;;  %5582 = vpow2.f32 %v3832_v23  ;;  %v4241_v19 = vsub.f32 -0.005012542, %v8673_v52  ;;  %v4371_v23 = vpop.permute.xlu0 %4370 }
 0x82e   : > { %v3834_v41 = vmul.f32 1.442695, %v3774_v36  ;;  %v3836_v13 = vmul.f32 1.442695, %v3775_v58  ;;  %v8171_v38 = vpop.eup %5558  ;;  %v4321_v54 = vadd.f32 %v8075_v18, %v4193_v32 }
 0x82f   : > { %v8173_v25 = vpop.eup %5560  ;;  %3861 = vadd.xlane.f32.xlu1 %v3860_v39  ;;  %v3863_v49 = vadd.f32 %v8171_v38, %v8167_v50  ;;  %v4369_v1 = vpop.permute.xlu1 %4368 }
 0x830   : > { %5584 = vpow2.f32 %v3834_v41  ;;  %v8177_v47 = vpop.eup %5562  ;;  %v4337_v31 = vadd.f32 %v4321_v54, %v4241_v19 }
 0x831   : > { %5586 = vpow2.f32 %v3836_v13  ;;  %v8179_v40 = vpop.eup %5564  ;;  %3864 = vadd.xlane.f32.xlu0 %v3863_v49  ;;  %v3866_v10 = vadd.f32 %v8177_v47, %v8173_v25  ;;  %v4375_v63 = vpop.permute.xlu0 %4374 }
 0x832   : > { %v8183_v0 = vpop.eup %5566 }
 0x833   : > { %v8185_v43 = vpop.eup %5568  ;;  %3867 = vadd.xlane.f32.xlu1 %v3866_v10  ;;  %v3869_v44 = vadd.f32 %v8183_v0, %v8179_v40  ;;  %v4405_v10 = vsel %vm2475_vm1, %v8087_v59, 0.0  ;;  %v4432_v59 = vsel %vm2475_vm1, %v4375_v63, 0.0  ;;  %v4373_v54 = vpop.permute.xlu1 %4372 }
 0x834   : > { %v8189_v26 = vpop.eup %5570 }
 0x835   : > { %v8191_v21 = vpop.eup %5572  ;;  %3870 = vadd.xlane.f32.xlu0 %v3869_v44  ;;  %v3872_v55 = vadd.f32 %v8189_v26, %v8185_v43  ;;  %v8674_v44 = vld [vmem:[#allocation32_spill] sm:$0xff] }
 0x836   : > { %v8195_v53 = vpop.eup %5574 }
 0x837   : > { %v8197_v57 = vpop.eup %5576  ;;  %3873 = vadd.xlane.f32.xlu1 %v3872_v55  ;;  %v3875_v7 = vadd.f32 %v8195_v53, %v8191_v21  ;;  %v2297_v55 = vmul.f32 %v8674_v44, %v8674_v44  ;;  %v8244_v52 = vpop.permute.xlu1 %4376  ;;  %v4417_v44 = vsel %vm2475_vm1, %v8093_v35, 0.0 }
 0x838   : > { %v8201_v28 = vpop.eup %5578 }
 0x839   : > { %v8203_v6 = vpop.eup %5580  ;;  %3876 = vadd.xlane.f32.xlu0 %v3875_v7  ;;  %v3878_v51 = vadd.f32 %v8201_v28, %v8197_v57  ;;  %v4426_v7 = vsel %vm2475_vm1, %v4371_v23, 0.0 }
 0x83a   : > { %v8207_v4 = vpop.eup %5582 }
 0x83b   : > { %3879 = vadd.xlane.f32.xlu1 %v3878_v51  ;;  %v3881_v9 = vadd.f32 %v8207_v4, %v8203_v6  ;;  %v4192_v51 = vmul.f32 1.0050251, %v2297_v55 }
 0x83d   : > { %v8211_v2 = vpop.eup %5584  ;;  %3882 = vadd.xlane.f32.xlu0 %v3881_v9  ;;  %v4320_v9 = vadd.f32 %v8084_v24, %v4192_v51  ;;  %v8246_v24 = vpop.permute.xlu1 %4380 }
 0x83e   : > { %v8213_v29 = vpop.eup %5586 }
 0x83f   : > { %v3884_v8 = vadd.f32 %v8213_v29, %v8211_v2 }
 0x841   : > { %3885 = vadd.xlane.f32.xlu1 %v3884_v8 }
 0x852   : > { %4384 = vrot.lane.b32.xlu1 %v4337_v31, %s5878_s27 }
 0x85f   : > { %v3745_v48 = vpop.xlane.xlu0 %3744 }
 0x860   : > { %v3776_v36 = vsub.f32 %v8071_v22, %v3745_v48  ;;  %v3777_v58 = vsub.f32 %v8068_v45, %v3745_v48  ;;  %v4414_v22 = vsel %vm2475_vm1, %v8091_v30, 0.0  ;;  %v4420_v45 = vsel %vm2475_vm1, %v8097_v62, 0.0  ;;  %v8675_v30 = vld [vmem:[#allocation26_spill] sm:$0xff] }
 0x861   : > { %v4240_v3 = vsub.f32 -0.005012542, %v8675_v30  ;;  %v5688_v30 = vld [vmem:[%s6144_s16] sm:$0xff] }
 0x862   : > { %v3838_v39 = vmul.f32 1.442695, %v3776_v36  ;;  %v3840_v41 = vmul.f32 1.442695, %v3777_v58  ;;  %v4402_v36 = vsel %vm2475_vm1, %v8079_v17, 0.0 }
 0x863   : > { %v4379_v8 = vpop.permute.xlu0 %4378  ;;  %v4336_v32 = vadd.f32 %v4320_v9, %v4240_v3 }
 0x864   : > { %5588 = vpow2.f32 %v3838_v39  ;;  %v4438_v62 = vsel %vm2475_vm1, %v4379_v8, 0.0 }
 0x865   : > { %5590 = vpow2.f32 %v3840_v41 }
 0x871   : > { %v8224_v13 = vpop.eup %5588 }
 0x872   : > { %v8226_v49 = vpop.eup %5590 }
 0x873   : > { %v3887_v18 = vadd.f32 %v8226_v49, %v8224_v13 }
 0x875   : > { %3888 = vadd.xlane.f32.xlu0 %v3887_v18 }
 0x876   : > { %4406 = vadd.xlane.f32.xlu1 %v4405_v10  ;;  %v4411_v10 = vsel %vm2475_vm1, %v8089_v27, 0.0  ;;  %v4423_v27 = vsel %vm2475_vm1, %v4369_v1, 0.0 }
 0x87a   : > { %4415 = vadd.xlane.f32.xlu1 %v4414_v22 }
 0x87e   : > { %4421 = vadd.xlane.f32.xlu1 %v4420_v45 }
 0x882   : > { %4427 = vadd.xlane.f32.xlu1 %v4426_v7 }
 0x886   : > { %4433 = vadd.xlane.f32.xlu1 %v4432_v59 }
 0x88a   : > { %4439 = vadd.xlane.f32.xlu1 %v4438_v62 }
 0x88b   : > { %4382 = vrot.lane.b32.xlu0 %v4336_v32, %s5878_s27  ;;  %v5689_v32 = vld [vmem:[%s6144_s16 + $0x8] sm:$0xff]  ;;  %s4835_s27 = sshll.u32 %s5984_s22, 12  ;;  %s5880_s22 = smov [#allocation8]  }
 0x88c   : > { %s8428_s11 = scalar_lea.hbm %s8516_s13, %s4835_s27  ;;  %s5804_s25 = sshll.u32 %s5880_s22, 4  ;;  %s5805_s25 = int_to_ptr.vmem [resolvable:$false] %s5804_s25 }
 0x88d   : > { %s5806_s28 = scalar_lea.vmem %s5805_s25, 8192  ;;  %p5807_p12 = scmp.lt.s32.totalorder %s8431_s6, %s5805_s25 }
 0x88e   : > { %p5808_p3 = scmp.lt.s32.totalorder %s5806_s28, %s5800_s26 }
 0x890   : > { %p5809_p9 = por %p5808_p3, %p5807_p12 }
 0x892   : > { %p5810_p13 = pnand %p5809_p9, %p5803_p6 }
 0x898   : > { %v3844_v19 = vpop.xlane.xlu0 %3843 }
 0x899   : > { %5592 = vrcp.f32 %v3844_v19 }
 0x89e   : > { %v3847_v31 = vpop.xlane.xlu1 %3846 }
 0x89f   : > { %5594 = vrcp.f32 %v3847_v31  ;;  %v4429_v31 = vsel %vm2475_vm1, %v4373_v54, 0.0  ;;  %v4435_v54 = vsel %vm2475_vm1, %v8244_v52, 0.0 }
 0x8a6   : > { %v5593_v23 = vpop.eup %5592 }
 0x8a7   : > { %v3906_v63 = vmul.f32 %v5593_v23, %v8101_v14  ;;  %v3907_v48 = vmul.f32 %v5593_v23, %v8103_v12  ;;  %v4408_v14 = vsel %vm2475_vm1, %v8082_v15, 0.0 }
 0x8a9   : > { %3938 = vst [vmem:[%s8253_s17] sm:$0xff] %v3906_v63  ;;  %3939 = vst [vmem:[%s8253_s17 + $0x8] sm:$0xff] %v3907_v48  ;;  %v3986_v58 = vadd.f32 1e-10, %v3906_v63  ;;  %v3987_v39 = vadd.f32 1e-10, %v3907_v48 }
 0x8aa   : > { %4403 = vadd.xlane.f32.xlu0 %v4402_v36 }
 0x8ab   : > { %5596 = vlog2.f32 %v3986_v58 }
 0x8ac   : > { %v5595_v41 = vpop.eup %5594  ;;  %5598 = vlog2.f32 %v3987_v39 }
 0x8ad   : > { %v3850_v12 = vpop.xlane.xlu0 %3849  ;;  %v3908_v17 = vmul.f32 %v5595_v41, %v8109_v33  ;;  %v3909_v18 = vmul.f32 %v5595_v41, %v8111_v56 }
 0x8ae   : > { %5600 = vrcp.f32 %v3850_v12  ;;  %4409 = vadd.xlane.f32.xlu0 %v4408_v14 }
 0x8af   : > { %3940 = vst [vmem:[%s8253_s17 + $0x10] sm:$0xff] %v3908_v17  ;;  %3941 = vst [vmem:[%s8253_s17 + $0x18] sm:$0xff] %v3909_v18  ;;  %v3988_v45 = vadd.f32 1e-10, %v3908_v17  ;;  %v3989_v55 = vadd.f32 1e-10, %v3909_v18 }
 0x8b0   : > { %v4441_v18 = vsel %vm2475_vm1, %v8246_v24, 0.0 }
 0x8b1   : > { %v3853_v22 = vpop.xlane.xlu0 %3852 }
 0x8b2   : > { %5602 = vrcp.f32 %v3853_v22  ;;  %4412 = vadd.xlane.f32.xlu0 %v4411_v10 }
 0x8b4   : > { %v3856_v15 = vpop.xlane.xlu1 %3855 }
 0x8b5   : > { %5604 = vrcp.f32 %v3856_v15 }
 0x8b6   : > { %4418 = vadd.xlane.f32.xlu0 %v4417_v44  ;;  %v3859_v33 = vpop.xlane.xlu0 %3858  ;;  %5606 = vlog2.f32 %v3988_v45 }
 0x8b7   : > { %5608 = vrcp.f32 %v3859_v33 }
 0x8b8   : > { %v5597_v56 = vpop.eup %5596  ;;  %v3862_v51 = vpop.xlane.xlu1 %3861  ;;  %5610 = vlog2.f32 %v3989_v55 }
 0x8b9   : > { %v5599_v7 = vpop.eup %5598  ;;  %v4019_v9 = vmul.f32 0.6931472, %v5597_v56  ;;  %5612 = vrcp.f32 %v3862_v51 }
 0x8ba   : > { %4424 = vadd.xlane.f32.xlu0 %v4423_v27  ;;  %v4021_v35 = vmul.f32 0.6931472, %v5599_v7  ;;  %v3865_v8 = vpop.xlane.xlu0 %3864 }
 0x8bb   : > { %v5601_v59 = vpop.eup %5600  ;;  %v4082_v3 = vmul.f32 %v5688_v30, %v4019_v9  ;;  %5614 = vrcp.f32 %v3865_v8 }
 0x8bc   : > { %v4083_v62 = vmul.f32 %v5689_v32, %v4021_v35  ;;  %v8271_v19 = vmul.f32 %v5601_v59, %v8128_v42  ;;  %v8274_v1 = vmul.f32 %v5601_v59, %v8131_v16  ;;  %v3868_v23 = vpop.xlane.xlu1 %3867 }
 0x8bd   : > { %5616 = vrcp.f32 %v3868_v23 }
 0x8be   : > { %4430 = vadd.xlane.f32.xlu0 %v4429_v31  ;;  %v8277_v63 = vadd.f32 %v4083_v62, %v4082_v3  ;;  %3942 = vst [vmem:[%s8253_s17 + $0x20] sm:$0xff] %v8271_v19  ;;  %3943 = vst [vmem:[%s8253_s17 + $0x28] sm:$0xff] %v8274_v1  ;;  %v3871_v36 = vpop.xlane.xlu0 %3870  ;;  %v5691_v3 = vld [vmem:[%s6144_s16 + $0x18] sm:$0xff] }
 0x8bf   : > { %v5603_v48 = vpop.eup %5602  ;;  %5618 = vrcp.f32 %v3871_v36 }
 0x8c0   : > { %v3912_v42 = vmul.f32 %v5603_v48, %v8138_v37  ;;  %v3913_v16 = vmul.f32 %v5603_v48, %v8141_v61  ;;  %v3874_v58 = vpop.xlane.xlu1 %3873 }
 0x8c1   : > { %5620 = vrcp.f32 %v3874_v58 }
 0x8c2   : > { %4436 = vadd.xlane.f32.xlu0 %v4435_v54  ;;  %3944 = vst [vmem:[%s8253_s17 + $0x30] sm:$0xff] %v3912_v42  ;;  %3945 = vst [vmem:[%s8253_s17 + $0x38] sm:$0xff] %v3913_v16  ;;  %v3992_v39 = vadd.f32 1e-10, %v3912_v42  ;;  %v5605_v41 = vpop.eup %5604  ;;  %v3877_v14 = vpop.xlane.xlu0 %3876  ;;  %v3993_v12 = vadd.f32 1e-10, %v3913_v16 }
 0x8c3   : > { %v5607_v17 = vpop.eup %5606  ;;  %5622 = vrcp.f32 %v3877_v14  ;;  %v8290_v37 = vmul.f32 %v5605_v41, %v8148_v46  ;;  %v8293_v61 = vmul.f32 %v5605_v41, %v8151_v20 }
 0x8c4   : > { %v5609_v52 = vpop.eup %5608  ;;  %v3880_v10 = vpop.xlane.xlu1 %3879  ;;  %5624 = vlog2.f32 %v3992_v39  ;;  %v4023_v55 = vmul.f32 0.6931472, %v5607_v17  ;;  %v5692_v17 = vld [vmem:[%s6144_s16 + $0x30] sm:$0xff] }
 0x8c5   : > { %v5611_v22 = vpop.eup %5610  ;;  %5626 = vrcp.f32 %v3880_v10  ;;  %v3916_v45 = vmul.f32 %v5609_v52, %v8153_v60  ;;  %v3917_v44 = vmul.f32 %v5609_v52, %v8157_v11  ;;  %3947 = vst [vmem:[%s8253_s17 + $0x48] sm:$0xff] %v8293_v61  ;;  %3946 = vst [vmem:[%s8253_s17 + $0x40] sm:$0xff] %v8290_v37 }
 0x8c6   : > { %4442 = vadd.xlane.f32.xlu0 %v4441_v18  ;;  %v5613_v46 = vpop.eup %5612  ;;  %v3883_v20 = vpop.xlane.xlu0 %3882  ;;  %5628 = vlog2.f32 %v3993_v12  ;;  %v4025_v7 = vmul.f32 0.6931472, %v5611_v22 }
 0x8c7   : > { %5630 = vrcp.f32 %v3883_v20  ;;  %3948 = vst [vmem:[%s8253_s17 + $0x50] sm:$0xff] %v3916_v45  ;;  %3949 = vst [vmem:[%s8253_s17 + $0x58] sm:$0xff] %v3917_v44  ;;  %v3996_v24 = vadd.f32 1e-10, %v3916_v45  ;;  %v3997_v15 = vadd.f32 1e-10, %v3917_v44  ;;  %v8306_v60 = vmul.f32 %v5613_v46, %v8159_v5 }
 0x8c8   : > { %v5615_v11 = vpop.eup %5614  ;;  %v8309_v33 = vmul.f32 %v5613_v46, %v8165_v34  ;;  %v4085_v32 = vmul.f32 %v5691_v3, %v4025_v7  ;;  %v5693_v45 = vld [vmem:[%s6144_s16 + $0x38] sm:$0xff] }
 0x8c9   : > { %5632 = vlog2.f32 %v3996_v24  ;;  %v3920_v27 = vmul.f32 %v5615_v11, %v8167_v50  ;;  %v3921_v51 = vmul.f32 %v5615_v11, %v8171_v38  ;;  %3950 = vst [vmem:[%s8253_s17 + $0x60] sm:$0xff] %v8306_v60  ;;  %v5690_v38 = vld [vmem:[%s6144_s16 + $0x10] sm:$0xff]  ;;  %v5697_v3 = vld [vmem:[%s6144_s16 + $0x78] sm:$0xff] }
 0x8ca   : > { %v3886_v56 = vpop.xlane.xlu1 %3885  ;;  %v5617_v9 = vpop.eup %5616  ;;  %3951 = vst [vmem:[%s8253_s17 + $0x68] sm:$0xff] %v8309_v33  ;;  %v4084_v59 = vmul.f32 %v5690_v38, %v4023_v55  ;;  %v5694_v11 = vld [vmem:[%s6144_s16 + $0x50] sm:$0xff] }
 0x8cb   : > { %5634 = vrcp.f32 %v3886_v56  ;;  %3952 = vst [vmem:[%s8253_s17 + $0x70] sm:$0xff] %v3920_v27  ;;  %3953 = vst [vmem:[%s8253_s17 + $0x78] sm:$0xff] %v3921_v51  ;;  %v4000_v5 = vadd.f32 1e-10, %v3920_v27  ;;  %v4001_v34 = vadd.f32 1e-10, %v3921_v51  ;;  %v8320_v35 = vmul.f32 %v5617_v9, %v8173_v25 }
 0x8cc   : > { %5636 = vlog2.f32 %v3997_v15  ;;  %v5619_v50 = vpop.eup %5618  ;;  %v8324_v8 = vmul.f32 %v5617_v9, %v8177_v47  ;;  %v4117_v16 = vadd.f32 %v4085_v32, %v4084_v59  ;;  %v5695_v9 = vld [vmem:[%s6144_s16 + $0x58] sm:$0xff]  ;;  %v5696_v38 = vld [vmem:[%s6144_s16 + $0x70] sm:$0xff] }
 0x8cd   : > { %5638 = vlog2.f32 %v4000_v5  ;;  %v3924_v62 = vmul.f32 %v5619_v50, %v8179_v40  ;;  %v3925_v31 = vmul.f32 %v5619_v50, %v8183_v0  ;;  %3954 = vst [vmem:[%s8253_s17 + $0x80] sm:$0xff] %v8320_v35 }
 0x8ce   : > { %v4385_v30 = vpop.permute.xlu1 %4384  ;;  %v5621_v25 = vpop.eup %5620  ;;  %5640 = vlog2.f32 %v4001_v34  ;;  %3955 = vst [vmem:[%s8253_s17 + $0x88] sm:$0xff] %v8324_v8 }
 0x8cf   : > { %v4447_v23 = vsel %vm2475_vm1, %v4385_v30, 0.0  ;;  %3956 = vst [vmem:[%s8253_s17 + $0x90] sm:$0xff] %v3924_v62  ;;  %3957 = vst [vmem:[%s8253_s17 + $0x98] sm:$0xff] %v3925_v31  ;;  %v4004_v47 = vadd.f32 1e-10, %v3924_v62  ;;  %v8337_v40 = vmul.f32 %v5621_v25, %v8185_v43  ;;  %v8340_v36 = vmul.f32 %v5621_v25, %v8189_v26 }
 0x8d0   : > { %4448 = vadd.xlane.f32.xlu0 %v4447_v23  ;;  %v4005_v48 = vadd.f32 1e-10, %v3925_v31  ;;  %v5623_v0 = vpop.eup %5622  ;;  %v5698_v23 = vld [vmem:[%s6144_s16 + $0x90] sm:$0xff] }
 0x8d1   : > { %v5625_v42 = vpop.eup %5624  ;;  %5642 = vlog2.f32 %v4004_v47  ;;  %v3928_v54 = vmul.f32 %v5623_v0, %v8191_v21  ;;  %v3929_v58 = vmul.f32 %v5623_v0, %v8195_v53  ;;  %3958 = vst [vmem:[%s8253_s17 + $0xa0] sm:$0xff] %v8337_v40  ;;  %3959 = vst [vmem:[%s8253_s17 + $0xa8] sm:$0xff] %v8340_v36  ;;  %v5699_v0 = vld [vmem:[%s6144_s16 + $0x98] sm:$0xff] }
 0x8d2   : > { %v5627_v39 = vpop.eup %5626  ;;  %v4031_v41 = vmul.f32 0.6931472, %v5625_v42  ;;  %5644 = vlog2.f32 %v4005_v48 }
 0x8d3   : > { %v5629_v43 = vpop.eup %5628  ;;  %3960 = vst [vmem:[%s8253_s17 + $0xb0] sm:$0xff] %v3928_v54  ;;  %3961 = vst [vmem:[%s8253_s17 + $0xb8] sm:$0xff] %v3929_v58  ;;  %v4008_v26 = vadd.f32 1e-10, %v3928_v54  ;;  %v4009_v14 = vadd.f32 1e-10, %v3929_v58  ;;  %v8351_v21 = vmul.f32 %v5627_v39, %v8197_v57  ;;  %v8357_v22 = vmul.f32 %v5627_v39, %v8201_v28 }
 0x8d4   : > { %4118 = vadd.xlane.f32.xlu0 %v4117_v16  ;;  %v5631_v53 = vpop.eup %5630  ;;  %v4033_v12 = vmul.f32 0.6931472, %v5629_v43  ;;  %v4088_v52 = vmul.f32 %v5692_v17, %v4031_v41  ;;  %v5700_v41 = vld [vmem:[%s6144_s16 + $0xb0] sm:$0xff] }
 0x8d5   : > { %5646 = vlog2.f32 %v4008_v26  ;;  %v3932_v18 = vmul.f32 %v5631_v53, %v8203_v6  ;;  %v3933_v10 = vmul.f32 %v5631_v53, %v8207_v4  ;;  %3962 = vst [vmem:[%s8253_s17 + $0xc0] sm:$0xff] %v8351_v21  ;;  %3963 = vst [vmem:[%s8253_s17 + $0xc8] sm:$0xff] %v8357_v22 }
 0x8d6   : > { %v5633_v57 = vpop.eup %5632  ;;  %v4089_v44 = vmul.f32 %v5693_v45, %v4033_v12  ;;  %5648 = vlog2.f32 %v4009_v14  ;;  %v5701_v14 = vld [vmem:[%s6144_s16 + $0xb8] sm:$0xff] }
 0x8d7   : > { %v4039_v20 = vmul.f32 0.6931472, %v5633_v57  ;;  %3964 = vst [vmem:[%s8253_s17 + $0xd0] sm:$0xff] %v3932_v18  ;;  %3965 = vst [vmem:[%s8253_s17 + $0xd8] sm:$0xff] %v3933_v10  ;;  %v4012_v24 = vadd.f32 1e-10, %v3932_v18 }
 0x8d8   : > { %v5635_v46 = vpop.eup %5634  ;;  %v4013_v15 = vadd.f32 1e-10, %v3933_v10  ;;  %v4123_v28 = vadd.f32 %v4089_v44, %v4088_v52  ;;  %v5702_v10 = vld [vmem:[%s6144_s16 + $0xd0] sm:$0xff]  ;;  %v5703_v45 = vld [vmem:[%s6144_s16 + $0xd8] sm:$0xff] }
 0x8d9   : > { %v5637_v6 = vpop.eup %5636  ;;  %v4092_v55 = vmul.f32 %v5694_v11, %v4039_v20  ;;  %5650 = vlog2.f32 %v4012_v24  ;;  %v8368_v56 = vmul.f32 %v5635_v46, %v8211_v2  ;;  %v8371_v27 = vmul.f32 %v5635_v46, %v8213_v29 }
 0x8da   : > { %v4041_v4 = vmul.f32 0.6931472, %v5637_v6  ;;  %v5639_v7 = vpop.eup %5638  ;;  %4124 = vadd.xlane.f32.xlu0 %v4123_v28  ;;  %5652 = vlog2.f32 %v4013_v15  ;;  %v3990_v20 = vadd.f32 1e-10, %v8271_v19  ;;  %v3991_v24 = vadd.f32 1e-10, %v8274_v1 }
 0x8db   : > { %v5641_v51 = vpop.eup %5640  ;;  %v4047_v34 = vmul.f32 0.6931472, %v5639_v7  ;;  %3966 = vst [vmem:[%s8253_s17 + $0xe0] sm:$0xff] %v8368_v56  ;;  %3967 = vst [vmem:[%s8253_s17 + $0xe8] sm:$0xff] %v8371_v27  ;;  %v3994_v15 = vadd.f32 1e-10, %v8290_v37 }
 0x8dc   : > { %v4093_v5 = vmul.f32 %v5695_v9, %v4041_v4  ;;  %v4049_v50 = vmul.f32 0.6931472, %v5641_v51  ;;  %5654 = vlog2.f32 %v3990_v20  ;;  %v3995_v6 = vadd.f32 1e-10, %v8293_v61 }
 0x8dd   : > { %v4096_v59 = vmul.f32 %v5696_v38, %v4047_v34  ;;  %5656 = vlog2.f32 %v3991_v24  ;;  %v3998_v28 = vadd.f32 1e-10, %v8306_v60  ;;  %v3999_v4 = vadd.f32 1e-10, %v8309_v33  ;;  %v5704_v38 = vld [vmem:[%s6144_s16 + $0x20] sm:$0xff]  ;;  %v5713_v24 = vld [vmem:[%s6144_s16 + $0xa8] sm:$0xff] }
 0x8de   : > { %v4129_v2 = vadd.f32 %v4093_v5, %v4092_v55  ;;  %v5643_v30 = vpop.eup %5642  ;;  %v4097_v32 = vmul.f32 %v5697_v3, %v4049_v50  ;;  %5658 = vlog2.f32 %v3994_v15  ;;  %v4002_v11 = vadd.f32 1e-10, %v8320_v35 }
 0x8df   : > { %v5645_v29 = vpop.eup %5644  ;;  %v4055_v62 = vmul.f32 0.6931472, %v5643_v30  ;;  %5660 = vlog2.f32 %v3995_v6  ;;  %v4003_v19 = vadd.f32 1e-10, %v8324_v8  ;;  %v4006_v1 = vadd.f32 1e-10, %v8337_v40 }
 0x8e0   : > { %4130 = vadd.xlane.f32.xlu0 %v4129_v2  ;;  %v4057_v31 = vmul.f32 0.6931472, %v5645_v29  ;;  %v4135_v25 = vadd.f32 %v4097_v32, %v4096_v59  ;;  %5662 = vlog2.f32 %v3998_v28  ;;  %v4007_v37 = vadd.f32 1e-10, %v8340_v36 }
 0x8e1   : > { %v4100_v47 = vmul.f32 %v5698_v23, %v4055_v62  ;;  %5664 = vlog2.f32 %v3999_v4  ;;  %v4010_v33 = vadd.f32 1e-10, %v8351_v21  ;;  %v4011_v40 = vadd.f32 1e-10, %v8357_v22  ;;  %v5705_v21 = vld [vmem:[%s6144_s16 + $0x28] sm:$0xff]  ;;  %v5706_v22 = vld [vmem:[%s6144_s16 + $0x40] sm:$0xff] }
 0x8e2   : > { %v5647_v48 = vpop.eup %5646  ;;  %v4101_v42 = vmul.f32 %v5699_v0, %v4057_v31  ;;  %5666 = vlog2.f32 %v4002_v11  ;;  %v4014_v50 = vadd.f32 1e-10, %v8368_v56  ;;  %v4015_v3 = vadd.f32 1e-10, %v8371_v27  ;;  %v5707_v62 = vld [vmem:[%s6144_s16 + $0x48] sm:$0xff] }
 0x8e3   : > { %v5649_v16 = vpop.eup %5648  ;;  %v4063_v54 = vmul.f32 0.6931472, %v5647_v48  ;;  %5668 = vlog2.f32 %v4003_v19 }
 0x8e4   : > { %4136 = vadd.xlane.f32.xlu0 %v4135_v25  ;;  %v4065_v58 = vmul.f32 0.6931472, %v5649_v16  ;;  %v4141_v39 = vadd.f32 %v4101_v42, %v4100_v47 }
 0x8e5   : > { %v4104_v43 = vmul.f32 %v5700_v41, %v4063_v54  ;;  %v5709_v41 = vld [vmem:[%s6144_s16 + $0x68] sm:$0xff] }
 0x8e6   : > { %v5651_v26 = vpop.eup %5650  ;;  %v4105_v53 = vmul.f32 %v5701_v14, %v4065_v58  ;;  %v5708_v58 = vld [vmem:[%s6144_s16 + $0x60] sm:$0xff] }
 0x8e7   : > { %v5653_v12 = vpop.eup %5652  ;;  %v4071_v17 = vmul.f32 0.6931472, %v5651_v26 }
 0x8e8   : > { %4142 = vadd.xlane.f32.xlu0 %v4141_v39  ;;  %v4073_v52 = vmul.f32 0.6931472, %v5653_v12  ;;  %v4147_v18 = vadd.f32 %v4105_v53, %v4104_v43 }
 0x8e9   : > { %v4108_v57 = vmul.f32 %v5702_v10, %v4071_v17  ;;  %v5655_v55 = vpop.eup %5654 }
 0x8ea   : > { %v4109_v44 = vmul.f32 %v5703_v45, %v4073_v52  ;;  %v5657_v7 = vpop.eup %5656  ;;  %v4027_v8 = vmul.f32 0.6931472, %v5655_v55 }
 0x8eb   : > { %v5659_v60 = vpop.eup %5658  ;;  %v4029_v9 = vmul.f32 0.6931472, %v5657_v7 }
 0x8ec   : > { %4148 = vadd.xlane.f32.xlu0 %v4147_v18  ;;  %v4153_v46 = vadd.f32 %v4109_v44, %v4108_v57  ;;  %v5661_v35 = vpop.eup %5660  ;;  %v4035_v5 = vmul.f32 0.6931472, %v5659_v60  ;;  %v4086_v59 = vmul.f32 %v5704_v38, %v4027_v8  ;;  %v5710_v18 = vld [vmem:[%s6144_s16 + $0x80] sm:$0xff]  ;;  %v5711_v57 = vld [vmem:[%s6144_s16 + $0x88] sm:$0xff] }
 0x8ed   : > { %v4037_v34 = vmul.f32 0.6931472, %v5661_v35  ;;  %v5663_v2 = vpop.eup %5662  ;;  %v4087_v30 = vmul.f32 %v5705_v21, %v4029_v9  ;;  %v5716_v8 = vld [vmem:[%s6144_s16 + $0xe0] sm:$0xff]  ;;  %v5719_v21 = vld [vmem:[%s6144_s16 + $0xf8] sm:$0xff] }
 0x8ee   : > { %v5665_v32 = vpop.eup %5664  ;;  %v4090_v29 = vmul.f32 %v5706_v22, %v4035_v5  ;;  %v4043_v23 = vmul.f32 0.6931472, %v5663_v2  ;;  %v5718_v2 = vld [vmem:[%s6144_s16 + $0xf0] sm:$0xff] }
 0x8ef   : > { %v4091_v31 = vmul.f32 %v5707_v62, %v4037_v34  ;;  %v5667_v25 = vpop.eup %5666  ;;  %v4120_v56 = vadd.f32 %v4087_v30, %v4086_v59  ;;  %v4045_v47 = vmul.f32 0.6931472, %v5665_v32 }
 0x8f0   : > { %4154 = vadd.xlane.f32.xlu0 %v4153_v46  ;;  %v5669_v48 = vpop.eup %5668  ;;  %v4094_v39 = vmul.f32 %v5708_v58, %v4043_v23  ;;  %v4051_v26 = vmul.f32 0.6931472, %v5667_v25  ;;  %v5712_v46 = vld [vmem:[%s6144_s16 + $0xa0] sm:$0xff] }
 0x8f1   : > { %v4126_v42 = vadd.f32 %v4091_v31, %v4090_v29  ;;  %v4095_v43 = vmul.f32 %v5709_v41, %v4045_v47  ;;  %v4053_v14 = vmul.f32 0.6931472, %v5669_v48 }
 0x8f2   : > { %v4098_v10 = vmul.f32 %v5710_v18, %v4051_v26 }
 0x8f3   : > { %v4132_v52 = vadd.f32 %v4095_v43, %v4094_v39  ;;  %v4099_v45 = vmul.f32 %v5711_v57, %v4053_v14 }
 0x8f5   : > { %v4138_v28 = vadd.f32 %v4099_v45, %v4098_v10 }
 0x8fe   : > { %v3889_v61 = vpop.xlane.xlu0 %3888 }
 0x8ff   : > { %5670 = vrcp.f32 %v3889_v61  ;;  %v5715_v61 = vld [vmem:[%s6144_s16 + $0xc8] sm:$0xff] }
 0x900   : > { %5672 = vlog2.f32 %v4006_v1 }
 0x901   : > { %5674 = vlog2.f32 %v4007_v37  ;;  %v5714_v37 = vld [vmem:[%s6144_s16 + $0xc0] sm:$0xff] }
 0x902   : > { %v4383_v51 = vpop.permute.xlu0 %4382  ;;  %5676 = vlog2.f32 %v4010_v33 }
 0x903   : > { %v4444_v36 = vsel %vm2475_vm1, %v4383_v51, 0.0  ;;  %5678 = vlog2.f32 %v4011_v40  ;;  %v5717_v40 = vld [vmem:[%s6144_s16 + $0xe8] sm:$0xff]  ;;  %s4515_s16 = scalar_lea.sflag [#allocation4], %s6096_s23 }
 0x904   : > { %4445 = vadd.xlane.f32.xlu1 %v4444_v36  ;;  %5680 = vlog2.f32 %v4014_v50 }
 0x905   : > { %5682 = vlog2.f32 %v4015_v3 }
 0x908   : > { %4115 = vadd.xlane.f32.xlu1 %v8277_v63 }
 0x90c   : > { %v5671_v0 = vpop.eup %5670  ;;  %4121 = vadd.xlane.f32.xlu1 %v4120_v56 }
 0x90d   : > { %v5673_v27 = vpop.eup %5672  ;;  %v3936_v63 = vmul.f32 %v5671_v0, %v8224_v13  ;;  %v3937_v16 = vmul.f32 %v5671_v0, %v8226_v49 }
 0x90e   : > { %v5675_v54 = vpop.eup %5674  ;;  %v4059_v17 = vmul.f32 0.6931472, %v5673_v27 }
 0x90f   : > { %3968 = vst [vmem:[%s8253_s17 + $0xf0] sm:$0xff] %v3936_v63  ;;  %3969 = vst [vmem:[%s8253_s17 + $0xf8] sm:$0xff] %v3937_v16  ;;  %v4016_v53 = vadd.f32 1e-10, %v3936_v63  ;;  %v4017_v12 = vadd.f32 1e-10, %v3937_v16  ;;  %v5677_v49 = vpop.eup %5676 }
 0x910   : > { %4127 = vadd.xlane.f32.xlu1 %v4126_v42  ;;  %v4061_v13 = vmul.f32 0.6931472, %v5675_v54  ;;  %v5679_v44 = vpop.eup %5678  ;;  %v4102_v20 = vmul.f32 %v5712_v46, %v4059_v17  ;;  %v4067_v4 = vmul.f32 0.6931472, %v5677_v49 }
 0x911   : > { %5684 = vlog2.f32 %v4016_v53  ;;  %v5681_v6 = vpop.eup %5680  ;;  %v4069_v11 = vmul.f32 0.6931472, %v5679_v44 }
 0x912   : > { %5686 = vlog2.f32 %v4017_v12  ;;  %v4103_v15 = vmul.f32 %v5713_v24, %v4061_v13  ;;  %v5683_v19 = vpop.eup %5682  ;;  %v4106_v55 = vmul.f32 %v5714_v37, %v4067_v4  ;;  %v4075_v60 = vmul.f32 0.6931472, %v5681_v6 }
 0x913   : > { %v4107_v7 = vmul.f32 %v5715_v61, %v4069_v11  ;;  %v4077_v33 = vmul.f32 0.6931472, %v5683_v19 }
 0x914   : > { %4133 = vadd.xlane.f32.xlu1 %v4132_v52  ;;  %v4144_v1 = vadd.f32 %v4103_v15, %v4102_v20  ;;  %v4110_v9 = vmul.f32 %v5716_v8, %v4075_v60 }
 0x915   : > { %v4150_v51 = vadd.f32 %v4107_v7, %v4106_v55  ;;  %v4111_v36 = vmul.f32 %v5717_v40, %v4077_v33 }
 0x917   : > { %v4156_v59 = vadd.f32 %v4111_v36, %v4110_v9 }
 0x918   : > { %4139 = vadd.xlane.f32.xlu1 %v4138_v28 }
 0x91c   : > { %4145 = vadd.xlane.f32.xlu1 %v4144_v1 }
 0x91e   : > { %v5685_v35 = vpop.eup %5684 }
 0x91f   : > { %v5687_v5 = vpop.eup %5686  ;;  %v4079_v34 = vmul.f32 0.6931472, %v5685_v35 }
 0x920   : > { %4151 = vadd.xlane.f32.xlu1 %v4150_v51  ;;  %v4081_v50 = vmul.f32 0.6931472, %v5687_v5 }
 0x921   : > { %v4112_v38 = vmul.f32 %v5718_v2, %v4079_v34 }
 0x922   : > { %v4113_v30 = vmul.f32 %v5719_v21, %v4081_v50 }
 0x924   : > { %4157 = vadd.xlane.f32.xlu1 %v4156_v59  ;;  %v4159_v3 = vadd.f32 %v4113_v30, %v4112_v38 }
 0x926   : > { %4160 = vadd.xlane.f32.xlu0 %v4159_v3 }
 0x933   : > { %v8422_v32 = vpop.xlane.xlu0 %4403 }
 0x937   : > { %v8433_v22 = vpop.xlane.xlu0 %4409 }
 0x938   : > { %5813 = shalt.err (!%p5810_p13)
}
 0x939   : > { %s5814_s30 = scalar_lea.hbm %s8428_s11, 4096  ;;  %s5818_s17 = scalar_lea.hbm %s8516_s13, 8192 }
 0x93a   : > { %p5815_p5 = scmp.ne.s32.totalorder %s8428_s11, %s5814_s30  ;;  %p5819_p8 = scmp.lt.s32.totalorder %s8428_s11, %s8516_s13 }
 0x93b   : > { %p5820_p7 = scmp.lt.s32.totalorder %s5818_s17, %s5814_s30 }
 0x93c   : > { %p5816_p0 = pnand %p5815_p5, %p8676_p1 }
 0x93d   : > { %p5821_p11 = por %p5820_p7, %p5819_p8 }
 0x93e   : > { %p5817_p4 = pneg %p5816_p0 }
 0x940   : > { %p5822_p10 = pnand %p5821_p11, %p5817_p4 }
 0x942   : > { %5825 = shalt.err (!%p5822_p10)
}
 0x943   : > { %s5881_s18 = smov 256   ;;  %s5882_s26 = smov 16   ;;  %v4413_v29 = vpop.xlane.xlu0 %4412  ;;  %v4407_v47 = vpop.xlane.xlu1 %4406  ;;  %v4810_v8 = vadd.f32 -32.0, %v8422_v32  ;;  %v4812_v36 = vadd.f32 -32.0, %v8433_v22 }
 0x944   : > { %5052 = dma.vmem_to_hbm [thread:$0]  (%p8676_p1), %s8431_s6, 4096, %s8428_s11, %s4515_s16, %s5881_s18, %s5881_s18, %s5882_s26   ;;  %v4811_v0 = vadd.f32 -32.0, %v4407_v47  ;;  %v4813_v54 = vadd.f32 -32.0, %v4413_v29 }
 0x945   : > { %s8677_s28 = sld [smem:[#allocation48_spill]]  ;;  %v4466_v40 = vmul.f32 0.5, %v4810_v8  ;;  %v4468_v38 = vmul.f32 0.5, %v4812_v36 }
 0x946   : > { %v4467_v42 = vmul.f32 0.5, %v4811_v0  ;;  %v4469_v39 = vmul.f32 0.5, %v4813_v54 }
 0x947   : > { %v4419_v62 = vpop.xlane.xlu0 %4418  ;;  %v4416_v45 = vpop.xlane.xlu1 %4415 }
 0x948   : > { %v4815_v43 = vadd.f32 -32.0, %v4419_v62  ;;  %v4814_v2 = vadd.f32 -32.0, %v4416_v45 }
 0x94a   : > { %v4471_v53 = vmul.f32 0.5, %v4815_v43  ;;  %v4470_v3 = vmul.f32 0.5, %v4814_v2 }
 0x94b   : > { %v4425_v31 = vpop.xlane.xlu0 %4424  ;;  %s8464_s30 = scalar_lea.vmem %s8677_s28, %s6511_s20  ;;  %v4422_v19 = vpop.xlane.xlu1 %4421 }
 0x94c   : > { %v4817_v12 = vadd.f32 -32.0, %v4425_v31  ;;  %v4816_v29 = vadd.f32 -32.0, %v4422_v19 }
 0x94e   : > { %v4473_v52 = vmul.f32 0.5, %v4817_v12 }
 0x94f   : > { %v4431_v25 = vpop.xlane.xlu0 %4430  ;;  %v4428_v60 = vpop.xlane.xlu1 %4427 }
 0x950   : > { %v4819_v18 = vadd.f32 -32.0, %v4431_v25  ;;  %v4472_v25 = vmul.f32 0.5, %v4816_v29  ;;  %v4818_v22 = vadd.f32 -32.0, %v4428_v60 }
 0x952   : > { %v4475_v46 = vmul.f32 0.5, %v4819_v18  ;;  %v4474_v0 = vmul.f32 0.5, %v4818_v22 }
 0x953   : > { %v4437_v56 = vpop.xlane.xlu0 %4436  ;;  %v4434_v33 = vpop.xlane.xlu1 %4433 }
 0x954   : > { %v4821_v20 = vadd.f32 -32.0, %v4437_v56 }
 0x956   : > { %v4477_v28 = vmul.f32 0.5, %v4821_v20 }
 0x957   : > { %v4443_v23 = vpop.xlane.xlu0 %4442  ;;  %v4440_v35 = vpop.xlane.xlu1 %4439 }
 0x958   : > { %v4823_v4 = vadd.f32 -32.0, %v4443_v23 }
 0x95a   : > { %v4479_v55 = vmul.f32 0.5, %v4823_v4 }
 0x95b   : > { %v8458_v48 = vpop.xlane.xlu0 %4448 }
 0x95c   : > { %v4825_v12 = vadd.f32 -32.0, %v8458_v48 }
 0x95f   : > { %v4119_v27 = vpop.xlane.xlu0 %4118 }
 0x960   : > { %v4163_v63 = vsub.f32 0.0, %v4119_v27  ;;  %v4820_v27 = vadd.f32 -32.0, %v4434_v33 }
 0x962   : > { %v4483_v16 = vadd.f32 %v4467_v42, %v4163_v63  ;;  %v4476_v54 = vmul.f32 0.5, %v4820_v27 }
 0x963   : > { %v4125_v58 = vpop.xlane.xlu0 %4124 }
 0x964   : > { %4499 = vst [vmem:[%s8464_s30 + $0x8] sm:$0xff] %v4483_v16  ;;  %v4165_v41 = vsub.f32 0.0, %v4125_v58  ;;  %v4822_v58 = vadd.f32 -32.0, %v4440_v35 }
 0x966   : > { %v4485_v26 = vadd.f32 %v4469_v39, %v4165_v41 }
 0x968   : > { %4501 = vst [vmem:[%s8464_s30 + $0x18] sm:$0xff] %v4485_v26  ;;  %v4478_v26 = vmul.f32 0.5, %v4822_v58 }
 0x969   : > { %v4131_v14 = vpop.xlane.xlu0 %4130 }
 0x96a   : > { %v4167_v17 = vsub.f32 0.0, %v4131_v14 }
 0x96c   : > { %v4487_v13 = vadd.f32 %v4471_v53, %v4167_v17 }
 0x96d   : > { %v4137_v49 = vpop.xlane.xlu0 %4136 }
 0x96e   : > { %4503 = vst [vmem:[%s8464_s30 + $0x28] sm:$0xff] %v4487_v13  ;;  %v4169_v10 = vsub.f32 0.0, %v4137_v49 }
 0x970   : > { %v4489_v57 = vadd.f32 %v4473_v52, %v4169_v10  ;;  %v4481_v10 = vmul.f32 0.5, %v4825_v12 }
 0x971   : > { %v4143_v44 = vpop.xlane.xlu0 %4142 }
 0x972   : > { %4505 = vst [vmem:[%s8464_s30 + $0x38] sm:$0xff] %v4489_v57  ;;  %v4171_v24 = vsub.f32 0.0, %v4143_v44 }
 0x974   : > { %v4491_v15 = vadd.f32 %v4475_v46, %v4171_v24 }
 0x975   : > { %v4149_v6 = vpop.xlane.xlu0 %4148 }
 0x976   : > { %4507 = vst [vmem:[%s8464_s30 + $0x48] sm:$0xff] %v4491_v15  ;;  %v4173_v11 = vsub.f32 0.0, %v4149_v6 }
 0x978   : > { %v4493_v1 = vadd.f32 %v4477_v28, %v4173_v11 }
 0x979   : > { %v4155_v37 = vpop.xlane.xlu0 %4154 }
 0x97a   : > { %4509 = vst [vmem:[%s8464_s30 + $0x58] sm:$0xff] %v4493_v1  ;;  %v4175_v61 = vsub.f32 0.0, %v4155_v37 }
 0x97c   : > { %v4495_v7 = vadd.f32 %v4479_v55, %v4175_v61 }
 0x97e   : > { %4511 = vst [vmem:[%s8464_s30 + $0x68] sm:$0xff] %v4495_v7 }
 0x98d   : > { %v4446_v51 = vpop.xlane.xlu1 %4445 }
 0x98e   : > { %v4824_v14 = vadd.f32 -32.0, %v4446_v51 }
 0x990   : > { %v4480_v49 = vmul.f32 0.5, %v4824_v14 }
 0x991   : > { %v4116_v9 = vpop.xlane.xlu1 %4115 }
 0x992   : > { %v4162_v5 = vsub.f32 0.0, %v4116_v9 }
 0x994   : > { %v4482_v34 = vadd.f32 %v4466_v40, %v4162_v5 }
 0x995   : > { %v4122_v50 = vpop.xlane.xlu1 %4121 }
 0x996   : > { %4498 = vst [vmem:[%s8464_s30] sm:$0xff] %v4482_v34  ;;  %v4164_v59 = vsub.f32 0.0, %v4122_v50 }
 0x998   : > { %v4484_v21 = vadd.f32 %v4468_v38, %v4164_v59 }
 0x999   : > { %v4128_v30 = vpop.xlane.xlu1 %4127 }
 0x99a   : > { %4500 = vst [vmem:[%s8464_s30 + $0x10] sm:$0xff] %v4484_v21  ;;  %v4166_v62 = vsub.f32 0.0, %v4128_v30 }
 0x99c   : > { %v4486_v32 = vadd.f32 %v4470_v3, %v4166_v62 }
 0x99d   : > { %v4134_v31 = vpop.xlane.xlu1 %4133 }
 0x99e   : > { %4502 = vst [vmem:[%s8464_s30 + $0x20] sm:$0xff] %v4486_v32  ;;  %v4168_v56 = vsub.f32 0.0, %v4134_v31 }
 0x9a0   : > { %v4488_v23 = vadd.f32 %v4472_v25, %v4168_v56 }
 0x9a1   : > { %v4140_v47 = vpop.xlane.xlu1 %4139 }
 0x9a2   : > { %4504 = vst [vmem:[%s8464_s30 + $0x30] sm:$0xff] %v4488_v23  ;;  %v4170_v42 = vsub.f32 0.0, %v4140_v47 }
 0x9a4   : > { %v4490_v63 = vadd.f32 %v4474_v0, %v4170_v42 }
 0x9a5   : > { %v4146_v16 = vpop.xlane.xlu1 %4145 }
 0x9a6   : > { %4506 = vst [vmem:[%s8464_s30 + $0x40] sm:$0xff] %v4490_v63  ;;  %v4172_v39 = vsub.f32 0.0, %v4146_v16 }
 0x9a8   : > { %v4492_v41 = vadd.f32 %v4476_v54, %v4172_v39 }
 0x9a9   : > { %v4152_v43 = vpop.xlane.xlu1 %4151 }
 0x9aa   : > { %4508 = vst [vmem:[%s8464_s30 + $0x50] sm:$0xff] %v4492_v41  ;;  %v4174_v53 = vsub.f32 0.0, %v4152_v43 }
 0x9ac   : > { %v4494_v17 = vadd.f32 %v4478_v26, %v4174_v53 }
 0x9ad   : > { %v4158_v13 = vpop.xlane.xlu1 %4157 }
 0x9ae   : > { %4510 = vst [vmem:[%s8464_s30 + $0x60] sm:$0xff] %v4494_v17  ;;  %v4176_v52 = vsub.f32 0.0, %v4158_v13 }
 0x9af   : > { %v4161_v18 = vpop.xlane.xlu0 %4160 }
 0x9b0   : > { %v4496_v57 = vadd.f32 %v4480_v49, %v4176_v52  ;;  %v4177_v45 = vsub.f32 0.0, %v4161_v18 }
 0x9b2   : > { %4512 = vst [vmem:[%s8464_s30 + $0x70] sm:$0xff] %v4496_v57  ;;  %v4497_v44 = vadd.f32 %v4481_v10, %v4177_v45 }
 0x9b4   : > { %4513 = vst [vmem:[%s8464_s30 + $0x78] sm:$0xff] %v4497_v44 }
 0x9b5 PF: > { %s8678_s29 = sld [smem:[#allocation12_spill]] }
 0x9b6   : > { %s8679_s23 = sld [smem:[#allocation15_spill]] }
 0x9b7   : > { %s8680_s20 = sld [smem:[#allocation14_spill]] }
 0x9bb   : > { %s4562_s11 = sand.u32 1, %s8678_s29  }
 0x9bc   : > { %p8681_p1 = scmp.ne.s32.totalorder %s8679_s23, 0  ;;  %s4563_s6 = scalar_lea.sflag [#allocation4], %s4562_s11 }
 0x9bd   : > { %p8682_p2 = scmp.ge.s32.totalorder %s8680_s20, 2 }
 0x9bf   : > { %p5066_p6 = pnand %p8682_p2, %p8681_p1 }
 0x9c1   : > { %p5067_p12 = pneg %p5066_p6 }
 0x9c3   : > { %5851 = dma.done.wait (%p5067_p12), %s4563_s6, 4096  }
 0x9c4   : > { %5853 = vsyncadd (%p5067_p12), %s4563_s6, 4294963200  ;;  %s8683_s21 = sld [smem:[#allocation16_spill]]  ;;  %s8686_s18 = smov %s5860_s19 }
 0x9c5   : > { %s8684_s16 = sld [smem:[#allocation13_spill]] }
 0x9c6   : > { %s8685_s20 = sld [smem:[#allocation17_spill]] }
 0x9ca   : > { %p30_p3 = scmp.ge.s32.totalorder %s8683_s21, 4  }
 0x9cb   : > { %s8687_s19 = smov %s8684_s16 }
 0x9cc   :  { %32 = sbr.rel (!%p30_p3) target bundleno = 10 (0xa), region = 158 }
 0x9d1   :  { %4584 = vsyncpa [#allocation3], 1 }
 0x9d2   :  { %4586 = vsyncpa [#allocation3 + $0x1], 1 }
 0x9d3   :  { %4587 = vsyncpa [#allocation6], 1 }
 0x9d4   :  { %4588 = vsyncpa [#allocation4], 1 }
 0x9d5   :  { %4590 = vsyncpa [#allocation4 + $0x1], 1 }

</bundles_post_ra>
